<compile_context>
chip_gen: v5e
topology: v5e:2x2
jax: 0.10.0
libtpu: 0.0.40
codegen_flags: <defaults>
</compile_context>

<pallas_src>
import jax
import jax.numpy as jnp
from jax import lax
from jax.experimental import pallas as pl
from jax.experimental.pallas import tpu as pltpu

_BN_EPS = 1e-5
_LANE = 128


# ------------------------------------------------------------------ small helpers
def _round_up(x, m):
    return ((x + m - 1) // m) * m


def _largest_divisor_leq(n, cap):
    for d in range(min(n, cap), 0, -1):
        if n % d == 0:
            return d
    return 1


def _pad_and_phase(x, stride):
    """x: (N, H, W, C) -> zero-pad spatial by 1 and phase-split W by `stride`.

    Returns (N*stride, H+2, Wq, C); row n*stride+p holds the columns congruent to
    p (mod stride) of image n so every conv tap becomes a static contiguous slice."""
    N, H, W, C = x.shape
    s = stride
    xp = jnp.pad(x, ((0, 0), (1, 1), (1, 1), (0, 0)))
    Wp = W + 2
    Wp_pad = _round_up(Wp, s)
    if Wp_pad != Wp:
        xp = jnp.pad(xp, ((0, 0), (0, 0), (0, Wp_pad - Wp), (0, 0)))
    if s == 1:
        return xp
    xs = jnp.stack([xp[:, :, p::s, :] for p in range(s)], axis=1)
    return xs.reshape(N * s, H + 2, Wp_pad // s, C)


# ------------------------------------------------------------------ BN statistics kernel
def _stats_kernel(x_ref, sum_ref, sq_ref):
    @pl.when(pl.program_id(0) == 0)
    def _():
        sum_ref[...] = jnp.zeros_like(sum_ref)
        sq_ref[...] = jnp.zeros_like(sq_ref)

    x = x_ref[...]                                   # (rb, L, C)
    sum_ref[...] += jnp.sum(x, axis=(0, 1))[None, :]
    sq_ref[...] += jnp.sum(x * x, axis=(0, 1))[None, :]


def _channel_sums(a):
    """a: (..., L, C) f32 -> (sum_c, sumsq_c), each (C,). Tiled Pallas reduction."""
    L, C = a.shape[-2], a.shape[-1]
    a3 = a.reshape(-1, L, C)
    R = a3.shape[0]
    cap = max(1, min(64, (2 * 1024 * 1024) // max(1, L * C * 4)))
    rb = _largest_divisor_leq(R, cap)
    sums, sqs = pl.pallas_call(
        _stats_kernel,
        out_shape=(jax.ShapeDtypeStruct((1, C), jnp.float32),
                   jax.ShapeDtypeStruct((1, C), jnp.float32)),
        grid=(R // rb,),
        in_specs=[pl.BlockSpec((rb, L, C), lambda i: (i, 0, 0))],
        out_specs=(pl.BlockSpec((1, C), lambda i: (0, 0)),
                   pl.BlockSpec((1, C), lambda i: (0, 0))),
        compiler_params=pltpu.CompilerParams(dimension_semantics=("arbitrary",)),
    )(a3)
    return sums[0], sqs[0]


# ------------------------------------------------------------------ fused BN+ReLU+conv kernel
def _make_conv_kernel(*, stride, H_valid, W_valid, Wo, out_rows, pad_out,
                      res_mode, res_stride):
    s = stride
    KH = KW = 3

    def kernel(*refs):
        scale_ref, bias_ref = refs[0], refs[1]
        x_refs = refs[2:2 + KH]
        w_ref = refs[2 + KH]
        i = 3 + KH
        xr_ref = wsc_ref = None
        if res_mode == "proj":
            xr_ref, wsc_ref = refs[i], refs[i + 1]
            i += 2
        elif res_mode == "identity":
            xr_ref = refs[i]
            i += 1
        o_ref = refs[i]

        cout = o_ref.shape[-1]
        hp = pl.program_id(1)
        ho = hp - 1 if pad_out else hp               # output row index

        def compute_row():
            scale = scale_ref[...]                   # (1, Cin_p)
            bias = bias_ref[...]
            acc = jnp.zeros((Wo, cout), jnp.float32)
            for kh in range(KH):
                r = s * ho + kh                      # padded-coords input row
                row_ok = jnp.logical_and(r >= 1, r <= H_valid)
                for p in range(s):
                    kws = [kw for kw in range(KW) if kw % s == p]
                    if not kws:
                        continue
                    xrow = x_refs[kh][p, 0]          # (Wq, Cin_p) f32
                    a = jnp.maximum(xrow * scale + bias, 0.0)      # fused BN + ReLU
                    j = lax.broadcasted_iota(jnp.int32, (xrow.shape[0], 1), 0)
                    c = p + s * j                    # padded-coords column
                    ok = jnp.logical_and(c >= 1, c <= W_valid)
                    ok = jnp.logical_and(ok, row_ok)
                    a = jnp.where(ok, a, 0.0).astype(jnp.bfloat16)
                    for kw in kws:
                        j0 = kw // s
                        acc = acc + jnp.dot(a[j0:j0 + Wo, :], w_ref[kh, kw],
                                            preferred_element_type=jnp.float32)
            # fused residual
            if res_mode == "proj":
                pr = 1 % res_stride
                jr = (1 - pr) // res_stride
                xres = xr_ref[pr, 0]                 # (Wq_r, Cin_p) f32
                acc = acc + jnp.dot(xres[jr:jr + Wo, :].astype(jnp.bfloat16),
                                    wsc_ref[...],
                                    preferred_element_type=jnp.float32)
            elif res_mode == "identity":
                xres = xr_ref[0, 0]                  # (W+2, Cout_p) f32
                acc = acc + xres[1:1 + Wo, :]
            return acc

        if pad_out:
            interior = jnp.logical_and(hp >= 1, hp <= out_rows)
            zrow = jnp.zeros((1, cout), jnp.float32)

            @pl.when(interior)
            def _():
                # write the row with a zero column border on each side
                o_ref[0, 0] = jnp.concatenate([zrow, compute_row(), zrow], axis=0)

            @pl.when(jnp.logical_not(interior))
            def _():
                o_ref[...] = jnp.zeros(o_ref.shape, o_ref.dtype)
        else:
            o_ref[0, 0] = compute_row()

    return kernel


def _conv3x3(xph, w, scale, bias, *, stride, H_valid, W_valid, Ho, Wo, pad_out,
             res_mode=None, res_xph=None, res_stride=1, wsc=None):
    """Fused relu(x*scale+bias) -> 3x3 conv (stride) [-> + residual] on phase-split input.

    xph:  (N*stride, H+2, Wq, Cin_p) f32     w: (3, 3, Cin_p, Cout_p) bf16
    scale/bias: (1, Cin_p) f32               output: (N, Ho(+2), Wo(+2), Cout_p) f32
    """
    s = stride
    NS, Hp, Wq, Cin_p = xph.shape
    N = NS // s
    Cout_p = w.shape[-1]
    Hgrid = Ho + 2 if pad_out else Ho
    Wout = Wo + 2 if pad_out else Wo

    def ho_of(hp):
        return hp - 1 if pad_out else hp

    def x_map(kh):
        def im(n, hp):
            r = s * ho_of(hp) + kh
            r = jnp.maximum(0, jnp.minimum(r, Hp - 1))   # clamp (border rows are skipped)
            return (n, r, 0, 0)
        return im

    in_specs = [pl.BlockSpec((1, Cin_p), lambda n, hp: (0, 0)),
                pl.BlockSpec((1, Cin_p), lambda n, hp: (0, 0))]
    inputs = [scale, bias]
    for kh in range(3):
        in_specs.append(pl.BlockSpec((s, 1, Wq, Cin_p), x_map(kh)))
        inputs.append(xph)
    in_specs.append(pl.BlockSpec(w.shape, lambda n, hp: (0, 0, 0, 0)))  # resident weight
    inputs.append(w)
    if res_mode is not None:
        sr = res_stride
        _, Hp_r, Wq_r, Cin_r = res_xph.shape
        in_specs.append(pl.BlockSpec((sr, 1, Wq_r, Cin_r),
                                     lambda n, hp: (n, sr * ho_of(hp) + 1, 0, 0)))
        inputs.append(res_xph)
        if res_mode == "proj":
            in_specs.append(pl.BlockSpec(wsc.shape, lambda n, hp: (0, 0)))
            inputs.append(wsc)

    kernel = _make_conv_kernel(stride=s, H_valid=H_valid, W_valid=W_valid, Wo=Wo,
                               out_rows=Ho, pad_out=pad_out,
                               res_mode=res_mode, res_stride=res_stride)

    flops = 2 * N * Ho * Wo * 9 * Cin_p * Cout_p
    if res_mode == "proj":
        flops += 2 * N * Ho * Wo * Cin_p * Cout_p
    bytes_accessed = int(xph.size * xph.dtype.itemsize * 3 + w.size * 2
                         + N * Hgrid * Wout * Cout_p * 4)

    return pl.pallas_call(
        kernel,
        out_shape=jax.ShapeDtypeStruct((N, Hgrid, Wout, Cout_p), jnp.float32),
        grid=(N, Hgrid),
        in_specs=in_specs,
        out_specs=pl.BlockSpec((1, 1, Wout, Cout_p), lambda n, hp: (n, hp, 0, 0)),
        compiler_params=pltpu.CompilerParams(
            dimension_semantics=("parallel", "parallel")),
        cost_estimate=pl.CostEstimate(flops=int(flops), transcendentals=0,
                                      bytes_accessed=bytes_accessed),
    )(*inputs)


# ------------------------------------------------------------------ PreActBlock forward
def preact_block_pallas(x_nchw, params, stride):
    w1, w2, wsc = params["conv1_w"], params["conv2_w"], params["shortcut_w"]
    g1, b1 = params["bn1_g"], params["bn1_b"]
    g2, b2 = params["bn2_g"], params["bn2_b"]

    N, Cin, H, W = x_nchw.shape
    Cout = w1.shape[0]
    s = stride
    Ho = (H - 1) // s + 1
    Wo = (W - 1) // s + 1
    Cin_p = _round_up(Cin, _LANE)
    Cout_p = _round_up(Cout, _LANE)

    # glue: NCHW -> NHWC, lane-dense channel pad, spatial pad + W phase split
    x = jnp.transpose(x_nchw, (0, 2, 3, 1)).astype(jnp.float32)
    x = jnp.pad(x, ((0, 0), (0, 0), (0, 0), (0, Cin_p - Cin)))
    xph = _pad_and_phase(x, s)                                   # (N*s, H+2, Wq, Cin_p)

    # BN1 statistics (tiled Pallas sum/sumsq; zero padding does not bias the sums)
    cnt1 = N * H * W
    s1, q1 = _channel_sums(xph)
    mean1 = s1 / cnt1
    var1 = jnp.maximum(q1 / cnt1 - mean1 * mean1, 0.0)
    g1p = jnp.pad(g1.astype(jnp.float32), (0, Cin_p - Cin))
    b1p = jnp.pad(b1.astype(jnp.float32), (0, Cin_p - Cin))
    scale1 = (g1p * lax.rsqrt(var1 + _BN_EPS)).reshape(1, Cin_p)
    bias1 = (b1p - mean1 * scale1[0]).reshape(1, Cin_p)

    # conv1 weights: OIHW -> (3,3,Cin_p,Cout_p) bf16
    w1m = jnp.transpose(w1, (2, 3, 1, 0)).astype(jnp.float32)
    w1m = jnp.pad(w1m, ((0, 0), (0, 0), (0, Cin_p - Cin), (0, Cout_p - Cout)))
    w1m = w1m.astype(jnp.bfloat16)

    # out1 = conv1(relu(bn1(x))), written directly with a zero spatial border
    out1p = _conv3x3(xph, w1m, scale1, bias1, stride=s, H_valid=H, W_valid=W,
                     Ho=Ho, Wo=Wo, pad_out=True)                 # (N, Ho+2, Wo+2, Cout_p)

    # BN2 statistics over out1 (border/channel padding is exactly zero)
    cnt2 = N * Ho * Wo
    s2, q2 = _channel_sums(out1p)
    mean2 = s2 / cnt2
    var2 = jnp.maximum(q2 / cnt2 - mean2 * mean2, 0.0)
    g2p = jnp.pad(g2.astype(jnp.float32), (0, Cout_p - Cout))
    b2p = jnp.pad(b2.astype(jnp.float32), (0, Cout_p - Cout))
    scale2 = (g2p * lax.rsqrt(var2 + _BN_EPS)).reshape(1, Cout_p)
    bias2 = (b2p - mean2 * scale2[0]).reshape(1, Cout_p)

    # conv2 weights
    w2m = jnp.transpose(w2, (2, 3, 1, 0)).astype(jnp.float32)
    w2m = jnp.pad(w2m, ((0, 0), (0, 0), (0, Cout_p - Cout), (0, Cout_p - Cout)))
    w2m = w2m.astype(jnp.bfloat16)

    # shortcut (fused into the conv2 kernel)
    has_proj = (s != 1) or (Cin != Cout)
    if has_proj:
        wscm = jnp.transpose(wsc[:, :, 0, 0], (1, 0)).astype(jnp.float32)
        wscm = jnp.pad(wscm, ((0, Cin_p - Cin), (0, Cout_p - Cout))).astype(jnp.bfloat16)
        res_mode = "proj"
    else:
        wscm = None
        res_mode = "identity"

    # out = conv2(relu(bn2(out1))) + shortcut(x)
    out2 = _conv3x3(out1p, w2m, scale2, bias2, stride=1, H_valid=Ho, W_valid=Wo,
                    Ho=Ho, Wo=Wo, pad_out=False,
                    res_mode=res_mode, res_xph=xph, res_stride=s, wsc=wscm)

    out = out2[:, :, :, :Cout]
    return jnp.transpose(out, (0, 3, 1, 2))                      # back to NCHW


# ------------------------------------------------------------------ pure-JAX reference
def preact_block_ref(x, params, stride):
    w1, w2, wsc = params["conv1_w"], params["conv2_w"], params["shortcut_w"]
    g1, b1, g2, b2 = params["bn1_g"], params["bn1_b"], params["bn2_g"], params["bn2_b"]

    def bn(x, g, b):
        mean = jnp.mean(x, axis=(0, 2, 3), keepdims=True)
        var = jnp.var(x, axis=(0, 2, 3), keepdims=True)
        return (x - mean) * lax.rsqrt(var + _BN_EPS) * g.reshape(1, -1, 1, 1) \
            + b.reshape(1, -1, 1, 1)

    def conv(x, w, s, pad):
        return lax.conv_general_dilated(
            x, w, (s, s), [(pad, pad), (pad, pad)],
            dimension_numbers=("NCHW", "OIHW", "NCHW"))

    has_shortcut = (stride != 1) or (x.shape[1] != w1.shape[0])
    out = jax.nn.relu(bn(x, g1, b1))
    shortcut = conv(x, wsc, stride, 0) if has_shortcut else x
    out = conv(out, w1, stride, 1)
    out = conv(jax.nn.relu(bn(out, g2, b2)), w2, 1, 1)
    return out + shortcut


# ------------------------------------------------------------------ main
if __name__ == "__main__":
    N, in_planes, H, W = 2, 4, 16, 16
    planes, stride = 8, 2

    key = jax.random.PRNGKey(0)
    ks = jax.random.split(key, 8)
    x = jax.random.normal(ks[0], (N, in_planes, H, W), jnp.float32)
    params = {
        "conv1_w": jax.random.normal(ks[1], (planes, in_planes, 3, 3), jnp.float32) * 0.2,
        "conv2_w": jax.random.normal(ks[2], (planes, planes, 3, 3), jnp.float32) * 0.2,
        "shortcut_w": jax.random.normal(ks[3], (planes, in_planes, 1, 1), jnp.float32) * 0.2,
        "bn1_g": 1.0 + 0.1 * jax.random.normal(ks[4], (in_planes,), jnp.float32),
        "bn1_b": 0.1 * jax.random.normal(ks[5], (in_planes,), jnp.float32),
        "bn2_g": 1.0 + 0.1 * jax.random.normal(ks[6], (planes,), jnp.float32),
        "bn2_b": 0.1 * jax.random.normal(ks[7], (planes,), jnp.float32),
    }

    fwd = jax.jit(lambda xx, pp: preact_block_pallas(xx, pp, stride=stride))
    out = jax.block_until_ready(fwd(x, params))

    ref = jax.block_until_ready(preact_block_ref(x, params, stride))
    assert out.shape == ref.shape == (N, planes, H // stride, W // stride), out.shape
    assert jnp.allclose(out, ref, rtol=5e-2, atol=5e-2), \
        float(jnp.max(jnp.abs(out - ref)))

    print("KERNEL_OK")
</pallas_src>

<mosaic_0001>
module attributes {stable_mosaic.version = 11 : i64} {
  func.func @_stats_kernel(%arg0: i32, %arg1: memref<36x9x128xf32, #tpu.memory_space<vmem>>, %arg2: memref<1x128xf32, #tpu.memory_space<vmem>>, %arg3: memref<1x128xf32, #tpu.memory_space<vmem>>) attributes {dimension_semantics = [#tpu.dimension_semantics<arbitrary>], iteration_bounds = array<i64: 2>, scalar_prefetch = 0 : i64, scratch_operands = 0 : i64, tpu.core_type = #tpu.core_type<tc>, window_params = [{transform_indices = @transform_0, window_bounds = array<i64: 36, 9, 128>}, {pipeline_mode = #tpu.pipeline_mode<synchronous>, transform_indices = @transform_1, window_bounds = array<i64: 1, 128>}, {pipeline_mode = #tpu.pipeline_mode<synchronous>, transform_indices = @transform_2, window_bounds = array<i64: 1, 128>}]} {
    %c0_i32 = arith.constant 0 : i32
    %0 = arith.cmpi eq, %arg0, %c0_i32 : i32
    %1 = arith.extui %0 : i1 to i32
    %c0_i32_0 = arith.constant 0 : i32
    %2 = arith.cmpi ne, %1, %c0_i32_0 : i32
    scf.if %2 {
      %cst_12 = arith.constant 0.000000e+00 : f32
      %15 = vector.broadcast %cst_12 : f32 to vector<1x128xf32>
      %c0_13 = arith.constant 0 : index
      %c0_14 = arith.constant 0 : index
      %16 = vector.load %arg2[%c0_13, %c0_14] : memref<1x128xf32, #tpu.memory_space<vmem>>, vector<1x128xf32>
      tpu.vector_store %arg2[%c0_13, %c0_14], %15 {strides = array<i32>} : memref<1x128xf32, #tpu.memory_space<vmem>>, vector<1x128xf32>,
      %cst_15 = arith.constant 0.000000e+00 : f32
      %17 = vector.broadcast %cst_15 : f32 to vector<1x128xf32>
      %c0_16 = arith.constant 0 : index
      %c0_17 = arith.constant 0 : index
      %18 = vector.load %arg3[%c0_16, %c0_17] : memref<1x128xf32, #tpu.memory_space<vmem>>, vector<1x128xf32>
      tpu.vector_store %arg3[%c0_16, %c0_17], %17 {strides = array<i32>} : memref<1x128xf32, #tpu.memory_space<vmem>>, vector<1x128xf32>,
    } else {
    }
    %c0 = arith.constant 0 : index
    %c0_1 = arith.constant 0 : index
    %c0_2 = arith.constant 0 : index
    %3 = vector.load %arg1[%c0, %c0_1, %c0_2] : memref<36x9x128xf32, #tpu.memory_space<vmem>>, vector<36x9x128xf32>
    %c0_3 = arith.constant 0 : index
    %c0_4 = arith.constant 0 : index
    %4 = vector.load %arg2[%c0_3, %c0_4] : memref<1x128xf32, #tpu.memory_space<vmem>>, vector<1x128xf32>
    %cst = arith.constant dense<0.000000e+00> : vector<128xf32>
    %5 = vector.multi_reduction <add>, %3, %cst [0, 1] : vector<36x9x128xf32> to vector<128xf32>
    %6 = vector.shape_cast %5 : vector<128xf32> to vector<1x128xf32>
    %7 = arith.addf %4, %6 : vector<1x128xf32>
    %c0_5 = arith.constant 0 : index
    %c0_6 = arith.constant 0 : index
    %8 = vector.load %arg2[%c0_5, %c0_6] : memref<1x128xf32, #tpu.memory_space<vmem>>, vector<1x128xf32>
    tpu.vector_store %arg2[%c0_5, %c0_6], %7 {strides = array<i32>} : memref<1x128xf32, #tpu.memory_space<vmem>>, vector<1x128xf32>,
    %c0_7 = arith.constant 0 : index
    %c0_8 = arith.constant 0 : index
    %9 = vector.load %arg3[%c0_7, %c0_8] : memref<1x128xf32, #tpu.memory_space<vmem>>, vector<1x128xf32>
    %10 = arith.mulf %3, %3 : vector<36x9x128xf32>
    %cst_9 = arith.constant dense<0.000000e+00> : vector<128xf32>
    %11 = vector.multi_reduction <add>, %10, %cst_9 [0, 1] : vector<36x9x128xf32> to vector<128xf32>
    %12 = vector.shape_cast %11 : vector<128xf32> to vector<1x128xf32>
    %13 = arith.addf %9, %12 : vector<1x128xf32>
    %c0_10 = arith.constant 0 : index
    %c0_11 = arith.constant 0 : index
    %14 = vector.load %arg3[%c0_10, %c0_11] : memref<1x128xf32, #tpu.memory_space<vmem>>, vector<1x128xf32>
    tpu.vector_store %arg3[%c0_10, %c0_11], %13 {strides = array<i32>} : memref<1x128xf32, #tpu.memory_space<vmem>>, vector<1x128xf32>,
    return
  }
  func.func @transform_0(%arg0: i32) -> (i32, i32, i32) {
    %c0_i32 = arith.constant 0 : i32
    %c0_i32_0 = arith.constant 0 : i32
    %c0_i32_1 = arith.constant 0 : i32
    return %arg0, %c0_i32, %c0_i32_0 : i32, i32, i32
  }
  func.func @transform_1(%arg0: i32) -> (i32, i32) {
    %c0_i32 = arith.constant 0 : i32
    %c0_i32_0 = arith.constant 0 : i32
    %c0_i32_1 = arith.constant 0 : i32
    return %c0_i32, %c0_i32_0 : i32, i32
  }
  func.func @transform_2(%arg0: i32) -> (i32, i32) {
    %c0_i32 = arith.constant 0 : i32
    %c0_i32_0 = arith.constant 0 : i32
    %c0_i32_1 = arith.constant 0 : i32
    return %c0_i32, %c0_i32_0 : i32, i32
  }
}

module attributes {stable_mosaic.version = 11 : i64} {
  func.func @_stats_kernel(%arg0: i32, %arg1: memref<20x10x128xf32, #tpu.memory_space<vmem>>, %arg2: memref<1x128xf32, #tpu.memory_space<vmem>>, %arg3: memref<1x128xf32, #tpu.memory_space<vmem>>) attributes {dimension_semantics = [#tpu.dimension_semantics<arbitrary>], iteration_bounds = array<i64: 1>, scalar_prefetch = 0 : i64, scratch_operands = 0 : i64, tpu.core_type = #tpu.core_type<tc>, window_params = [{transform_indices = @transform_0, window_bounds = array<i64: 20, 10, 128>}, {pipeline_mode = #tpu.pipeline_mode<synchronous>, transform_indices = @transform_1, window_bounds = array<i64: 1, 128>}, {pipeline_mode = #tpu.pipeline_mode<synchronous>, transform_indices = @transform_2, window_bounds = array<i64: 1, 128>}]} {
    %c0_i32 = arith.constant 0 : i32
    %0 = arith.cmpi eq, %arg0, %c0_i32 : i32
    %1 = arith.extui %0 : i1 to i32
    %c0_i32_0 = arith.constant 0 : i32
    %2 = arith.cmpi ne, %1, %c0_i32_0 : i32
    scf.if %2 {
      %cst_12 = arith.constant 0.000000e+00 : f32
      %15 = vector.broadcast %cst_12 : f32 to vector<1x128xf32>
      %c0_13 = arith.constant 0 : index
      %c0_14 = arith.constant 0 : index
      %16 = vector.load %arg2[%c0_13, %c0_14] : memref<1x128xf32, #tpu.memory_space<vmem>>, vector<1x128xf32>
      tpu.vector_store %arg2[%c0_13, %c0_14], %15 {strides = array<i32>} : memref<1x128xf32, #tpu.memory_space<vmem>>, vector<1x128xf32>,
      %cst_15 = arith.constant 0.000000e+00 : f32
      %17 = vector.broadcast %cst_15 : f32 to vector<1x128xf32>
      %c0_16 = arith.constant 0 : index
      %c0_17 = arith.constant 0 : index
      %18 = vector.load %arg3[%c0_16, %c0_17] : memref<1x128xf32, #tpu.memory_space<vmem>>, vector<1x128xf32>
      tpu.vector_store %arg3[%c0_16, %c0_17], %17 {strides = array<i32>} : memref<1x128xf32, #tpu.memory_space<vmem>>, vector<1x128xf32>,
    } else {
    }
    %c0 = arith.constant 0 : index
    %c0_1 = arith.constant 0 : index
    %c0_2 = arith.constant 0 : index
    %3 = vector.load %arg1[%c0, %c0_1, %c0_2] : memref<20x10x128xf32, #tpu.memory_space<vmem>>, vector<20x10x128xf32>
    %c0_3 = arith.constant 0 : index
    %c0_4 = arith.constant 0 : index
    %4 = vector.load %arg2[%c0_3, %c0_4] : memref<1x128xf32, #tpu.memory_space<vmem>>, vector<1x128xf32>
    %cst = arith.constant dense<0.000000e+00> : vector<128xf32>
    %5 = vector.multi_reduction <add>, %3, %cst [0, 1] : vector<20x10x128xf32> to vector<128xf32>
    %6 = vector.shape_cast %5 : vector<128xf32> to vector<1x128xf32>
    %7 = arith.addf %4, %6 : vector<1x128xf32>
    %c0_5 = arith.constant 0 : index
    %c0_6 = arith.constant 0 : index
    %8 = vector.load %arg2[%c0_5, %c0_6] : memref<1x128xf32, #tpu.memory_space<vmem>>, vector<1x128xf32>
    tpu.vector_store %arg2[%c0_5, %c0_6], %7 {strides = array<i32>} : memref<1x128xf32, #tpu.memory_space<vmem>>, vector<1x128xf32>,
    %c0_7 = arith.constant 0 : index
    %c0_8 = arith.constant 0 : index
    %9 = vector.load %arg3[%c0_7, %c0_8] : memref<1x128xf32, #tpu.memory_space<vmem>>, vector<1x128xf32>
    %10 = arith.mulf %3, %3 : vector<20x10x128xf32>
    %cst_9 = arith.constant dense<0.000000e+00> : vector<128xf32>
    %11 = vector.multi_reduction <add>, %10, %cst_9 [0, 1] : vector<20x10x128xf32> to vector<128xf32>
    %12 = vector.shape_cast %11 : vector<128xf32> to vector<1x128xf32>
    %13 = arith.addf %9, %12 : vector<1x128xf32>
    %c0_10 = arith.constant 0 : index
    %c0_11 = arith.constant 0 : index
    %14 = vector.load %arg3[%c0_10, %c0_11] : memref<1x128xf32, #tpu.memory_space<vmem>>, vector<1x128xf32>
    tpu.vector_store %arg3[%c0_10, %c0_11], %13 {strides = array<i32>} : memref<1x128xf32, #tpu.memory_space<vmem>>, vector<1x128xf32>,
    return
  }
  func.func @transform_0(%arg0: i32) -> (i32, i32, i32) {
    %c0_i32 = arith.constant 0 : i32
    %c0_i32_0 = arith.constant 0 : i32
    %c0_i32_1 = arith.constant 0 : i32
    return %arg0, %c0_i32, %c0_i32_0 : i32, i32, i32
  }
  func.func @transform_1(%arg0: i32) -> (i32, i32) {
    %c0_i32 = arith.constant 0 : i32
    %c0_i32_0 = arith.constant 0 : i32
    %c0_i32_1 = arith.constant 0 : i32
    return %c0_i32, %c0_i32_0 : i32, i32
  }
  func.func @transform_2(%arg0: i32) -> (i32, i32) {
    %c0_i32 = arith.constant 0 : i32
    %c0_i32_0 = arith.constant 0 : i32
    %c0_i32_1 = arith.constant 0 : i32
    return %c0_i32, %c0_i32_0 : i32, i32
  }
}

module attributes {stable_mosaic.version = 11 : i64} {
  func.func @kernel(%arg0: i32, %arg1: i32, %arg2: memref<1x128xf32, #tpu.memory_space<vmem>>, %arg3: memref<1x128xf32, #tpu.memory_space<vmem>>, %arg4: memref<2x1x9x128xf32, #tpu.memory_space<vmem>>, %arg5: memref<2x1x9x128xf32, #tpu.memory_space<vmem>>, %arg6: memref<2x1x9x128xf32, #tpu.memory_space<vmem>>, %arg7: memref<3x3x128x128xbf16, #tpu.memory_space<vmem>>, %arg8: memref<1x1x10x128xf32, #tpu.memory_space<vmem>>) attributes {dimension_semantics = [#tpu.dimension_semantics<parallel>, #tpu.dimension_semantics<parallel>], iteration_bounds = array<i64: 2, 10>, scalar_prefetch = 0 : i64, scratch_operands = 0 : i64, tpu.core_type = #tpu.core_type<tc>, window_params = [{pipeline_mode = #tpu.pipeline_mode<synchronous>, transform_indices = @transform_0, window_bounds = array<i64: 1, 128>}, {pipeline_mode = #tpu.pipeline_mode<synchronous>, transform_indices = @transform_1, window_bounds = array<i64: 1, 128>}, {transform_indices = @transform_2, window_bounds = array<i64: 2, 1, 9, 128>}, {transform_indices = @transform_3, window_bounds = array<i64: 2, 1, 9, 128>}, {transform_indices = @transform_4, window_bounds = array<i64: 2, 1, 9, 128>}, {pipeline_mode = #tpu.pipeline_mode<synchronous>, transform_indices = @transform_5, window_bounds = array<i64: 3, 3, 128, 128>}, {transform_indices = @transform_6, window_bounds = array<i64: 1, 1, 10, 128>}]} {
    %c1_i32 = arith.constant 1 : i32
    %0 = arith.subi %arg1, %c1_i32 : i32
    %c1_i32_0 = arith.constant 1 : i32
    %1 = arith.cmpi sge, %arg1, %c1_i32_0 : i32
    %c8_i32 = arith.constant 8 : i32
    %2 = arith.cmpi sle, %arg1, %c8_i32 : i32
    %3 = arith.andi %1, %2 : i1
    %cst = arith.constant 0.000000e+00 : f32
    %4 = vector.broadcast %cst : f32 to vector<1x128xf32>
    %5 = arith.extui %3 : i1 to i32
    %c0_i32 = arith.constant 0 : i32
    %6 = arith.cmpi ne, %5, %c0_i32 : i32
    scf.if %6 {
      %c0 = arith.constant 0 : index
      %c0_2 = arith.constant 0 : index
      %10 = vector.load %arg2[%c0, %c0_2] : memref<1x128xf32, #tpu.memory_space<vmem>>, vector<1x128xf32>
      %c0_3 = arith.constant 0 : index
      %c0_4 = arith.constant 0 : index
      %11 = vector.load %arg3[%c0_3, %c0_4] : memref<1x128xf32, #tpu.memory_space<vmem>>, vector<1x128xf32>
      %cst_5 = arith.constant 0.000000e+00 : f32
      %12 = vector.broadcast %cst_5 : f32 to vector<8x128xf32>
      %c2_i32 = arith.constant 2 : i32
      %13 = arith.muli %c2_i32, %0 : i32
      %c0_i32_6 = arith.constant 0 : i32
      %14 = arith.addi %13, %c0_i32_6 : i32
      %c1_i32_7 = arith.constant 1 : i32
      %15 = arith.cmpi sge, %14, %c1_i32_7 : i32
      %c16_i32 = arith.constant 16 : i32
      %16 = arith.cmpi sle, %14, %c16_i32 : i32
      %17 = arith.andi %15, %16 : i1
      %c0_8 = arith.constant 0 : index
      %c0_9 = arith.constant 0 : index
      %c0_10 = arith.constant 0 : index
      %c0_11 = arith.constant 0 : index
      %18 = vector.load %arg4[%c0_8, %c0_9, %c0_10, %c0_11] : memref<2x1x9x128xf32, #tpu.memory_space<vmem>>, vector<1x1x9x128xf32>
      %19 = vector.shape_cast %18 : vector<1x1x9x128xf32> to vector<9x128xf32>
      %20 = vector.broadcast %10 : vector<1x128xf32> to vector<9x128xf32>
      %21 = arith.mulf %19, %20 : vector<9x128xf32>
      %22 = vector.broadcast %11 : vector<1x128xf32> to vector<9x128xf32>
      %23 = arith.addf %21, %22 : vector<9x128xf32>
      %cst_12 = arith.constant 0.000000e+00 : f32
      %24 = vector.broadcast %cst_12 : f32 to vector<9x128xf32>
      %25 = arith.maximumf %23, %24 : vector<9x128xf32>
      %26 = tpu.iota {dimensions = array<i32: 0>} : vector<9x1xi32>
      %c2_i32_13 = arith.constant 2 : i32
      %27 = vector.broadcast %c2_i32_13 : i32 to vector<9x1xi32>
      %28 = arith.muli %27, %26 : vector<9x1xi32>
      %c0_i32_14 = arith.constant 0 : i32
      %29 = vector.broadcast %c0_i32_14 : i32 to vector<9x1xi32>
      %30 = arith.addi %29, %28 : vector<9x1xi32>
      %c1_i32_15 = arith.constant 1 : i32
      %31 = vector.broadcast %c1_i32_15 : i32 to vector<9x1xi32>
      %32 = arith.cmpi sge, %30, %31 : vector<9x1xi32>
      %c16_i32_16 = arith.constant 16 : i32
      %33 = vector.broadcast %c16_i32_16 : i32 to vector<9x1xi32>
      %34 = arith.cmpi sle, %30, %33 : vector<9x1xi32>
      %35 = arith.andi %32, %34 : vector<9x1xi1>
      %36 = vector.broadcast %17 : i1 to vector<9x1xi1>
      %37 = arith.andi %35, %36 : vector<9x1xi1>
      %cst_17 = arith.constant 0.000000e+00 : f32
      %38 = vector.shape_cast %37 : vector<9x1xi1> to vector<9x1xi1>
      %39 = vector.broadcast %38 : vector<9x1xi1> to vector<9x128xi1>
      %40 = vector.broadcast %cst_17 : f32 to vector<9x128xf32>
      %41 = arith.select %39, %25, %40 : vector<9x128xi1>, vector<9x128xf32>
      %42 = arith.truncf %41 : vector<9x128xf32> to vector<9x128xbf16>
      %43 = vector.extract_strided_slice %42 {offsets = [0, 0], sizes = [8, 128], strides = [1, 1]} : vector<9x128xbf16> to vector<8x128xbf16>
      %c0_18 = arith.constant 0 : index
      %c0_19 = arith.constant 0 : index
      %c0_20 = arith.constant 0 : index
      %c0_21 = arith.constant 0 : index
      %44 = vector.load %arg7[%c0_18, %c0_19, %c0_20, %c0_21] : memref<3x3x128x128xbf16, #tpu.memory_space<vmem>>, vector<1x1x128x128xbf16>
      %45 = vector.shape_cast %44 : vector<1x1x128x128xbf16> to vector<128x128xbf16>
      %cst_22 = arith.constant dense<0.000000e+00> : vector<8x128xf32>
      %46 = tpu.matmul %43, %45, %cst_22 {dimension_numbers = #tpu.dot_dimension_numbers<[1], [0], [0], [1], [0, 0, 1, 1], [], []>} : vector<8x128xbf16>, vector<128x128xbf16>, vector<8x128xf32> -> vector<8x128xf32>
      %47 = arith.addf %12, %46 : vector<8x128xf32>
      %48 = vector.extract_strided_slice %42 {offsets = [1, 0], sizes = [8, 128], strides = [1, 1]} : vector<9x128xbf16> to vector<8x128xbf16>
      %c0_23 = arith.constant 0 : index
      %c2 = arith.constant 2 : index
      %c0_24 = arith.constant 0 : index
      %c0_25 = arith.constant 0 : index
      %49 = vector.load %arg7[%c0_23, %c2, %c0_24, %c0_25] : memref<3x3x128x128xbf16, #tpu.memory_space<vmem>>, vector<1x1x128x128xbf16>
      %50 = vector.shape_cast %49 : vector<1x1x128x128xbf16> to vector<128x128xbf16>
      %cst_26 = arith.constant dense<0.000000e+00> : vector<8x128xf32>
      %51 = tpu.matmul %48, %50, %cst_26 {dimension_numbers = #tpu.dot_dimension_numbers<[1], [0], [0], [1], [0, 0, 1, 1], [], []>} : vector<8x128xbf16>, vector<128x128xbf16>, vector<8x128xf32> -> vector<8x128xf32>
      %52 = arith.addf %47, %51 : vector<8x128xf32>
      %c1 = arith.constant 1 : index
      %c0_27 = arith.constant 0 : index
      %c0_28 = arith.constant 0 : index
      %c0_29 = arith.constant 0 : index
      %53 = vector.load %arg4[%c1, %c0_27, %c0_28, %c0_29] : memref<2x1x9x128xf32, #tpu.memory_space<vmem>>, vector<1x1x9x128xf32>
      %54 = vector.shape_cast %53 : vector<1x1x9x128xf32> to vector<9x128xf32>
      %55 = vector.broadcast %10 : vector<1x128xf32> to vector<9x128xf32>
      %56 = arith.mulf %54, %55 : vector<9x128xf32>
      %57 = vector.broadcast %11 : vector<1x128xf32> to vector<9x128xf32>
      %58 = arith.addf %56, %57 : vector<9x128xf32>
      %cst_30 = arith.constant 0.000000e+00 : f32
      %59 = vector.broadcast %cst_30 : f32 to vector<9x128xf32>
      %60 = arith.maximumf %58, %59 : vector<9x128xf32>
      %61 = tpu.iota {dimensions = array<i32: 0>} : vector<9x1xi32>
      %c2_i32_31 = arith.constant 2 : i32
      %62 = vector.broadcast %c2_i32_31 : i32 to vector<9x1xi32>
      %63 = arith.muli %62, %61 : vector<9x1xi32>
      %c1_i32_32 = arith.constant 1 : i32
      %64 = vector.broadcast %c1_i32_32 : i32 to vector<9x1xi32>
      %65 = arith.addi %64, %63 : vector<9x1xi32>
      %c1_i32_33 = arith.constant 1 : i32
      %66 = vector.broadcast %c1_i32_33 : i32 to vector<9x1xi32>
      %67 = arith.cmpi sge, %65, %66 : vector<9x1xi32>
      %c16_i32_34 = arith.constant 16 : i32
      %68 = vector.broadcast %c16_i32_34 : i32 to vector<9x1xi32>
      %69 = arith.cmpi sle, %65, %68 : vector<9x1xi32>
      %70 = arith.andi %67, %69 : vector<9x1xi1>
      %71 = vector.broadcast %17 : i1 to vector<9x1xi1>
      %72 = arith.andi %70, %71 : vector<9x1xi1>
      %cst_35 = arith.constant 0.000000e+00 : f32
      %73 = vector.shape_cast %72 : vector<9x1xi1> to vector<9x1xi1>
      %74 = vector.broadcast %73 : vector<9x1xi1> to vector<9x128xi1>
      %75 = vector.broadcast %cst_35 : f32 to vector<9x128xf32>
      %76 = arith.select %74, %60, %75 : vector<9x128xi1>, vector<9x128xf32>
      %77 = arith.truncf %76 : vector<9x128xf32> to vector<9x128xbf16>
      %78 = vector.extract_strided_slice %77 {offsets = [0, 0], sizes = [8, 128], strides = [1, 1]} : vector<9x128xbf16> to vector<8x128xbf16>
      %c0_36 = arith.constant 0 : index
      %c1_37 = arith.constant 1 : index
      %c0_38 = arith.constant 0 : index
      %c0_39 = arith.constant 0 : index
      %79 = vector.load %arg7[%c0_36, %c1_37, %c0_38, %c0_39] : memref<3x3x128x128xbf16, #tpu.memory_space<vmem>>, vector<1x1x128x128xbf16>
      %80 = vector.shape_cast %79 : vector<1x1x128x128xbf16> to vector<128x128xbf16>
      %cst_40 = arith.constant dense<0.000000e+00> : vector<8x128xf32>
      %81 = tpu.matmul %78, %80, %cst_40 {dimension_numbers = #tpu.dot_dimension_numbers<[1], [0], [0], [1], [0, 0, 1, 1], [], []>} : vector<8x128xbf16>, vector<128x128xbf16>, vector<8x128xf32> -> vector<8x128xf32>
      %82 = arith.addf %52, %81 : vector<8x128xf32>
      %c2_i32_41 = arith.constant 2 : i32
      %83 = arith.muli %c2_i32_41, %0 : i32
      %c1_i32_42 = arith.constant 1 : i32
      %84 = arith.addi %83, %c1_i32_42 : i32
      %c1_i32_43 = arith.constant 1 : i32
      %85 = arith.cmpi sge, %84, %c1_i32_43 : i32
      %c16_i32_44 = arith.constant 16 : i32
      %86 = arith.cmpi sle, %84, %c16_i32_44 : i32
      %87 = arith.andi %85, %86 : i1
      %c0_45 = arith.constant 0 : index
      %c0_46 = arith.constant 0 : index
      %c0_47 = arith.constant 0 : index
      %c0_48 = arith.constant 0 : index
      %88 = vector.load %arg5[%c0_45, %c0_46, %c0_47, %c0_48] : memref<2x1x9x128xf32, #tpu.memory_space<vmem>>, vector<1x1x9x128xf32>
      %89 = vector.shape_cast %88 : vector<1x1x9x128xf32> to vector<9x128xf32>
      %90 = vector.broadcast %10 : vector<1x128xf32> to vector<9x128xf32>
      %91 = arith.mulf %89, %90 : vector<9x128xf32>
      %92 = vector.broadcast %11 : vector<1x128xf32> to vector<9x128xf32>
      %93 = arith.addf %91, %92 : vector<9x128xf32>
      %cst_49 = arith.constant 0.000000e+00 : f32
      %94 = vector.broadcast %cst_49 : f32 to vector<9x128xf32>
      %95 = arith.maximumf %93, %94 : vector<9x128xf32>
      %96 = tpu.iota {dimensions = array<i32: 0>} : vector<9x1xi32>
      %c2_i32_50 = arith.constant 2 : i32
      %97 = vector.broadcast %c2_i32_50 : i32 to vector<9x1xi32>
      %98 = arith.muli %97, %96 : vector<9x1xi32>
      %c0_i32_51 = arith.constant 0 : i32
      %99 = vector.broadcast %c0_i32_51 : i32 to vector<9x1xi32>
      %100 = arith.addi %99, %98 : vector<9x1xi32>
      %c1_i32_52 = arith.constant 1 : i32
      %101 = vector.broadcast %c1_i32_52 : i32 to vector<9x1xi32>
      %102 = arith.cmpi sge, %100, %101 : vector<9x1xi32>
      %c16_i32_53 = arith.constant 16 : i32
      %103 = vector.broadcast %c16_i32_53 : i32 to vector<9x1xi32>
      %104 = arith.cmpi sle, %100, %103 : vector<9x1xi32>
      %105 = arith.andi %102, %104 : vector<9x1xi1>
      %106 = vector.broadcast %87 : i1 to vector<9x1xi1>
      %107 = arith.andi %105, %106 : vector<9x1xi1>
      %cst_54 = arith.constant 0.000000e+00 : f32
      %108 = vector.shape_cast %107 : vector<9x1xi1> to vector<9x1xi1>
      %109 = vector.broadcast %108 : vector<9x1xi1> to vector<9x128xi1>
      %110 = vector.broadcast %cst_54 : f32 to vector<9x128xf32>
      %111 = arith.select %109, %95, %110 : vector<9x128xi1>, vector<9x128xf32>
      %112 = arith.truncf %111 : vector<9x128xf32> to vector<9x128xbf16>
      %113 = vector.extract_strided_slice %112 {offsets = [0, 0], sizes = [8, 128], strides = [1, 1]} : vector<9x128xbf16> to vector<8x128xbf16>
      %c1_55 = arith.constant 1 : index
      %c0_56 = arith.constant 0 : index
      %c0_57 = arith.constant 0 : index
      %c0_58 = arith.constant 0 : index
      %114 = vector.load %arg7[%c1_55, %c0_56, %c0_57, %c0_58] : memref<3x3x128x128xbf16, #tpu.memory_space<vmem>>, vector<1x1x128x128xbf16>
      %115 = vector.shape_cast %114 : vector<1x1x128x128xbf16> to vector<128x128xbf16>
      %cst_59 = arith.constant dense<0.000000e+00> : vector<8x128xf32>
      %116 = tpu.matmul %113, %115, %cst_59 {dimension_numbers = #tpu.dot_dimension_numbers<[1], [0], [0], [1], [0, 0, 1, 1], [], []>} : vector<8x128xbf16>, vector<128x128xbf16>, vector<8x128xf32> -> vector<8x128xf32>
      %117 = arith.addf %82, %116 : vector<8x128xf32>
      %118 = vector.extract_strided_slice %112 {offsets = [1, 0], sizes = [8, 128], strides = [1, 1]} : vector<9x128xbf16> to vector<8x128xbf16>
      %c1_60 = arith.constant 1 : index
      %c2_61 = arith.constant 2 : index
      %c0_62 = arith.constant 0 : index
      %c0_63 = arith.constant 0 : index
      %119 = vector.load %arg7[%c1_60, %c2_61, %c0_62, %c0_63] : memref<3x3x128x128xbf16, #tpu.memory_space<vmem>>, vector<1x1x128x128xbf16>
      %120 = vector.shape_cast %119 : vector<1x1x128x128xbf16> to vector<128x128xbf16>
      %cst_64 = arith.constant dense<0.000000e+00> : vector<8x128xf32>
      %121 = tpu.matmul %118, %120, %cst_64 {dimension_numbers = #tpu.dot_dimension_numbers<[1], [0], [0], [1], [0, 0, 1, 1], [], []>} : vector<8x128xbf16>, vector<128x128xbf16>, vector<8x128xf32> -> vector<8x128xf32>
      %122 = arith.addf %117, %121 : vector<8x128xf32>
      %c1_65 = arith.constant 1 : index
      %c0_66 = arith.constant 0 : index
      %c0_67 = arith.constant 0 : index
      %c0_68 = arith.constant 0 : index
      %123 = vector.load %arg5[%c1_65, %c0_66, %c0_67, %c0_68] : memref<2x1x9x128xf32, #tpu.memory_space<vmem>>, vector<1x1x9x128xf32>
      %124 = vector.shape_cast %123 : vector<1x1x9x128xf32> to vector<9x128xf32>
      %125 = vector.broadcast %10 : vector<1x128xf32> to vector<9x128xf32>
      %126 = arith.mulf %124, %125 : vector<9x128xf32>
      %127 = vector.broadcast %11 : vector<1x128xf32> to vector<9x128xf32>
      %128 = arith.addf %126, %127 : vector<9x128xf32>
      %cst_69 = arith.constant 0.000000e+00 : f32
      %129 = vector.broadcast %cst_69 : f32 to vector<9x128xf32>
      %130 = arith.maximumf %128, %129 : vector<9x128xf32>
      %131 = tpu.iota {dimensions = array<i32: 0>} : vector<9x1xi32>
      %c2_i32_70 = arith.constant 2 : i32
      %132 = vector.broadcast %c2_i32_70 : i32 to vector<9x1xi32>
      %133 = arith.muli %132, %131 : vector<9x1xi32>
      %c1_i32_71 = arith.constant 1 : i32
      %134 = vector.broadcast %c1_i32_71 : i32 to vector<9x1xi32>
      %135 = arith.addi %134, %133 : vector<9x1xi32>
      %c1_i32_72 = arith.constant 1 : i32
      %136 = vector.broadcast %c1_i32_72 : i32 to vector<9x1xi32>
      %137 = arith.cmpi sge, %135, %136 : vector<9x1xi32>
      %c16_i32_73 = arith.constant 16 : i32
      %138 = vector.broadcast %c16_i32_73 : i32 to vector<9x1xi32>
      %139 = arith.cmpi sle, %135, %138 : vector<9x1xi32>
      %140 = arith.andi %137, %139 : vector<9x1xi1>
      %141 = vector.broadcast %87 : i1 to vector<9x1xi1>
      %142 = arith.andi %140, %141 : vector<9x1xi1>
      %cst_74 = arith.constant 0.000000e+00 : f32
      %143 = vector.shape_cast %142 : vector<9x1xi1> to vector<9x1xi1>
      %144 = vector.broadcast %143 : vector<9x1xi1> to vector<9x128xi1>
      %145 = vector.broadcast %cst_74 : f32 to vector<9x128xf32>
      %146 = arith.select %144, %130, %145 : vector<9x128xi1>, vector<9x128xf32>
      %147 = arith.truncf %146 : vector<9x128xf32> to vector<9x128xbf16>
      %148 = vector.extract_strided_slice %147 {offsets = [0, 0], sizes = [8, 128], strides = [1, 1]} : vector<9x128xbf16> to vector<8x128xbf16>
      %c1_75 = arith.constant 1 : index
      %c1_76 = arith.constant 1 : index
      %c0_77 = arith.constant 0 : index
      %c0_78 = arith.constant 0 : index
      %149 = vector.load %arg7[%c1_75, %c1_76, %c0_77, %c0_78] : memref<3x3x128x128xbf16, #tpu.memory_space<vmem>>, vector<1x1x128x128xbf16>
      %150 = vector.shape_cast %149 : vector<1x1x128x128xbf16> to vector<128x128xbf16>
      %cst_79 = arith.constant dense<0.000000e+00> : vector<8x128xf32>
      %151 = tpu.matmul %148, %150, %cst_79 {dimension_numbers = #tpu.dot_dimension_numbers<[1], [0], [0], [1], [0, 0, 1, 1], [], []>} : vector<8x128xbf16>, vector<128x128xbf16>, vector<8x128xf32> -> vector<8x128xf32>
      %152 = arith.addf %122, %151 : vector<8x128xf32>
      %c2_i32_80 = arith.constant 2 : i32
      %153 = arith.muli %c2_i32_80, %0 : i32
      %c2_i32_81 = arith.constant 2 : i32
      %154 = arith.addi %153, %c2_i32_81 : i32
      %c1_i32_82 = arith.constant 1 : i32
      %155 = arith.cmpi sge, %154, %c1_i32_82 : i32
      %c16_i32_83 = arith.constant 16 : i32
      %156 = arith.cmpi sle, %154, %c16_i32_83 : i32
      %157 = arith.andi %155, %156 : i1
      %c0_84 = arith.constant 0 : index
      %c0_85 = arith.constant 0 : index
      %c0_86 = arith.constant 0 : index
      %c0_87 = arith.constant 0 : index
      %158 = vector.load %arg6[%c0_84, %c0_85, %c0_86, %c0_87] : memref<2x1x9x128xf32, #tpu.memory_space<vmem>>, vector<1x1x9x128xf32>
      %159 = vector.shape_cast %158 : vector<1x1x9x128xf32> to vector<9x128xf32>
      %160 = vector.broadcast %10 : vector<1x128xf32> to vector<9x128xf32>
      %161 = arith.mulf %159, %160 : vector<9x128xf32>
      %162 = vector.broadcast %11 : vector<1x128xf32> to vector<9x128xf32>
      %163 = arith.addf %161, %162 : vector<9x128xf32>
      %cst_88 = arith.constant 0.000000e+00 : f32
      %164 = vector.broadcast %cst_88 : f32 to vector<9x128xf32>
      %165 = arith.maximumf %163, %164 : vector<9x128xf32>
      %166 = tpu.iota {dimensions = array<i32: 0>} : vector<9x1xi32>
      %c2_i32_89 = arith.constant 2 : i32
      %167 = vector.broadcast %c2_i32_89 : i32 to vector<9x1xi32>
      %168 = arith.muli %167, %166 : vector<9x1xi32>
      %c0_i32_90 = arith.constant 0 : i32
      %169 = vector.broadcast %c0_i32_90 : i32 to vector<9x1xi32>
      %170 = arith.addi %169, %168 : vector<9x1xi32>
      %c1_i32_91 = arith.constant 1 : i32
      %171 = vector.broadcast %c1_i32_91 : i32 to vector<9x1xi32>
      %172 = arith.cmpi sge, %170, %171 : vector<9x1xi32>
      %c16_i32_92 = arith.constant 16 : i32
      %173 = vector.broadcast %c16_i32_92 : i32 to vector<9x1xi32>
      %174 = arith.cmpi sle, %170, %173 : vector<9x1xi32>
      %175 = arith.andi %172, %174 : vector<9x1xi1>
      %176 = vector.broadcast %157 : i1 to vector<9x1xi1>
      %177 = arith.andi %175, %176 : vector<9x1xi1>
      %cst_93 = arith.constant 0.000000e+00 : f32
      %178 = vector.shape_cast %177 : vector<9x1xi1> to vector<9x1xi1>
      %179 = vector.broadcast %178 : vector<9x1xi1> to vector<9x128xi1>
      %180 = vector.broadcast %cst_93 : f32 to vector<9x128xf32>
      %181 = arith.select %179, %165, %180 : vector<9x128xi1>, vector<9x128xf32>
      %182 = arith.truncf %181 : vector<9x128xf32> to vector<9x128xbf16>
      %183 = vector.extract_strided_slice %182 {offsets = [0, 0], sizes = [8, 128], strides = [1, 1]} : vector<9x128xbf16> to vector<8x128xbf16>
      %c2_94 = arith.constant 2 : index
      %c0_95 = arith.constant 0 : index
      %c0_96 = arith.constant 0 : index
      %c0_97 = arith.constant 0 : index
      %184 = vector.load %arg7[%c2_94, %c0_95, %c0_96, %c0_97] : memref<3x3x128x128xbf16, #tpu.memory_space<vmem>>, vector<1x1x128x128xbf16>
      %185 = vector.shape_cast %184 : vector<1x1x128x128xbf16> to vector<128x128xbf16>
      %cst_98 = arith.constant dense<0.000000e+00> : vector<8x128xf32>
      %186 = tpu.matmul %183, %185, %cst_98 {dimension_numbers = #tpu.dot_dimension_numbers<[1], [0], [0], [1], [0, 0, 1, 1], [], []>} : vector<8x128xbf16>, vector<128x128xbf16>, vector<8x128xf32> -> vector<8x128xf32>
      %187 = arith.addf %152, %186 : vector<8x128xf32>
      %188 = vector.extract_strided_slice %182 {offsets = [1, 0], sizes = [8, 128], strides = [1, 1]} : vector<9x128xbf16> to vector<8x128xbf16>
      %c2_99 = arith.constant 2 : index
      %c2_100 = arith.constant 2 : index
      %c0_101 = arith.constant 0 : index
      %c0_102 = arith.constant 0 : index
      %189 = vector.load %arg7[%c2_99, %c2_100, %c0_101, %c0_102] : memref<3x3x128x128xbf16, #tpu.memory_space<vmem>>, vector<1x1x128x128xbf16>
      %190 = vector.shape_cast %189 : vector<1x1x128x128xbf16> to vector<128x128xbf16>
      %cst_103 = arith.constant dense<0.000000e+00> : vector<8x128xf32>
      %191 = tpu.matmul %188, %190, %cst_103 {dimension_numbers = #tpu.dot_dimension_numbers<[1], [0], [0], [1], [0, 0, 1, 1], [], []>} : vector<8x128xbf16>, vector<128x128xbf16>, vector<8x128xf32> -> vector<8x128xf32>
      %192 = arith.addf %187, %191 : vector<8x128xf32>
      %c1_104 = arith.constant 1 : index
      %c0_105 = arith.constant 0 : index
      %c0_106 = arith.constant 0 : index
      %c0_107 = arith.constant 0 : index
      %193 = vector.load %arg6[%c1_104, %c0_105, %c0_106, %c0_107] : memref<2x1x9x128xf32, #tpu.memory_space<vmem>>, vector<1x1x9x128xf32>
      %194 = vector.shape_cast %193 : vector<1x1x9x128xf32> to vector<9x128xf32>
      %195 = vector.broadcast %10 : vector<1x128xf32> to vector<9x128xf32>
      %196 = arith.mulf %194, %195 : vector<9x128xf32>
      %197 = vector.broadcast %11 : vector<1x128xf32> to vector<9x128xf32>
      %198 = arith.addf %196, %197 : vector<9x128xf32>
      %cst_108 = arith.constant 0.000000e+00 : f32
      %199 = vector.broadcast %cst_108 : f32 to vector<9x128xf32>
      %200 = arith.maximumf %198, %199 : vector<9x128xf32>
      %201 = tpu.iota {dimensions = array<i32: 0>} : vector<9x1xi32>
      %c2_i32_109 = arith.constant 2 : i32
      %202 = vector.broadcast %c2_i32_109 : i32 to vector<9x1xi32>
      %203 = arith.muli %202, %201 : vector<9x1xi32>
      %c1_i32_110 = arith.constant 1 : i32
      %204 = vector.broadcast %c1_i32_110 : i32 to vector<9x1xi32>
      %205 = arith.addi %204, %203 : vector<9x1xi32>
      %c1_i32_111 = arith.constant 1 : i32
      %206 = vector.broadcast %c1_i32_111 : i32 to vector<9x1xi32>
      %207 = arith.cmpi sge, %205, %206 : vector<9x1xi32>
      %c16_i32_112 = arith.constant 16 : i32
      %208 = vector.broadcast %c16_i32_112 : i32 to vector<9x1xi32>
      %209 = arith.cmpi sle, %205, %208 : vector<9x1xi32>
      %210 = arith.andi %207, %209 : vector<9x1xi1>
      %211 = vector.broadcast %157 : i1 to vector<9x1xi1>
      %212 = arith.andi %210, %211 : vector<9x1xi1>
      %cst_113 = arith.constant 0.000000e+00 : f32
      %213 = vector.shape_cast %212 : vector<9x1xi1> to vector<9x1xi1>
      %214 = vector.broadcast %213 : vector<9x1xi1> to vector<9x128xi1>
      %215 = vector.broadcast %cst_113 : f32 to vector<9x128xf32>
      %216 = arith.select %214, %200, %215 : vector<9x128xi1>, vector<9x128xf32>
      %217 = arith.truncf %216 : vector<9x128xf32> to vector<9x128xbf16>
      %218 = vector.extract_strided_slice %217 {offsets = [0, 0], sizes = [8, 128], strides = [1, 1]} : vector<9x128xbf16> to vector<8x128xbf16>
      %c2_114 = arith.constant 2 : index
      %c1_115 = arith.constant 1 : index
      %c0_116 = arith.constant 0 : index
      %c0_117 = arith.constant 0 : index
      %219 = vector.load %arg7[%c2_114, %c1_115, %c0_116, %c0_117] : memref<3x3x128x128xbf16, #tpu.memory_space<vmem>>, vector<1x1x128x128xbf16>
      %220 = vector.shape_cast %219 : vector<1x1x128x128xbf16> to vector<128x128xbf16>
      %cst_118 = arith.constant dense<0.000000e+00> : vector<8x128xf32>
      %221 = tpu.matmul %218, %220, %cst_118 {dimension_numbers = #tpu.dot_dimension_numbers<[1], [0], [0], [1], [0, 0, 1, 1], [], []>} : vector<8x128xbf16>, vector<128x128xbf16>, vector<8x128xf32> -> vector<8x128xf32>
      %222 = arith.addf %192, %221 : vector<8x128xf32>
      %223 = tpu.concatenate %4, %222, %4 in 0 : vector<1x128xf32>, vector<8x128xf32>, vector<1x128xf32> -> vector<10x128xf32>
      %c0_119 = arith.constant 0 : index
      %c0_120 = arith.constant 0 : index
      %c0_121 = arith.constant 0 : index
      %c0_122 = arith.constant 0 : index
      %224 = vector.load %arg8[%c0_119, %c0_120, %c0_121, %c0_122] : memref<1x1x10x128xf32, #tpu.memory_space<vmem>>, vector<1x1x10x128xf32>
      %225 = vector.shape_cast %224 : vector<1x1x10x128xf32> to vector<10x128xf32>
      %226 = vector.shape_cast %223 : vector<10x128xf32> to vector<1x1x10x128xf32>
      tpu.vector_store %arg8[%c0_119, %c0_120, %c0_121, %c0_122], %226 {strides = array<i32>} : memref<1x1x10x128xf32, #tpu.memory_space<vmem>>, vector<1x1x10x128xf32>,
    } else {
    }
    %true = arith.constant true
    %7 = arith.xori %3, %true : i1
    %8 = arith.extui %7 : i1 to i32
    %c0_i32_1 = arith.constant 0 : i32
    %9 = arith.cmpi ne, %8, %c0_i32_1 : i32
    scf.if %9 {
      %cst_2 = arith.constant 0.000000e+00 : f32
      %10 = vector.broadcast %cst_2 : f32 to vector<1x1x10x128xf32>
      %c0 = arith.constant 0 : index
      %c0_3 = arith.constant 0 : index
      %c0_4 = arith.constant 0 : index
      %c0_5 = arith.constant 0 : index
      %11 = vector.load %arg8[%c0, %c0_3, %c0_4, %c0_5] : memref<1x1x10x128xf32, #tpu.memory_space<vmem>>, vector<1x1x10x128xf32>
      tpu.vector_store %arg8[%c0, %c0_3, %c0_4, %c0_5], %10 {strides = array<i32>} : memref<1x1x10x128xf32, #tpu.memory_space<vmem>>, vector<1x1x10x128xf32>,
    } else {
    }
    return
  }
  func.func @transform_0(%arg0: i32, %arg1: i32) -> (i32, i32) {
    %c0_i32 = arith.constant 0 : i32
    %c0_i32_0 = arith.constant 0 : i32
    %c0_i32_1 = arith.constant 0 : i32
    return %c0_i32, %c0_i32_0 : i32, i32
  }
  func.func @transform_1(%arg0: i32, %arg1: i32) -> (i32, i32) {
    %c0_i32 = arith.constant 0 : i32
    %c0_i32_0 = arith.constant 0 : i32
    %c0_i32_1 = arith.constant 0 : i32
    return %c0_i32, %c0_i32_0 : i32, i32
  }
  func.func @transform_2(%arg0: i32, %arg1: i32) -> (i32, i32, i32, i32) {
    %c1_i32 = arith.constant 1 : i32
    %0 = arith.subi %arg1, %c1_i32 : i32
    %c2_i32 = arith.constant 2 : i32
    %1 = arith.muli %c2_i32, %0 : i32
    %c0_i32 = arith.constant 0 : i32
    %2 = arith.addi %1, %c0_i32 : i32
    %c17_i32 = arith.constant 17 : i32
    %3 = arith.minsi %2, %c17_i32 : i32
    %c0_i32_0 = arith.constant 0 : i32
    %4 = arith.maxsi %c0_i32_0, %3 : i32
    %c0_i32_1 = arith.constant 0 : i32
    %c0_i32_2 = arith.constant 0 : i32
    %c0_i32_3 = arith.constant 0 : i32
    return %arg0, %4, %c0_i32_1, %c0_i32_2 : i32, i32, i32, i32
  }
  func.func @transform_3(%arg0: i32, %arg1: i32) -> (i32, i32, i32, i32) {
    %c1_i32 = arith.constant 1 : i32
    %0 = arith.subi %arg1, %c1_i32 : i32
    %c2_i32 = arith.constant 2 : i32
    %1 = arith.muli %c2_i32, %0 : i32
    %c1_i32_0 = arith.constant 1 : i32
    %2 = arith.addi %1, %c1_i32_0 : i32
    %c17_i32 = arith.constant 17 : i32
    %3 = arith.minsi %2, %c17_i32 : i32
    %c0_i32 = arith.constant 0 : i32
    %4 = arith.maxsi %c0_i32, %3 : i32
    %c0_i32_1 = arith.constant 0 : i32
    %c0_i32_2 = arith.constant 0 : i32
    %c0_i32_3 = arith.constant 0 : i32
    return %arg0, %4, %c0_i32_1, %c0_i32_2 : i32, i32, i32, i32
  }
  func.func @transform_4(%arg0: i32, %arg1: i32) -> (i32, i32, i32, i32) {
    %c1_i32 = arith.constant 1 : i32
    %0 = arith.subi %arg1, %c1_i32 : i32
    %c2_i32 = arith.constant 2 : i32
    %1 = arith.muli %c2_i32, %0 : i32
    %c2_i32_0 = arith.constant 2 : i32
    %2 = arith.addi %1, %c2_i32_0 : i32
    %c17_i32 = arith.constant 17 : i32
    %3 = arith.minsi %2, %c17_i32 : i32
    %c0_i32 = arith.constant 0 : i32
    %4 = arith.maxsi %c0_i32, %3 : i32
    %c0_i32_1 = arith.constant 0 : i32
    %c0_i32_2 = arith.constant 0 : i32
    %c0_i32_3 = arith.constant 0 : i32
    return %arg0, %4, %c0_i32_1, %c0_i32_2 : i32, i32, i32, i32
  }
  func.func @transform_5(%arg0: i32, %arg1: i32) -> (i32, i32, i32, i32) {
    %c0_i32 = arith.constant 0 : i32
    %c0_i32_0 = arith.constant 0 : i32
    %c0_i32_1 = arith.constant 0 : i32
    %c0_i32_2 = arith.constant 0 : i32
    %c0_i32_3 = arith.constant 0 : i32
    return %c0_i32, %c0_i32_0, %c0_i32_1, %c0_i32_2 : i32, i32, i32, i32
  }
  func.func @transform_6(%arg0: i32, %arg1: i32) -> (i32, i32, i32, i32) {
    %c0_i32 = arith.constant 0 : i32
    %c0_i32_0 = arith.constant 0 : i32
    %c0_i32_1 = arith.constant 0 : i32
    return %arg0, %arg1, %c0_i32, %c0_i32_0 : i32, i32, i32, i32
  }
}

module attributes {stable_mosaic.version = 11 : i64} {
  func.func @kernel(%arg0: i32, %arg1: i32, %arg2: memref<1x128xf32, #tpu.memory_space<vmem>>, %arg3: memref<1x128xf32, #tpu.memory_space<vmem>>, %arg4: memref<1x1x10x128xf32, #tpu.memory_space<vmem>>, %arg5: memref<1x1x10x128xf32, #tpu.memory_space<vmem>>, %arg6: memref<1x1x10x128xf32, #tpu.memory_space<vmem>>, %arg7: memref<3x3x128x128xbf16, #tpu.memory_space<vmem>>, %arg8: memref<2x1x9x128xf32, #tpu.memory_space<vmem>>, %arg9: memref<128x128xbf16, #tpu.memory_space<vmem>>, %arg10: memref<1x1x8x128xf32, #tpu.memory_space<vmem>>) attributes {dimension_semantics = [#tpu.dimension_semantics<parallel>, #tpu.dimension_semantics<parallel>], iteration_bounds = array<i64: 2, 8>, scalar_prefetch = 0 : i64, scratch_operands = 0 : i64, tpu.core_type = #tpu.core_type<tc>, window_params = [{pipeline_mode = #tpu.pipeline_mode<synchronous>, transform_indices = @transform_0, window_bounds = array<i64: 1, 128>}, {pipeline_mode = #tpu.pipeline_mode<synchronous>, transform_indices = @transform_1, window_bounds = array<i64: 1, 128>}, {transform_indices = @transform_2, window_bounds = array<i64: 1, 1, 10, 128>}, {transform_indices = @transform_3, window_bounds = array<i64: 1, 1, 10, 128>}, {transform_indices = @transform_4, window_bounds = array<i64: 1, 1, 10, 128>}, {pipeline_mode = #tpu.pipeline_mode<synchronous>, transform_indices = @transform_5, window_bounds = array<i64: 3, 3, 128, 128>}, {transform_indices = @transform_6, window_bounds = array<i64: 2, 1, 9, 128>}, {pipeline_mode = #tpu.pipeline_mode<synchronous>, transform_indices = @transform_7, window_bounds = array<i64: 128, 128>}, {transform_indices = @transform_8, window_bounds = array<i64: 1, 1, 8, 128>}]} {
    %c0 = arith.constant 0 : index
    %c0_0 = arith.constant 0 : index
    %0 = vector.load %arg2[%c0, %c0_0] : memref<1x128xf32, #tpu.memory_space<vmem>>, vector<1x128xf32>
    %c0_1 = arith.constant 0 : index
    %c0_2 = arith.constant 0 : index
    %1 = vector.load %arg3[%c0_1, %c0_2] : memref<1x128xf32, #tpu.memory_space<vmem>>, vector<1x128xf32>
    %cst = arith.constant 0.000000e+00 : f32
    %2 = vector.broadcast %cst : f32 to vector<8x128xf32>
    %c1_i32 = arith.constant 1 : i32
    %3 = arith.muli %c1_i32, %arg1 : i32
    %c0_i32 = arith.constant 0 : i32
    %4 = arith.addi %3, %c0_i32 : i32
    %c1_i32_3 = arith.constant 1 : i32
    %5 = arith.cmpi sge, %4, %c1_i32_3 : i32
    %c8_i32 = arith.constant 8 : i32
    %6 = arith.cmpi sle, %4, %c8_i32 : i32
    %7 = arith.andi %5, %6 : i1
    %c0_4 = arith.constant 0 : index
    %c0_5 = arith.constant 0 : index
    %c0_6 = arith.constant 0 : index
    %c0_7 = arith.constant 0 : index
    %8 = vector.load %arg4[%c0_4, %c0_5, %c0_6, %c0_7] : memref<1x1x10x128xf32, #tpu.memory_space<vmem>>, vector<1x1x10x128xf32>
    %9 = vector.shape_cast %8 : vector<1x1x10x128xf32> to vector<10x128xf32>
    %10 = vector.broadcast %0 : vector<1x128xf32> to vector<10x128xf32>
    %11 = arith.mulf %9, %10 : vector<10x128xf32>
    %12 = vector.broadcast %1 : vector<1x128xf32> to vector<10x128xf32>
    %13 = arith.addf %11, %12 : vector<10x128xf32>
    %cst_8 = arith.constant 0.000000e+00 : f32
    %14 = vector.broadcast %cst_8 : f32 to vector<10x128xf32>
    %15 = arith.maximumf %13, %14 : vector<10x128xf32>
    %16 = tpu.iota {dimensions = array<i32: 0>} : vector<10x1xi32>
    %c1_i32_9 = arith.constant 1 : i32
    %17 = vector.broadcast %c1_i32_9 : i32 to vector<10x1xi32>
    %18 = arith.muli %17, %16 : vector<10x1xi32>
    %c0_i32_10 = arith.constant 0 : i32
    %19 = vector.broadcast %c0_i32_10 : i32 to vector<10x1xi32>
    %20 = arith.addi %19, %18 : vector<10x1xi32>
    %c1_i32_11 = arith.constant 1 : i32
    %21 = vector.broadcast %c1_i32_11 : i32 to vector<10x1xi32>
    %22 = arith.cmpi sge, %20, %21 : vector<10x1xi32>
    %c8_i32_12 = arith.constant 8 : i32
    %23 = vector.broadcast %c8_i32_12 : i32 to vector<10x1xi32>
    %24 = arith.cmpi sle, %20, %23 : vector<10x1xi32>
    %25 = arith.andi %22, %24 : vector<10x1xi1>
    %26 = vector.broadcast %7 : i1 to vector<10x1xi1>
    %27 = arith.andi %25, %26 : vector<10x1xi1>
    %cst_13 = arith.constant 0.000000e+00 : f32
    %28 = vector.shape_cast %27 : vector<10x1xi1> to vector<10x1xi1>
    %29 = vector.broadcast %28 : vector<10x1xi1> to vector<10x128xi1>
    %30 = vector.broadcast %cst_13 : f32 to vector<10x128xf32>
    %31 = arith.select %29, %15, %30 : vector<10x128xi1>, vector<10x128xf32>
    %32 = arith.truncf %31 : vector<10x128xf32> to vector<10x128xbf16>
    %33 = vector.extract_strided_slice %32 {offsets = [0, 0], sizes = [8, 128], strides = [1, 1]} : vector<10x128xbf16> to vector<8x128xbf16>
    %c0_14 = arith.constant 0 : index
    %c0_15 = arith.constant 0 : index
    %c0_16 = arith.constant 0 : index
    %c0_17 = arith.constant 0 : index
    %34 = vector.load %arg7[%c0_14, %c0_15, %c0_16, %c0_17] : memref<3x3x128x128xbf16, #tpu.memory_space<vmem>>, vector<1x1x128x128xbf16>
    %35 = vector.shape_cast %34 : vector<1x1x128x128xbf16> to vector<128x128xbf16>
    %cst_18 = arith.constant dense<0.000000e+00> : vector<8x128xf32>
    %36 = tpu.matmul %33, %35, %cst_18 {dimension_numbers = #tpu.dot_dimension_numbers<[1], [0], [0], [1], [0, 0, 1, 1], [], []>} : vector<8x128xbf16>, vector<128x128xbf16>, vector<8x128xf32> -> vector<8x128xf32>
    %37 = arith.addf %2, %36 : vector<8x128xf32>
    %38 = vector.extract_strided_slice %32 {offsets = [1, 0], sizes = [8, 128], strides = [1, 1]} : vector<10x128xbf16> to vector<8x128xbf16>
    %c0_19 = arith.constant 0 : index
    %c1 = arith.constant 1 : index
    %c0_20 = arith.constant 0 : index
    %c0_21 = arith.constant 0 : index
    %39 = vector.load %arg7[%c0_19, %c1, %c0_20, %c0_21] : memref<3x3x128x128xbf16, #tpu.memory_space<vmem>>, vector<1x1x128x128xbf16>
    %40 = vector.shape_cast %39 : vector<1x1x128x128xbf16> to vector<128x128xbf16>
    %cst_22 = arith.constant dense<0.000000e+00> : vector<8x128xf32>
    %41 = tpu.matmul %38, %40, %cst_22 {dimension_numbers = #tpu.dot_dimension_numbers<[1], [0], [0], [1], [0, 0, 1, 1], [], []>} : vector<8x128xbf16>, vector<128x128xbf16>, vector<8x128xf32> -> vector<8x128xf32>
    %42 = arith.addf %37, %41 : vector<8x128xf32>
    %43 = vector.extract_strided_slice %32 {offsets = [2, 0], sizes = [8, 128], strides = [1, 1]} : vector<10x128xbf16> to vector<8x128xbf16>
    %c0_23 = arith.constant 0 : index
    %c2 = arith.constant 2 : index
    %c0_24 = arith.constant 0 : index
    %c0_25 = arith.constant 0 : index
    %44 = vector.load %arg7[%c0_23, %c2, %c0_24, %c0_25] : memref<3x3x128x128xbf16, #tpu.memory_space<vmem>>, vector<1x1x128x128xbf16>
    %45 = vector.shape_cast %44 : vector<1x1x128x128xbf16> to vector<128x128xbf16>
    %cst_26 = arith.constant dense<0.000000e+00> : vector<8x128xf32>
    %46 = tpu.matmul %43, %45, %cst_26 {dimension_numbers = #tpu.dot_dimension_numbers<[1], [0], [0], [1], [0, 0, 1, 1], [], []>} : vector<8x128xbf16>, vector<128x128xbf16>, vector<8x128xf32> -> vector<8x128xf32>
    %47 = arith.addf %42, %46 : vector<8x128xf32>
    %c1_i32_27 = arith.constant 1 : i32
    %48 = arith.muli %c1_i32_27, %arg1 : i32
    %c1_i32_28 = arith.constant 1 : i32
    %49 = arith.addi %48, %c1_i32_28 : i32
    %c1_i32_29 = arith.constant 1 : i32
    %50 = arith.cmpi sge, %49, %c1_i32_29 : i32
    %c8_i32_30 = arith.constant 8 : i32
    %51 = arith.cmpi sle, %49, %c8_i32_30 : i32
    %52 = arith.andi %50, %51 : i1
    %c0_31 = arith.constant 0 : index
    %c0_32 = arith.constant 0 : index
    %c0_33 = arith.constant 0 : index
    %c0_34 = arith.constant 0 : index
    %53 = vector.load %arg5[%c0_31, %c0_32, %c0_33, %c0_34] : memref<1x1x10x128xf32, #tpu.memory_space<vmem>>, vector<1x1x10x128xf32>
    %54 = vector.shape_cast %53 : vector<1x1x10x128xf32> to vector<10x128xf32>
    %55 = vector.broadcast %0 : vector<1x128xf32> to vector<10x128xf32>
    %56 = arith.mulf %54, %55 : vector<10x128xf32>
    %57 = vector.broadcast %1 : vector<1x128xf32> to vector<10x128xf32>
    %58 = arith.addf %56, %57 : vector<10x128xf32>
    %cst_35 = arith.constant 0.000000e+00 : f32
    %59 = vector.broadcast %cst_35 : f32 to vector<10x128xf32>
    %60 = arith.maximumf %58, %59 : vector<10x128xf32>
    %61 = tpu.iota {dimensions = array<i32: 0>} : vector<10x1xi32>
    %c1_i32_36 = arith.constant 1 : i32
    %62 = vector.broadcast %c1_i32_36 : i32 to vector<10x1xi32>
    %63 = arith.muli %62, %61 : vector<10x1xi32>
    %c0_i32_37 = arith.constant 0 : i32
    %64 = vector.broadcast %c0_i32_37 : i32 to vector<10x1xi32>
    %65 = arith.addi %64, %63 : vector<10x1xi32>
    %c1_i32_38 = arith.constant 1 : i32
    %66 = vector.broadcast %c1_i32_38 : i32 to vector<10x1xi32>
    %67 = arith.cmpi sge, %65, %66 : vector<10x1xi32>
    %c8_i32_39 = arith.constant 8 : i32
    %68 = vector.broadcast %c8_i32_39 : i32 to vector<10x1xi32>
    %69 = arith.cmpi sle, %65, %68 : vector<10x1xi32>
    %70 = arith.andi %67, %69 : vector<10x1xi1>
    %71 = vector.broadcast %52 : i1 to vector<10x1xi1>
    %72 = arith.andi %70, %71 : vector<10x1xi1>
    %cst_40 = arith.constant 0.000000e+00 : f32
    %73 = vector.shape_cast %72 : vector<10x1xi1> to vector<10x1xi1>
    %74 = vector.broadcast %73 : vector<10x1xi1> to vector<10x128xi1>
    %75 = vector.broadcast %cst_40 : f32 to vector<10x128xf32>
    %76 = arith.select %74, %60, %75 : vector<10x128xi1>, vector<10x128xf32>
    %77 = arith.truncf %76 : vector<10x128xf32> to vector<10x128xbf16>
    %78 = vector.extract_strided_slice %77 {offsets = [0, 0], sizes = [8, 128], strides = [1, 1]} : vector<10x128xbf16> to vector<8x128xbf16>
    %c1_41 = arith.constant 1 : index
    %c0_42 = arith.constant 0 : index
    %c0_43 = arith.constant 0 : index
    %c0_44 = arith.constant 0 : index
    %79 = vector.load %arg7[%c1_41, %c0_42, %c0_43, %c0_44] : memref<3x3x128x128xbf16, #tpu.memory_space<vmem>>, vector<1x1x128x128xbf16>
    %80 = vector.shape_cast %79 : vector<1x1x128x128xbf16> to vector<128x128xbf16>
    %cst_45 = arith.constant dense<0.000000e+00> : vector<8x128xf32>
    %81 = tpu.matmul %78, %80, %cst_45 {dimension_numbers = #tpu.dot_dimension_numbers<[1], [0], [0], [1], [0, 0, 1, 1], [], []>} : vector<8x128xbf16>, vector<128x128xbf16>, vector<8x128xf32> -> vector<8x128xf32>
    %82 = arith.addf %47, %81 : vector<8x128xf32>
    %83 = vector.extract_strided_slice %77 {offsets = [1, 0], sizes = [8, 128], strides = [1, 1]} : vector<10x128xbf16> to vector<8x128xbf16>
    %c1_46 = arith.constant 1 : index
    %c1_47 = arith.constant 1 : index
    %c0_48 = arith.constant 0 : index
    %c0_49 = arith.constant 0 : index
    %84 = vector.load %arg7[%c1_46, %c1_47, %c0_48, %c0_49] : memref<3x3x128x128xbf16, #tpu.memory_space<vmem>>, vector<1x1x128x128xbf16>
    %85 = vector.shape_cast %84 : vector<1x1x128x128xbf16> to vector<128x128xbf16>
    %cst_50 = arith.constant dense<0.000000e+00> : vector<8x128xf32>
    %86 = tpu.matmul %83, %85, %cst_50 {dimension_numbers = #tpu.dot_dimension_numbers<[1], [0], [0], [1], [0, 0, 1, 1], [], []>} : vector<8x128xbf16>, vector<128x128xbf16>, vector<8x128xf32> -> vector<8x128xf32>
    %87 = arith.addf %82, %86 : vector<8x128xf32>
    %88 = vector.extract_strided_slice %77 {offsets = [2, 0], sizes = [8, 128], strides = [1, 1]} : vector<10x128xbf16> to vector<8x128xbf16>
    %c1_51 = arith.constant 1 : index
    %c2_52 = arith.constant 2 : index
    %c0_53 = arith.constant 0 : index
    %c0_54 = arith.constant 0 : index
    %89 = vector.load %arg7[%c1_51, %c2_52, %c0_53, %c0_54] : memref<3x3x128x128xbf16, #tpu.memory_space<vmem>>, vector<1x1x128x128xbf16>
    %90 = vector.shape_cast %89 : vector<1x1x128x128xbf16> to vector<128x128xbf16>
    %cst_55 = arith.constant dense<0.000000e+00> : vector<8x128xf32>
    %91 = tpu.matmul %88, %90, %cst_55 {dimension_numbers = #tpu.dot_dimension_numbers<[1], [0], [0], [1], [0, 0, 1, 1], [], []>} : vector<8x128xbf16>, vector<128x128xbf16>, vector<8x128xf32> -> vector<8x128xf32>
    %92 = arith.addf %87, %91 : vector<8x128xf32>
    %c1_i32_56 = arith.constant 1 : i32
    %93 = arith.muli %c1_i32_56, %arg1 : i32
    %c2_i32 = arith.constant 2 : i32
    %94 = arith.addi %93, %c2_i32 : i32
    %c1_i32_57 = arith.constant 1 : i32
    %95 = arith.cmpi sge, %94, %c1_i32_57 : i32
    %c8_i32_58 = arith.constant 8 : i32
    %96 = arith.cmpi sle, %94, %c8_i32_58 : i32
    %97 = arith.andi %95, %96 : i1
    %c0_59 = arith.constant 0 : index
    %c0_60 = arith.constant 0 : index
    %c0_61 = arith.constant 0 : index
    %c0_62 = arith.constant 0 : index
    %98 = vector.load %arg6[%c0_59, %c0_60, %c0_61, %c0_62] : memref<1x1x10x128xf32, #tpu.memory_space<vmem>>, vector<1x1x10x128xf32>
    %99 = vector.shape_cast %98 : vector<1x1x10x128xf32> to vector<10x128xf32>
    %100 = vector.broadcast %0 : vector<1x128xf32> to vector<10x128xf32>
    %101 = arith.mulf %99, %100 : vector<10x128xf32>
    %102 = vector.broadcast %1 : vector<1x128xf32> to vector<10x128xf32>
    %103 = arith.addf %101, %102 : vector<10x128xf32>
    %cst_63 = arith.constant 0.000000e+00 : f32
    %104 = vector.broadcast %cst_63 : f32 to vector<10x128xf32>
    %105 = arith.maximumf %103, %104 : vector<10x128xf32>
    %106 = tpu.iota {dimensions = array<i32: 0>} : vector<10x1xi32>
    %c1_i32_64 = arith.constant 1 : i32
    %107 = vector.broadcast %c1_i32_64 : i32 to vector<10x1xi32>
    %108 = arith.muli %107, %106 : vector<10x1xi32>
    %c0_i32_65 = arith.constant 0 : i32
    %109 = vector.broadcast %c0_i32_65 : i32 to vector<10x1xi32>
    %110 = arith.addi %109, %108 : vector<10x1xi32>
    %c1_i32_66 = arith.constant 1 : i32
    %111 = vector.broadcast %c1_i32_66 : i32 to vector<10x1xi32>
    %112 = arith.cmpi sge, %110, %111 : vector<10x1xi32>
    %c8_i32_67 = arith.constant 8 : i32
    %113 = vector.broadcast %c8_i32_67 : i32 to vector<10x1xi32>
    %114 = arith.cmpi sle, %110, %113 : vector<10x1xi32>
    %115 = arith.andi %112, %114 : vector<10x1xi1>
    %116 = vector.broadcast %97 : i1 to vector<10x1xi1>
    %117 = arith.andi %115, %116 : vector<10x1xi1>
    %cst_68 = arith.constant 0.000000e+00 : f32
    %118 = vector.shape_cast %117 : vector<10x1xi1> to vector<10x1xi1>
    %119 = vector.broadcast %118 : vector<10x1xi1> to vector<10x128xi1>
    %120 = vector.broadcast %cst_68 : f32 to vector<10x128xf32>
    %121 = arith.select %119, %105, %120 : vector<10x128xi1>, vector<10x128xf32>
    %122 = arith.truncf %121 : vector<10x128xf32> to vector<10x128xbf16>
    %123 = vector.extract_strided_slice %122 {offsets = [0, 0], sizes = [8, 128], strides = [1, 1]} : vector<10x128xbf16> to vector<8x128xbf16>
    %c2_69 = arith.constant 2 : index
    %c0_70 = arith.constant 0 : index
    %c0_71 = arith.constant 0 : index
    %c0_72 = arith.constant 0 : index
    %124 = vector.load %arg7[%c2_69, %c0_70, %c0_71, %c0_72] : memref<3x3x128x128xbf16, #tpu.memory_space<vmem>>, vector<1x1x128x128xbf16>
    %125 = vector.shape_cast %124 : vector<1x1x128x128xbf16> to vector<128x128xbf16>
    %cst_73 = arith.constant dense<0.000000e+00> : vector<8x128xf32>
    %126 = tpu.matmul %123, %125, %cst_73 {dimension_numbers = #tpu.dot_dimension_numbers<[1], [0], [0], [1], [0, 0, 1, 1], [], []>} : vector<8x128xbf16>, vector<128x128xbf16>, vector<8x128xf32> -> vector<8x128xf32>
    %127 = arith.addf %92, %126 : vector<8x128xf32>
    %128 = vector.extract_strided_slice %122 {offsets = [1, 0], sizes = [8, 128], strides = [1, 1]} : vector<10x128xbf16> to vector<8x128xbf16>
    %c2_74 = arith.constant 2 : index
    %c1_75 = arith.constant 1 : index
    %c0_76 = arith.constant 0 : index
    %c0_77 = arith.constant 0 : index
    %129 = vector.load %arg7[%c2_74, %c1_75, %c0_76, %c0_77] : memref<3x3x128x128xbf16, #tpu.memory_space<vmem>>, vector<1x1x128x128xbf16>
    %130 = vector.shape_cast %129 : vector<1x1x128x128xbf16> to vector<128x128xbf16>
    %cst_78 = arith.constant dense<0.000000e+00> : vector<8x128xf32>
    %131 = tpu.matmul %128, %130, %cst_78 {dimension_numbers = #tpu.dot_dimension_numbers<[1], [0], [0], [1], [0, 0, 1, 1], [], []>} : vector<8x128xbf16>, vector<128x128xbf16>, vector<8x128xf32> -> vector<8x128xf32>
    %132 = arith.addf %127, %131 : vector<8x128xf32>
    %133 = vector.extract_strided_slice %122 {offsets = [2, 0], sizes = [8, 128], strides = [1, 1]} : vector<10x128xbf16> to vector<8x128xbf16>
    %c2_79 = arith.constant 2 : index
    %c2_80 = arith.constant 2 : index
    %c0_81 = arith.constant 0 : index
    %c0_82 = arith.constant 0 : index
    %134 = vector.load %arg7[%c2_79, %c2_80, %c0_81, %c0_82] : memref<3x3x128x128xbf16, #tpu.memory_space<vmem>>, vector<1x1x128x128xbf16>
    %135 = vector.shape_cast %134 : vector<1x1x128x128xbf16> to vector<128x128xbf16>
    %cst_83 = arith.constant dense<0.000000e+00> : vector<8x128xf32>
    %136 = tpu.matmul %133, %135, %cst_83 {dimension_numbers = #tpu.dot_dimension_numbers<[1], [0], [0], [1], [0, 0, 1, 1], [], []>} : vector<8x128xbf16>, vector<128x128xbf16>, vector<8x128xf32> -> vector<8x128xf32>
    %137 = arith.addf %132, %136 : vector<8x128xf32>
    %c1_84 = arith.constant 1 : index
    %c0_85 = arith.constant 0 : index
    %c0_86 = arith.constant 0 : index
    %c0_87 = arith.constant 0 : index
    %138 = vector.load %arg8[%c1_84, %c0_85, %c0_86, %c0_87] : memref<2x1x9x128xf32, #tpu.memory_space<vmem>>, vector<1x1x9x128xf32>
    %139 = vector.shape_cast %138 : vector<1x1x9x128xf32> to vector<9x128xf32>
    %140 = vector.extract_strided_slice %139 {offsets = [0, 0], sizes = [8, 128], strides = [1, 1]} : vector<9x128xf32> to vector<8x128xf32>
    %141 = arith.truncf %140 : vector<8x128xf32> to vector<8x128xbf16>
    %c0_88 = arith.constant 0 : index
    %c0_89 = arith.constant 0 : index
    %142 = vector.load %arg9[%c0_88, %c0_89] : memref<128x128xbf16, #tpu.memory_space<vmem>>, vector<128x128xbf16>
    %cst_90 = arith.constant dense<0.000000e+00> : vector<8x128xf32>
    %143 = tpu.matmul %141, %142, %cst_90 {dimension_numbers = #tpu.dot_dimension_numbers<[1], [0], [0], [1], [0, 0, 1, 1], [], []>} : vector<8x128xbf16>, vector<128x128xbf16>, vector<8x128xf32> -> vector<8x128xf32>
    %144 = arith.addf %137, %143 : vector<8x128xf32>
    %c0_91 = arith.constant 0 : index
    %c0_92 = arith.constant 0 : index
    %c0_93 = arith.constant 0 : index
    %c0_94 = arith.constant 0 : index
    %145 = vector.load %arg10[%c0_91, %c0_92, %c0_93, %c0_94] : memref<1x1x8x128xf32, #tpu.memory_space<vmem>>, vector<1x1x8x128xf32>
    %146 = vector.shape_cast %145 : vector<1x1x8x128xf32> to vector<8x128xf32>
    %147 = vector.shape_cast %144 : vector<8x128xf32> to vector<1x1x8x128xf32>
    tpu.vector_store %arg10[%c0_91, %c0_92, %c0_93, %c0_94], %147 {strides = array<i32>} : memref<1x1x8x128xf32, #tpu.memory_space<vmem>>, vector<1x1x8x128xf32>,
    return
  }
  func.func @transform_0(%arg0: i32, %arg1: i32) -> (i32, i32) {
    %c0_i32 = arith.constant 0 : i32
    %c0_i32_0 = arith.constant 0 : i32
    %c0_i32_1 = arith.constant 0 : i32
    return %c0_i32, %c0_i32_0 : i32, i32
  }
  func.func @transform_1(%arg0: i32, %arg1: i32) -> (i32, i32) {
    %c0_i32 = arith.constant 0 : i32
    %c0_i32_0 = arith.constant 0 : i32
    %c0_i32_1 = arith.constant 0 : i32
    return %c0_i32, %c0_i32_0 : i32, i32
  }
  func.func @transform_2(%arg0: i32, %arg1: i32) -> (i32, i32, i32, i32) {
    %c1_i32 = arith.constant 1 : i32
    %0 = arith.muli %c1_i32, %arg1 : i32
    %c0_i32 = arith.constant 0 : i32
    %1 = arith.addi %0, %c0_i32 : i32
    %c9_i32 = arith.constant 9 : i32
    %2 = arith.minsi %1, %c9_i32 : i32
    %c0_i32_0 = arith.constant 0 : i32
    %3 = arith.maxsi %c0_i32_0, %2 : i32
    %c0_i32_1 = arith.constant 0 : i32
    %c0_i32_2 = arith.constant 0 : i32
    %c0_i32_3 = arith.constant 0 : i32
    return %arg0, %3, %c0_i32_1, %c0_i32_2 : i32, i32, i32, i32
  }
  func.func @transform_3(%arg0: i32, %arg1: i32) -> (i32, i32, i32, i32) {
    %c1_i32 = arith.constant 1 : i32
    %0 = arith.muli %c1_i32, %arg1 : i32
    %c1_i32_0 = arith.constant 1 : i32
    %1 = arith.addi %0, %c1_i32_0 : i32
    %c9_i32 = arith.constant 9 : i32
    %2 = arith.minsi %1, %c9_i32 : i32
    %c0_i32 = arith.constant 0 : i32
    %3 = arith.maxsi %c0_i32, %2 : i32
    %c0_i32_1 = arith.constant 0 : i32
    %c0_i32_2 = arith.constant 0 : i32
    %c0_i32_3 = arith.constant 0 : i32
    return %arg0, %3, %c0_i32_1, %c0_i32_2 : i32, i32, i32, i32
  }
  func.func @transform_4(%arg0: i32, %arg1: i32) -> (i32, i32, i32, i32) {
    %c1_i32 = arith.constant 1 : i32
    %0 = arith.muli %c1_i32, %arg1 : i32
    %c2_i32 = arith.constant 2 : i32
    %1 = arith.addi %0, %c2_i32 : i32
    %c9_i32 = arith.constant 9 : i32
    %2 = arith.minsi %1, %c9_i32 : i32
    %c0_i32 = arith.constant 0 : i32
    %3 = arith.maxsi %c0_i32, %2 : i32
    %c0_i32_0 = arith.constant 0 : i32
    %c0_i32_1 = arith.constant 0 : i32
    %c0_i32_2 = arith.constant 0 : i32
    return %arg0, %3, %c0_i32_0, %c0_i32_1 : i32, i32, i32, i32
  }
  func.func @transform_5(%arg0: i32, %arg1: i32) -> (i32, i32, i32, i32) {
    %c0_i32 = arith.constant 0 : i32
    %c0_i32_0 = arith.constant 0 : i32
    %c0_i32_1 = arith.constant 0 : i32
    %c0_i32_2 = arith.constant 0 : i32
    %c0_i32_3 = arith.constant 0 : i32
    return %c0_i32, %c0_i32_0, %c0_i32_1, %c0_i32_2 : i32, i32, i32, i32
  }
  func.func @transform_6(%arg0: i32, %arg1: i32) -> (i32, i32, i32, i32) {
    %c2_i32 = arith.constant 2 : i32
    %0 = arith.muli %c2_i32, %arg1 : i32
    %c1_i32 = arith.constant 1 : i32
    %1 = arith.addi %0, %c1_i32 : i32
    %c0_i32 = arith.constant 0 : i32
    %c0_i32_0 = arith.constant 0 : i32
    %c0_i32_1 = arith.constant 0 : i32
    return %arg0, %1, %c0_i32, %c0_i32_0 : i32, i32, i32, i32
  }
  func.func @transform_7(%arg0: i32, %arg1: i32) -> (i32, i32) {
    %c0_i32 = arith.constant 0 : i32
    %c0_i32_0 = arith.constant 0 : i32
    %c0_i32_1 = arith.constant 0 : i32
    return %c0_i32, %c0_i32_0 : i32, i32
  }
  func.func @transform_8(%arg0: i32, %arg1: i32) -> (i32, i32, i32, i32) {
    %c0_i32 = arith.constant 0 : i32
    %c0_i32_0 = arith.constant 0 : i32
    %c0_i32_1 = arith.constant 0 : i32
    return %arg0, %arg1, %c0_i32, %c0_i32_0 : i32, i32, i32, i32
  }
}

</mosaic_0001>

<bundles_post_ra>
// kernel: _lambda_.4
= control target key start
LH: loop header
LB: loop body
LE: loop exit
PB: predicated region body
PF: predicated region fallthrough
CT: control target
= control target key end

     0   :  { %s592_s9 = smov 0   ;;  %s770_s0 = inlined_call_operand.vmem [shape: f32[72,9,128], index: 0, kind: input, shape index: {}]   ;;  %s771_s1 = inlined_call_operand.vmem [shape: f32[1,128], index: 1, kind: output, shape index: {0}]   ;;  %s772_s2 = inlined_call_operand.vmem [shape: f32[1,128], index: 2, kind: output, shape index: {1}]  }
   0x1 LB: > { %s549_s10 = sadd.s32 4294967295, %s574_s9   ;;  %p552_p0 = scmp.ge.s32.totalorder %s574_s9, 1  ;;  %s574_s9 = sphi %s592_s9, %s13_s9  }
   0x2   : > { %p107_p1 = scmp.lt.s32.totalorder %s574_s9, 3 }
   0x4   : > { %p108_p2 = pnand %p552_p0, %p107_p1 }
   0x5   : > { %s125_s11 = smul.u32 (!%p108_p2), 36, %s549_s10  ;;  %p555_p4 = scmp.ne.s32.totalorder (!%p108_p2), %s549_s10, 0 }
   0x6   : > { %111 = sbr.rel (%p108_p2) target bundleno = 180 (0xb4), region = 24 }
   0x7   : > { %p126_p3 = scmp.lt.s32.totalorder (!%p108_p2), %s125_s11, 71 }
   0xb   : > { %s774_s11 = smov (!%p126_p3, %s125_s11), 71  ;;  %135 = sbr.rel (%p555_p4) target bundleno = 19 (0x13), region = 28 }
   0xc   : > { %s558_s12 = sshll.u32 %s774_s11, 4 }
   0xd   : > { %s603_s15 = scalar_lea.vmem %s770_s0, %s558_s12 }
  0x10   : > { %v576_v0 = vmov 0.0  }
  0x11   : > { %136 = vst [vmem:[%s771_s1] sm:$0x1] %v576_v0 }
  0x12   : > { %137 = vst [vmem:[%s772_s2] sm:$0x1] %v576_v0 }
  0x13 PF: > { %v139_v1 = vld [vmem:[%s603_s15 + $0x8] sm:$0x1]  ;;  %vm211_vm0 = vcmask 1040384   ;;  %v138_v2 = vld [vmem:[%s603_s15] sm:$0xff]  ;;  %v141_v4 = vld [vmem:[%s603_s15 + $0x18] sm:$0x1] }
  0x14   : > { %v212_v3 = vsel %vm211_vm0, %v139_v1, 0.0  ;;  %v140_v6 = vld [vmem:[%s603_s15 + $0x10] sm:$0xff]  ;;  %v215_v7 = vsel %vm211_vm0, %v141_v4, 0.0  ;;  %v143_v9 = vld [vmem:[%s603_s15 + $0x28] sm:$0x1]  ;;  %v329_v11 = vmul.f32 %v139_v1, %v139_v1  ;;  %v142_v12 = vld [vmem:[%s603_s15 + $0x20] sm:$0xff]  ;;  %v328_v14 = vmul.f32 %v138_v2, %v138_v2 }
  0x15   : > { %v213_v5 = vadd.f32 %v212_v3, %v138_v2  ;;  %v218_v13 = vsel %vm211_vm0, %v143_v9, 0.0  ;;  %v331_v16 = vmul.f32 %v141_v4, %v141_v4  ;;  %v330_v17 = vmul.f32 %v140_v6, %v140_v6  ;;  %v145_v18 = vld [vmem:[%s603_s15 + $0x38] sm:$0x1]  ;;  %v144_v21 = vld [vmem:[%s603_s15 + $0x30] sm:$0xff]  ;;  %v147_v29 = vld [vmem:[%s603_s15 + $0x48] sm:$0x1] }
  0x16   : > { %v400_v20 = vsel %vm211_vm0, %v329_v11, 0.0  ;;  %v221_v22 = vsel %vm211_vm0, %v145_v18, 0.0  ;;  %v333_v25 = vmul.f32 %v143_v9, %v143_v9  ;;  %v332_v27 = vmul.f32 %v142_v12, %v142_v12  ;;  %v146_v31 = vld [vmem:[%s603_s15 + $0x40] sm:$0xff]  ;;  %v149_v39 = vld [vmem:[%s603_s15 + $0x58] sm:$0x1]  ;;  %v148_v41 = vld [vmem:[%s603_s15 + $0x50] sm:$0xff] }
  0x17   : > { %v214_v8 = vadd.f32 %v213_v5, %v140_v6  ;;  %v401_v23 = vadd.f32 %v400_v20, %v328_v14  ;;  %v403_v26 = vsel %vm211_vm0, %v331_v16, 0.0  ;;  %v224_v32 = vsel %vm211_vm0, %v147_v29, 0.0  ;;  %v151_v49 = vld [vmem:[%s603_s15 + $0x68] sm:$0x1]  ;;  %v150_v51 = vld [vmem:[%s603_s15 + $0x60] sm:$0xff]  ;;  %v152_v61 = vld [vmem:[%s603_s15 + $0x70] sm:$0xff] }
  0x18   : > { %v335_v35 = vmul.f32 %v145_v18, %v145_v18  ;;  %v406_v36 = vsel %vm211_vm0, %v333_v25, 0.0  ;;  %v334_v37 = vmul.f32 %v144_v21, %v144_v21  ;;  %v227_v42 = vsel %vm211_vm0, %v149_v39, 0.0  ;;  %v153_v59 = vld [vmem:[%s603_s15 + $0x78] sm:$0x1]  ;;  %v155_v5 = vld [vmem:[%s603_s15 + $0x88] sm:$0x1] }
  0x19   : > { %v216_v10 = vadd.f32 %v215_v7, %v214_v8  ;;  %v402_v28 = vadd.f32 %v401_v23, %v330_v17  ;;  %v337_v45 = vmul.f32 %v147_v29, %v147_v29  ;;  %v336_v47 = vmul.f32 %v146_v31, %v146_v31  ;;  %v154_v7 = vld [vmem:[%s603_s15 + $0x80] sm:$0xff]  ;;  %v156_v17 = vld [vmem:[%s603_s15 + $0x90] sm:$0xff]  ;;  %v159_v25 = vld [vmem:[%s603_s15 + $0xa8] sm:$0x1] }
  0x1a   : > { %v409_v46 = vsel %vm211_vm0, %v335_v35, 0.0  ;;  %v230_v52 = vsel %vm211_vm0, %v151_v49, 0.0  ;;  %v339_v55 = vmul.f32 %v149_v39, %v149_v39  ;;  %v338_v57 = vmul.f32 %v148_v41, %v148_v41  ;;  %v161_v35 = vld [vmem:[%s603_s15 + $0xb8] sm:$0x1] }
  0x1b   : > { %v217_v15 = vadd.f32 %v216_v10, %v142_v12  ;;  %v404_v33 = vadd.f32 %v403_v26, %v402_v28  ;;  %v412_v56 = vsel %vm211_vm0, %v337_v45, 0.0  ;;  %v233_v62 = vsel %vm211_vm0, %v153_v59, 0.0  ;;  %v163_v45 = vld [vmem:[%s603_s15 + $0xc8] sm:$0x1] }
  0x1c   : > { %v341_v1 = vmul.f32 %v151_v49, %v151_v49  ;;  %v415_v2 = vsel %vm211_vm0, %v339_v55, 0.0  ;;  %v340_v3 = vmul.f32 %v150_v51, %v150_v51  ;;  %v236_v8 = vsel %vm211_vm0, %v155_v5, 0.0  ;;  %v165_v55 = vld [vmem:[%s603_s15 + $0xd8] sm:$0x1] }
  0x1d   : > { %v219_v19 = vadd.f32 %v218_v13, %v217_v15  ;;  %v405_v38 = vadd.f32 %v404_v33, %v332_v27  ;;  %v343_v11 = vmul.f32 %v153_v59, %v153_v59  ;;  %v342_v13 = vmul.f32 %v152_v61, %v152_v61  ;;  %v157_v15 = vld [vmem:[%s603_s15 + $0x98] sm:$0x1]  ;;  %v158_v27 = vld [vmem:[%s603_s15 + $0xa0] sm:$0xff] }
  0x1e   : > { %v418_v12 = vsel %vm211_vm0, %v341_v1, 0.0  ;;  %v239_v18 = vsel %vm211_vm0, %v157_v15, 0.0  ;;  %v344_v23 = vmul.f32 %v154_v7, %v154_v7  ;;  %v242_v28 = vsel %vm211_vm0, %v159_v25, 0.0  ;;  %v167_v1 = vld [vmem:[%s603_s15 + $0xe8] sm:$0x1] }
  0x1f   : > { %v220_v24 = vadd.f32 %v219_v19, %v144_v21  ;;  %v407_v43 = vadd.f32 %v406_v36, %v405_v38  ;;  %v345_v21 = vmul.f32 %v155_v5, %v155_v5  ;;  %v346_v33 = vmul.f32 %v156_v17, %v156_v17 }
  0x20   : > { %v245_v38 = vsel %vm211_vm0, %v161_v35, 0.0 }
  0x21   : > { %v222_v30 = vadd.f32 %v221_v22, %v220_v24  ;;  %v408_v48 = vadd.f32 %v407_v43, %v334_v37  ;;  %v421_v22 = vsel %vm211_vm0, %v343_v11, 0.0  ;;  %v160_v37 = vld [vmem:[%s603_s15 + $0xb0] sm:$0xff]  ;;  %v348_v43 = vmul.f32 %v158_v27, %v158_v27  ;;  %v169_v11 = vld [vmem:[%s603_s15 + $0xf8] sm:$0x1] }
  0x23   : > { %v223_v34 = vadd.f32 %v222_v30, %v146_v31  ;;  %v410_v53 = vadd.f32 %v409_v46, %v408_v48  ;;  %v347_v31 = vmul.f32 %v157_v15, %v157_v15  ;;  %v248_v48 = vsel %vm211_vm0, %v163_v45, 0.0 }
  0x25   : > { %v225_v40 = vadd.f32 %v224_v32, %v223_v34  ;;  %v411_v58 = vadd.f32 %v410_v53, %v336_v47  ;;  %v424_v32 = vsel %vm211_vm0, %v345_v21, 0.0  ;;  %v162_v47 = vld [vmem:[%s603_s15 + $0xc0] sm:$0xff]  ;;  %v350_v53 = vmul.f32 %v160_v37, %v160_v37  ;;  %v171_v21 = vld [vmem:[%s603_s15 + $0x108] sm:$0x1] }
  0x27   : > { %v226_v44 = vadd.f32 %v225_v40, %v148_v41  ;;  %v413_v63 = vadd.f32 %v412_v56, %v411_v58  ;;  %v349_v41 = vmul.f32 %v159_v25, %v159_v25  ;;  %v251_v58 = vsel %vm211_vm0, %v165_v55, 0.0 }
  0x29   : > { %v228_v50 = vadd.f32 %v227_v42, %v226_v44  ;;  %v414_v4 = vadd.f32 %v413_v63, %v338_v57  ;;  %v427_v42 = vsel %vm211_vm0, %v347_v31, 0.0  ;;  %v164_v57 = vld [vmem:[%s603_s15 + $0xd0] sm:$0xff]  ;;  %v352_v63 = vmul.f32 %v162_v47, %v162_v47  ;;  %v173_v31 = vld [vmem:[%s603_s15 + $0x118] sm:$0x1] }
  0x2b   : > { %v229_v54 = vadd.f32 %v228_v50, %v150_v51  ;;  %v416_v9 = vadd.f32 %v415_v2, %v414_v4  ;;  %v351_v51 = vmul.f32 %v161_v35, %v161_v35  ;;  %v254_v4 = vsel %vm211_vm0, %v167_v1, 0.0 }
  0x2d   : > { %v231_v60 = vadd.f32 %v230_v52, %v229_v54  ;;  %v417_v14 = vadd.f32 %v416_v9, %v340_v3  ;;  %v430_v52 = vsel %vm211_vm0, %v349_v41, 0.0  ;;  %v166_v3 = vld [vmem:[%s603_s15 + $0xe0] sm:$0xff]  ;;  %v354_v9 = vmul.f32 %v164_v57, %v164_v57  ;;  %v175_v41 = vld [vmem:[%s603_s15 + $0x128] sm:$0x1] }
  0x2f   : > { %v232_v0 = vadd.f32 %v231_v60, %v152_v61  ;;  %v419_v19 = vadd.f32 %v418_v12, %v417_v14  ;;  %v353_v61 = vmul.f32 %v163_v45, %v163_v45  ;;  %v257_v14 = vsel %vm211_vm0, %v169_v11, 0.0 }
  0x31   : > { %v234_v6 = vadd.f32 %v233_v62, %v232_v0  ;;  %v420_v24 = vadd.f32 %v419_v19, %v342_v13  ;;  %v433_v62 = vsel %vm211_vm0, %v351_v51, 0.0  ;;  %v168_v13 = vld [vmem:[%s603_s15 + $0xf0] sm:$0xff]  ;;  %v356_v19 = vmul.f32 %v166_v3, %v166_v3  ;;  %v177_v51 = vld [vmem:[%s603_s15 + $0x138] sm:$0x1] }
  0x33   : > { %v235_v10 = vadd.f32 %v234_v6, %v154_v7  ;;  %v422_v29 = vadd.f32 %v421_v22, %v420_v24  ;;  %v355_v7 = vmul.f32 %v165_v55, %v165_v55  ;;  %v260_v24 = vsel %vm211_vm0, %v171_v21, 0.0 }
  0x35   : > { %v237_v16 = vadd.f32 %v236_v8, %v235_v10  ;;  %v423_v34 = vadd.f32 %v422_v29, %v344_v23  ;;  %v436_v8 = vsel %vm211_vm0, %v353_v61, 0.0  ;;  %v170_v23 = vld [vmem:[%s603_s15 + $0x100] sm:$0xff]  ;;  %v358_v29 = vmul.f32 %v168_v13, %v168_v13  ;;  %v179_v61 = vld [vmem:[%s603_s15 + $0x148] sm:$0x1] }
  0x37   : > { %v238_v20 = vadd.f32 %v237_v16, %v156_v17  ;;  %v425_v39 = vadd.f32 %v424_v32, %v423_v34  ;;  %v357_v17 = vmul.f32 %v167_v1, %v167_v1  ;;  %v263_v34 = vsel %vm211_vm0, %v173_v31, 0.0 }
  0x39   : > { %v240_v26 = vadd.f32 %v239_v18, %v238_v20  ;;  %v426_v44 = vadd.f32 %v425_v39, %v346_v33  ;;  %v439_v18 = vsel %vm211_vm0, %v355_v7, 0.0  ;;  %v172_v33 = vld [vmem:[%s603_s15 + $0x110] sm:$0xff]  ;;  %v360_v39 = vmul.f32 %v170_v23, %v170_v23  ;;  %v181_v7 = vld [vmem:[%s603_s15 + $0x158] sm:$0x1] }
  0x3b   : > { %v241_v30 = vadd.f32 %v240_v26, %v158_v27  ;;  %v428_v49 = vadd.f32 %v427_v42, %v426_v44  ;;  %v359_v27 = vmul.f32 %v169_v11, %v169_v11  ;;  %v266_v44 = vsel %vm211_vm0, %v175_v41, 0.0 }
  0x3d   : > { %v243_v36 = vadd.f32 %v242_v28, %v241_v30  ;;  %v429_v54 = vadd.f32 %v428_v49, %v348_v43  ;;  %v442_v28 = vsel %vm211_vm0, %v357_v17, 0.0  ;;  %v174_v43 = vld [vmem:[%s603_s15 + $0x120] sm:$0xff]  ;;  %v362_v49 = vmul.f32 %v172_v33, %v172_v33  ;;  %v183_v17 = vld [vmem:[%s603_s15 + $0x168] sm:$0x1] }
  0x3f   : > { %v244_v40 = vadd.f32 %v243_v36, %v160_v37  ;;  %v431_v59 = vadd.f32 %v430_v52, %v429_v54  ;;  %v361_v37 = vmul.f32 %v171_v21, %v171_v21  ;;  %v269_v54 = vsel %vm211_vm0, %v177_v51, 0.0 }
  0x41   : > { %v246_v46 = vadd.f32 %v245_v38, %v244_v40  ;;  %v432_v0 = vadd.f32 %v431_v59, %v350_v53  ;;  %v445_v38 = vsel %vm211_vm0, %v359_v27, 0.0  ;;  %v176_v53 = vld [vmem:[%s603_s15 + $0x130] sm:$0xff]  ;;  %v364_v59 = vmul.f32 %v174_v43, %v174_v43  ;;  %v185_v27 = vld [vmem:[%s603_s15 + $0x178] sm:$0x1] }
  0x43   : > { %v247_v50 = vadd.f32 %v246_v46, %v162_v47  ;;  %v434_v5 = vadd.f32 %v433_v62, %v432_v0  ;;  %v363_v47 = vmul.f32 %v173_v31, %v173_v31  ;;  %v272_v0 = vsel %vm211_vm0, %v179_v61, 0.0 }
  0x45   : > { %v249_v56 = vadd.f32 %v248_v48, %v247_v50  ;;  %v435_v10 = vadd.f32 %v434_v5, %v352_v63  ;;  %v448_v48 = vsel %vm211_vm0, %v361_v37, 0.0  ;;  %v178_v63 = vld [vmem:[%s603_s15 + $0x140] sm:$0xff]  ;;  %v366_v5 = vmul.f32 %v176_v53, %v176_v53  ;;  %v187_v37 = vld [vmem:[%s603_s15 + $0x188] sm:$0x1] }
  0x47   : > { %v250_v60 = vadd.f32 %v249_v56, %v164_v57  ;;  %v437_v15 = vadd.f32 %v436_v8, %v435_v10  ;;  %v365_v57 = vmul.f32 %v175_v41, %v175_v41  ;;  %v275_v10 = vsel %vm211_vm0, %v181_v7, 0.0 }
  0x49   : > { %v252_v2 = vadd.f32 %v251_v58, %v250_v60  ;;  %v438_v20 = vadd.f32 %v437_v15, %v354_v9  ;;  %v451_v58 = vsel %vm211_vm0, %v363_v47, 0.0  ;;  %v180_v9 = vld [vmem:[%s603_s15 + $0x150] sm:$0xff]  ;;  %v368_v15 = vmul.f32 %v178_v63, %v178_v63  ;;  %v189_v47 = vld [vmem:[%s603_s15 + $0x198] sm:$0x1] }
  0x4b   : > { %v253_v6 = vadd.f32 %v252_v2, %v166_v3  ;;  %v440_v25 = vadd.f32 %v439_v18, %v438_v20  ;;  %v367_v3 = vmul.f32 %v177_v51, %v177_v51  ;;  %v278_v20 = vsel %vm211_vm0, %v183_v17, 0.0 }
  0x4d   : > { %v255_v12 = vadd.f32 %v254_v4, %v253_v6  ;;  %v441_v30 = vadd.f32 %v440_v25, %v356_v19  ;;  %v454_v4 = vsel %vm211_vm0, %v365_v57, 0.0  ;;  %v182_v19 = vld [vmem:[%s603_s15 + $0x160] sm:$0xff]  ;;  %v370_v25 = vmul.f32 %v180_v9, %v180_v9  ;;  %v191_v57 = vld [vmem:[%s603_s15 + $0x1a8] sm:$0x1] }
  0x4f   : > { %v256_v16 = vadd.f32 %v255_v12, %v168_v13  ;;  %v443_v35 = vadd.f32 %v442_v28, %v441_v30  ;;  %v369_v13 = vmul.f32 %v179_v61, %v179_v61  ;;  %v281_v30 = vsel %vm211_vm0, %v185_v27, 0.0 }
  0x51   : > { %v258_v22 = vadd.f32 %v257_v14, %v256_v16  ;;  %v444_v40 = vadd.f32 %v443_v35, %v358_v29  ;;  %v457_v14 = vsel %vm211_vm0, %v367_v3, 0.0  ;;  %v184_v29 = vld [vmem:[%s603_s15 + $0x170] sm:$0xff]  ;;  %v372_v35 = vmul.f32 %v182_v19, %v182_v19  ;;  %v193_v3 = vld [vmem:[%s603_s15 + $0x1b8] sm:$0x1] }
  0x53   : > { %v259_v26 = vadd.f32 %v258_v22, %v170_v23  ;;  %v446_v45 = vadd.f32 %v445_v38, %v444_v40  ;;  %v371_v23 = vmul.f32 %v181_v7, %v181_v7  ;;  %v284_v40 = vsel %vm211_vm0, %v187_v37, 0.0 }
  0x55   : > { %v261_v32 = vadd.f32 %v260_v24, %v259_v26  ;;  %v447_v50 = vadd.f32 %v446_v45, %v360_v39  ;;  %v460_v24 = vsel %vm211_vm0, %v369_v13, 0.0  ;;  %v186_v39 = vld [vmem:[%s603_s15 + $0x180] sm:$0xff]  ;;  %v374_v45 = vmul.f32 %v184_v29, %v184_v29  ;;  %v195_v13 = vld [vmem:[%s603_s15 + $0x1c8] sm:$0x1] }
  0x57   : > { %v262_v36 = vadd.f32 %v261_v32, %v172_v33  ;;  %v449_v55 = vadd.f32 %v448_v48, %v447_v50  ;;  %v373_v33 = vmul.f32 %v183_v17, %v183_v17  ;;  %v287_v50 = vsel %vm211_vm0, %v189_v47, 0.0 }
  0x59   : > { %v264_v42 = vadd.f32 %v263_v34, %v262_v36  ;;  %v450_v60 = vadd.f32 %v449_v55, %v362_v49  ;;  %v463_v34 = vsel %vm211_vm0, %v371_v23, 0.0  ;;  %v188_v49 = vld [vmem:[%s603_s15 + $0x190] sm:$0xff]  ;;  %v376_v55 = vmul.f32 %v186_v39, %v186_v39  ;;  %v197_v23 = vld [vmem:[%s603_s15 + $0x1d8] sm:$0x1] }
  0x5b   : > { %v265_v46 = vadd.f32 %v264_v42, %v174_v43  ;;  %v452_v1 = vadd.f32 %v451_v58, %v450_v60  ;;  %v375_v43 = vmul.f32 %v185_v27, %v185_v27  ;;  %v290_v60 = vsel %vm211_vm0, %v191_v57, 0.0 }
  0x5d   : > { %v267_v52 = vadd.f32 %v266_v44, %v265_v46  ;;  %v453_v6 = vadd.f32 %v452_v1, %v364_v59  ;;  %v466_v44 = vsel %vm211_vm0, %v373_v33, 0.0  ;;  %v190_v59 = vld [vmem:[%s603_s15 + $0x1a0] sm:$0xff]  ;;  %v378_v1 = vmul.f32 %v188_v49, %v188_v49  ;;  %v199_v33 = vld [vmem:[%s603_s15 + $0x1e8] sm:$0x1] }
  0x5f   : > { %v268_v56 = vadd.f32 %v267_v52, %v176_v53  ;;  %v455_v11 = vadd.f32 %v454_v4, %v453_v6  ;;  %v377_v53 = vmul.f32 %v187_v37, %v187_v37  ;;  %v293_v6 = vsel %vm211_vm0, %v193_v3, 0.0 }
  0x61   : > { %v270_v62 = vadd.f32 %v269_v54, %v268_v56  ;;  %v456_v16 = vadd.f32 %v455_v11, %v366_v5  ;;  %v469_v54 = vsel %vm211_vm0, %v375_v43, 0.0  ;;  %v192_v5 = vld [vmem:[%s603_s15 + $0x1b0] sm:$0xff]  ;;  %v380_v11 = vmul.f32 %v190_v59, %v190_v59  ;;  %v201_v43 = vld [vmem:[%s603_s15 + $0x1f8] sm:$0x1] }
  0x63   : > { %v271_v2 = vadd.f32 %v270_v62, %v178_v63  ;;  %v458_v21 = vadd.f32 %v457_v14, %v456_v16  ;;  %v379_v63 = vmul.f32 %v189_v47, %v189_v47  ;;  %v296_v16 = vsel %vm211_vm0, %v195_v13, 0.0 }
  0x65   : > { %v273_v8 = vadd.f32 %v272_v0, %v271_v2  ;;  %v459_v26 = vadd.f32 %v458_v21, %v368_v15  ;;  %v472_v0 = vsel %vm211_vm0, %v377_v53, 0.0  ;;  %v194_v15 = vld [vmem:[%s603_s15 + $0x1c0] sm:$0xff]  ;;  %v382_v21 = vmul.f32 %v192_v5, %v192_v5  ;;  %v203_v53 = vld [vmem:[%s603_s15 + $0x208] sm:$0x1] }
  0x67   : > { %v274_v12 = vadd.f32 %v273_v8, %v180_v9  ;;  %v461_v31 = vadd.f32 %v460_v24, %v459_v26  ;;  %v381_v9 = vmul.f32 %v191_v57, %v191_v57  ;;  %v299_v26 = vsel %vm211_vm0, %v197_v23, 0.0 }
  0x69   : > { %v276_v18 = vadd.f32 %v275_v10, %v274_v12  ;;  %v462_v36 = vadd.f32 %v461_v31, %v370_v25  ;;  %v475_v10 = vsel %vm211_vm0, %v379_v63, 0.0  ;;  %v196_v25 = vld [vmem:[%s603_s15 + $0x1d0] sm:$0xff]  ;;  %v384_v31 = vmul.f32 %v194_v15, %v194_v15  ;;  %v205_v63 = vld [vmem:[%s603_s15 + $0x218] sm:$0x1] }
  0x6b   : > { %v277_v22 = vadd.f32 %v276_v18, %v182_v19  ;;  %v464_v41 = vadd.f32 %v463_v34, %v462_v36  ;;  %v383_v19 = vmul.f32 %v193_v3, %v193_v3  ;;  %v302_v36 = vsel %vm211_vm0, %v199_v33, 0.0 }
  0x6d   : > { %v279_v28 = vadd.f32 %v278_v20, %v277_v22  ;;  %v465_v46 = vadd.f32 %v464_v41, %v372_v35  ;;  %v478_v20 = vsel %vm211_vm0, %v381_v9, 0.0  ;;  %v198_v35 = vld [vmem:[%s603_s15 + $0x1e0] sm:$0xff]  ;;  %v386_v41 = vmul.f32 %v196_v25, %v196_v25  ;;  %v207_v9 = vld [vmem:[%s603_s15 + $0x228] sm:$0x1] }
  0x6f   : > { %v280_v32 = vadd.f32 %v279_v28, %v184_v29  ;;  %v467_v51 = vadd.f32 %v466_v44, %v465_v46  ;;  %v385_v29 = vmul.f32 %v195_v13, %v195_v13  ;;  %v305_v46 = vsel %vm211_vm0, %v201_v43, 0.0 }
  0x71   : > { %v282_v38 = vadd.f32 %v281_v30, %v280_v32  ;;  %v468_v56 = vadd.f32 %v467_v51, %v374_v45  ;;  %v481_v30 = vsel %vm211_vm0, %v383_v19, 0.0  ;;  %v200_v45 = vld [vmem:[%s603_s15 + $0x1f0] sm:$0xff]  ;;  %v388_v51 = vmul.f32 %v198_v35, %v198_v35  ;;  %v209_v19 = vld [vmem:[%s603_s15 + $0x238] sm:$0x1] }
  0x73   : > { %v283_v42 = vadd.f32 %v282_v38, %v186_v39  ;;  %v470_v61 = vadd.f32 %v469_v54, %v468_v56  ;;  %v387_v39 = vmul.f32 %v197_v23, %v197_v23  ;;  %v308_v56 = vsel %vm211_vm0, %v203_v53, 0.0 }
  0x75   : > { %v285_v48 = vadd.f32 %v284_v40, %v283_v42  ;;  %v471_v2 = vadd.f32 %v470_v61, %v376_v55  ;;  %v484_v40 = vsel %vm211_vm0, %v385_v29, 0.0  ;;  %v202_v55 = vld [vmem:[%s603_s15 + $0x200] sm:$0xff]  ;;  %v390_v61 = vmul.f32 %v200_v45, %v200_v45 }
  0x77   : > { %v286_v52 = vadd.f32 %v285_v48, %v188_v49  ;;  %v473_v7 = vadd.f32 %v472_v0, %v471_v2  ;;  %v389_v49 = vmul.f32 %v199_v33, %v199_v33  ;;  %v311_v2 = vsel %vm211_vm0, %v205_v63, 0.0 }
  0x79   : > { %v288_v58 = vadd.f32 %v287_v50, %v286_v52  ;;  %v474_v12 = vadd.f32 %v473_v7, %v378_v1  ;;  %v487_v50 = vsel %vm211_vm0, %v387_v39, 0.0  ;;  %v204_v1 = vld [vmem:[%s603_s15 + $0x210] sm:$0xff]  ;;  %v392_v7 = vmul.f32 %v202_v55, %v202_v55 }
  0x7b   : > { %v289_v62 = vadd.f32 %v288_v58, %v190_v59  ;;  %v476_v17 = vadd.f32 %v475_v10, %v474_v12  ;;  %v391_v59 = vmul.f32 %v201_v43, %v201_v43  ;;  %v314_v12 = vsel %vm211_vm0, %v207_v9, 0.0 }
  0x7d   : > { %v291_v4 = vadd.f32 %v290_v60, %v289_v62  ;;  %v477_v22 = vadd.f32 %v476_v17, %v380_v11  ;;  %v490_v60 = vsel %vm211_vm0, %v389_v49, 0.0  ;;  %v206_v11 = vld [vmem:[%s603_s15 + $0x220] sm:$0xff]  ;;  %v394_v17 = vmul.f32 %v204_v1, %v204_v1 }
  0x7f   : > { %v292_v8 = vadd.f32 %v291_v4, %v192_v5  ;;  %v479_v27 = vadd.f32 %v478_v20, %v477_v22  ;;  %v393_v5 = vmul.f32 %v203_v53, %v203_v53  ;;  %v317_v22 = vsel %vm211_vm0, %v209_v19, 0.0 }
  0x81   : > { %v294_v14 = vadd.f32 %v293_v6, %v292_v8  ;;  %v480_v32 = vadd.f32 %v479_v27, %v382_v21  ;;  %v493_v6 = vsel %vm211_vm0, %v391_v59, 0.0  ;;  %v208_v21 = vld [vmem:[%s603_s15 + $0x230] sm:$0xff]  ;;  %v396_v27 = vmul.f32 %v206_v11, %v206_v11 }
  0x83   : > { %v295_v18 = vadd.f32 %v294_v14, %v194_v15  ;;  %v482_v37 = vadd.f32 %v481_v30, %v480_v32  ;;  %v395_v15 = vmul.f32 %v205_v63, %v205_v63  ;;  %v399_v32 = vmul.f32 %v209_v19, %v209_v19 }
  0x85   : > { %v297_v24 = vadd.f32 %v296_v16, %v295_v18  ;;  %v483_v42 = vadd.f32 %v482_v37, %v384_v31  ;;  %v496_v16 = vsel %vm211_vm0, %v393_v5, 0.0  ;;  %v505_v39 = vsel %vm211_vm0, %v399_v32, 0.0 }
  0x87   : > { %v298_v28 = vadd.f32 %v297_v24, %v196_v25  ;;  %v485_v47 = vadd.f32 %v484_v40, %v483_v42  ;;  %v397_v25 = vmul.f32 %v207_v9, %v207_v9 }
  0x89   : > { %v300_v34 = vadd.f32 %v299_v26, %v298_v28  ;;  %v486_v52 = vadd.f32 %v485_v47, %v386_v41  ;;  %v499_v26 = vsel %vm211_vm0, %v395_v15, 0.0  ;;  %v502_v33 = vsel %vm211_vm0, %v397_v25, 0.0 }
  0x8b   : > { %v301_v38 = vadd.f32 %v300_v34, %v198_v35  ;;  %v488_v57 = vadd.f32 %v487_v50, %v486_v52  ;;  %v398_v34 = vmul.f32 %v208_v21, %v208_v21  ;;  %v327_v52 = vld [vmem:[%s772_s2] sm:$0x1] }
  0x8d   : > { %v303_v44 = vadd.f32 %v302_v36, %v301_v38  ;;  %v489_v62 = vadd.f32 %v488_v57, %v388_v51 }
  0x8f   : > { %v304_v48 = vadd.f32 %v303_v44, %v200_v45  ;;  %v491_v3 = vadd.f32 %v490_v60, %v489_v62  ;;  %v210_v44 = vld [vmem:[%s771_s1] sm:$0x1] }
  0x91   : > { %v306_v54 = vadd.f32 %v305_v46, %v304_v48  ;;  %v492_v8 = vadd.f32 %v491_v3, %v390_v61 }
  0x93   : > { %v307_v58 = vadd.f32 %v306_v54, %v202_v55  ;;  %v494_v13 = vadd.f32 %v493_v6, %v492_v8 }
  0x95   : > { %v309_v0 = vadd.f32 %v308_v56, %v307_v58  ;;  %v495_v18 = vadd.f32 %v494_v13, %v392_v7 }
  0x97   : > { %v310_v4 = vadd.f32 %v309_v0, %v204_v1  ;;  %v497_v23 = vadd.f32 %v496_v16, %v495_v18 }
  0x99   : > { %v312_v10 = vadd.f32 %v311_v2, %v310_v4  ;;  %v498_v28 = vadd.f32 %v497_v23, %v394_v17 }
  0x9b   : > { %v313_v14 = vadd.f32 %v312_v10, %v206_v11  ;;  %v500_v30 = vadd.f32 %v499_v26, %v498_v28 }
  0x9d   : > { %v315_v20 = vadd.f32 %v314_v12, %v313_v14  ;;  %v501_v35 = vadd.f32 %v500_v30, %v396_v27 }
  0x9f   : > { %v316_v24 = vadd.f32 %v315_v20, %v208_v21  ;;  %v503_v37 = vadd.f32 %v502_v33, %v501_v35 }
  0xa1   : > { %v318_v29 = vadd.f32 %v317_v22, %v316_v24  ;;  %v504_v40 = vadd.f32 %v503_v37, %v398_v34 }
  0xa3   : > { %v319_v31 = vrot.slane %v318_v29, 4  ;;  %v506_v42 = vadd.f32 %v505_v39, %v504_v40 }
  0xa5   : > { %v320_v36 = vadd.f32 %v319_v31, %v318_v29  ;;  %v507_v45 = vrot.slane %v506_v42, 4 }
  0xa7   : > { %v321_v38 = vrot.slane %v320_v36, 2  ;;  %v508_v47 = vadd.f32 %v507_v45, %v506_v42 }
  0xa9   : > { %v322_v41 = vadd.f32 %v321_v38, %v320_v36  ;;  %v509_v49 = vrot.slane %v508_v47, 2 }
  0xab   : > { %v323_v43 = vrot.slane %v322_v41, 1  ;;  %v510_v50 = vadd.f32 %v509_v49, %v508_v47 }
  0xad   : > { %v324_v46 = vadd.f32 %v323_v43, %v322_v41  ;;  %v511_v51 = vrot.slane %v510_v50, 1 }
  0xaf   : > { %v325_v48 = vadd.f32 %v324_v46, %v210_v44  ;;  %v512_v53 = vadd.f32 %v511_v51, %v510_v50 }
  0xb1   : > { %326 = vst [vmem:[%s771_s1] sm:$0x1] %v325_v48  ;;  %v513_v54 = vadd.f32 %v512_v53, %v327_v52 }
  0xb3   : > { %514 = vst [vmem:[%s772_s2] sm:$0x1] %v513_v54 }
  0xb4 PF: > { %s13_s9 = sadd.s32 1, %s574_s9  }
  0xb5   : > { %p10_p5 = scmp.ge.s32.totalorder %s13_s9, 4  }
  0xb7   :  { %12 = sbr.rel (!%p10_p5) target bundleno = 1 (0x1), region = 62 }

// kernel: _lambda_.6
= control target key start
LH: loop header
LB: loop body
LE: loop exit
PB: predicated region body
PF: predicated region fallthrough
CT: control target
= control target key end

     0   :  { %vm57_vm0 = vcmask 1041408   ;;  %v242_v0 = vmov 0.0   ;;  %s457_s1 = inlined_call_operand.vmem [shape: f32[1,128], index: 1, kind: output, shape index: {0}]   ;;  %s458_s2 = inlined_call_operand.vmem [shape: f32[1,128], index: 2, kind: output, shape index: {1}]   ;;  %s459_s0 = inlined_call_operand.vmem [shape: f32[20,10,128], index: 0, kind: input, shape index: {}]  }
   0x1   :  { %14 = vst [vmem:[%s457_s1] sm:$0x1] %v242_v0  ;;  %v17_v1 = vld [vmem:[%s459_s0 + $0x8] sm:$0x3]  ;;  %v16_v2 = vld [vmem:[%s459_s0] sm:$0xff]  ;;  %v19_v4 = vld [vmem:[%s459_s0 + $0x18] sm:$0x3] }
   0x2   :  { %15 = vst [vmem:[%s458_s2] sm:$0x1] %v242_v0  ;;  %v58_v3 = vsel %vm57_vm0, %v17_v1, 0.0  ;;  %v18_v6 = vld [vmem:[%s459_s0 + $0x10] sm:$0xff]  ;;  %v61_v7 = vsel %vm57_vm0, %v19_v4, 0.0  ;;  %v127_v9 = vmul.f32 %v17_v1, %v17_v1  ;;  %v21_v10 = vld [vmem:[%s459_s0 + $0x28] sm:$0x3]  ;;  %v126_v12 = vmul.f32 %v16_v2, %v16_v2 }
   0x3   :  { %v59_v5 = vadd.f32 %v58_v3, %v16_v2  ;;  %v20_v13 = vld [vmem:[%s459_s0 + $0x20] sm:$0xff]  ;;  %v64_v14 = vsel %vm57_vm0, %v21_v10, 0.0  ;;  %v129_v15 = vmul.f32 %v19_v4, %v19_v4  ;;  %v128_v17 = vmul.f32 %v18_v6, %v18_v6  ;;  %v23_v19 = vld [vmem:[%s459_s0 + $0x38] sm:$0x3]  ;;  %v22_v22 = vld [vmem:[%s459_s0 + $0x30] sm:$0xff] }
   0x4   :  { %v166_v18 = vsel %vm57_vm0, %v127_v9, 0.0  ;;  %v67_v23 = vsel %vm57_vm0, %v23_v19, 0.0  ;;  %v131_v24 = vmul.f32 %v21_v10, %v21_v10  ;;  %v130_v27 = vmul.f32 %v20_v13, %v20_v13  ;;  %v25_v29 = vld [vmem:[%s459_s0 + $0x48] sm:$0x3]  ;;  %v24_v32 = vld [vmem:[%s459_s0 + $0x40] sm:$0xff]  ;;  %v26_v42 = vld [vmem:[%s459_s0 + $0x50] sm:$0xff] }
   0x5   :  { %v60_v8 = vadd.f32 %v59_v5, %v18_v6  ;;  %v167_v21 = vadd.f32 %v166_v18, %v126_v12  ;;  %v169_v25 = vsel %vm57_vm0, %v129_v15, 0.0  ;;  %v70_v33 = vsel %vm57_vm0, %v25_v29, 0.0  ;;  %v27_v39 = vld [vmem:[%s459_s0 + $0x58] sm:$0x3]  ;;  %v29_v49 = vld [vmem:[%s459_s0 + $0x68] sm:$0x3] }
   0x6   :  { %v133_v34 = vmul.f32 %v23_v19, %v23_v19  ;;  %v172_v35 = vsel %vm57_vm0, %v131_v24, 0.0  ;;  %v132_v37 = vmul.f32 %v22_v22, %v22_v22  ;;  %v73_v43 = vsel %vm57_vm0, %v27_v39, 0.0  ;;  %v28_v52 = vld [vmem:[%s459_s0 + $0x60] sm:$0xff]  ;;  %v31_v59 = vld [vmem:[%s459_s0 + $0x78] sm:$0x3]  ;;  %v30_v62 = vld [vmem:[%s459_s0 + $0x70] sm:$0xff] }
   0x7   :  { %v62_v11 = vadd.f32 %v61_v7, %v60_v8  ;;  %v168_v28 = vadd.f32 %v167_v21, %v128_v17  ;;  %v135_v44 = vmul.f32 %v25_v29, %v25_v29  ;;  %v134_v47 = vmul.f32 %v24_v32, %v24_v32  ;;  %v33_v5 = vld [vmem:[%s459_s0 + $0x88] sm:$0x3]  ;;  %v32_v8 = vld [vmem:[%s459_s0 + $0x80] sm:$0xff]  ;;  %v35_v17 = vld [vmem:[%s459_s0 + $0x98] sm:$0x3] }
   0x8   :  { %v175_v45 = vsel %vm57_vm0, %v133_v34, 0.0  ;;  %v76_v53 = vsel %vm57_vm0, %v29_v49, 0.0  ;;  %v137_v54 = vmul.f32 %v27_v39, %v27_v39  ;;  %v136_v57 = vmul.f32 %v26_v42, %v26_v42  ;;  %v49_v9 = vld [vmem:[%s459_s0 + $0x108] sm:$0x3]  ;;  %v51_v21 = vld [vmem:[%s459_s0 + $0x118] sm:$0x3] }
   0x9   :  { %v63_v16 = vadd.f32 %v62_v11, %v20_v13  ;;  %v170_v31 = vadd.f32 %v169_v25, %v168_v28  ;;  %v178_v55 = vsel %vm57_vm0, %v135_v44, 0.0  ;;  %v79_v63 = vsel %vm57_vm0, %v31_v59, 0.0  ;;  %v53_v34 = vld [vmem:[%s459_s0 + $0x128] sm:$0x3]  ;;  %v39_v44 = vld [vmem:[%s459_s0 + $0xb8] sm:$0x3] }
   0xa   :  { %v139_v0 = vmul.f32 %v29_v49, %v29_v49  ;;  %v181_v1 = vsel %vm57_vm0, %v137_v54, 0.0  ;;  %v138_v3 = vmul.f32 %v28_v52, %v28_v52  ;;  %v82_v10 = vsel %vm57_vm0, %v33_v5, 0.0 }
   0xb   :  { %v65_v20 = vadd.f32 %v64_v14, %v63_v16  ;;  %v171_v38 = vadd.f32 %v170_v31, %v130_v27  ;;  %v141_v11 = vmul.f32 %v31_v59, %v31_v59  ;;  %v338_v14 = vsel %vm57_vm0, %v49_v9, 0.0 }
   0xc   :  { %v184_v12 = vsel %vm57_vm0, %v139_v0, 0.0  ;;  %v140_v15 = vmul.f32 %v30_v62, %v30_v62  ;;  %v142_v27 = vmul.f32 %v32_v8, %v32_v8  ;;  %v159_v29 = vmul.f32 %v49_v9, %v49_v9  ;;  %v42_v9 = vld [vmem:[%s459_s0 + $0xd0] sm:$0xff] }
   0xd   :  { %v66_v26 = vadd.f32 %v65_v20, %v22_v22  ;;  %v173_v41 = vadd.f32 %v172_v35, %v171_v38  ;;  %v34_v20 = vld [vmem:[%s459_s0 + $0x90] sm:$0xff]  ;;  %v85_v22 = vsel %vm57_vm0, %v35_v17, 0.0  ;;  %v187_v24 = vsel %vm57_vm0, %v141_v11, 0.0 }
   0xe   :  { %v366_v39 = vsel %vm57_vm0, %v53_v34, 0.0  ;;  %v91_v49 = vsel %vm57_vm0, %v39_v44, 0.0 }
   0xf   :  { %v68_v30 = vadd.f32 %v67_v23, %v66_v26  ;;  %v174_v48 = vadd.f32 %v173_v41, %v132_v37  ;;  %v143_v23 = vmul.f32 %v33_v5, %v33_v5  ;;  %v352_v26 = vsel %vm57_vm0, %v51_v21, 0.0 }
  0x11   :  { %v69_v36 = vadd.f32 %v68_v30, %v24_v32  ;;  %v176_v51 = vadd.f32 %v175_v45, %v174_v48  ;;  %v37_v30 = vld [vmem:[%s459_s0 + $0xa8] sm:$0x3]  ;;  %v190_v37 = vsel %vm57_vm0, %v143_v23, 0.0  ;;  %v55_v48 = vld [vmem:[%s459_s0 + $0x138] sm:$0x3] }
  0x12   :  { %v88_v35 = vsel %vm57_vm0, %v37_v30, 0.0 }
  0x13   :  { %v71_v40 = vadd.f32 %v70_v33, %v69_v36  ;;  %v177_v58 = vadd.f32 %v176_v51, %v134_v47  ;;  %v36_v33 = vld [vmem:[%s459_s0 + $0xa0] sm:$0xff]  ;;  %v145_v36 = vmul.f32 %v35_v17, %v35_v17  ;;  %v38_v47 = vld [vmem:[%s459_s0 + $0xb0] sm:$0xff] }
  0x14   :  { %v146_v54 = vmul.f32 %v36_v33, %v36_v33 }
  0x15   :  { %v72_v46 = vadd.f32 %v71_v40, %v26_v42  ;;  %v179_v61 = vadd.f32 %v178_v55, %v177_v58  ;;  %v144_v40 = vmul.f32 %v34_v20, %v34_v20  ;;  %v161_v42 = vmul.f32 %v51_v21, %v51_v21  ;;  %v41_v58 = vld [vmem:[%s459_s0 + $0xc8] sm:$0x3]  ;;  %v44_v21 = vld [vmem:[%s459_s0 + $0xe0] sm:$0xff] }
  0x16   :  { %v193_v51 = vsel %vm57_vm0, %v145_v36, 0.0  ;;  %v151_v11 = vmul.f32 %v41_v58, %v41_v58 }
  0x17   :  { %v74_v50 = vadd.f32 %v73_v43, %v72_v46  ;;  %v180_v4 = vadd.f32 %v179_v61, %v136_v57  ;;  %v369_v43 = vsel %vm57_vm0, %v159_v29, 0.0  ;;  %v386_v57 = vsel %vm57_vm0, %v161_v42, 0.0  ;;  %v40_v61 = vld [vmem:[%s459_s0 + $0xc0] sm:$0xff]  ;;  %v47_v29 = vld [vmem:[%s459_s0 + $0xf8] sm:$0x3] }
  0x18   :  { %v48_v42 = vld [vmem:[%s459_s0 + $0x100] sm:$0xff] }
  0x19   :  { %v75_v56 = vadd.f32 %v74_v50, %v28_v52  ;;  %v182_v7 = vadd.f32 %v181_v1, %v180_v4  ;;  %v147_v50 = vmul.f32 %v37_v30, %v37_v30  ;;  %v165_v4 = vmul.f32 %v55_v48, %v55_v48 }
  0x1b   :  { %v77_v60 = vadd.f32 %v76_v53, %v75_v56  ;;  %v183_v16 = vadd.f32 %v182_v7, %v138_v3  ;;  %v383_v53 = vsel %vm57_vm0, %v55_v48, 0.0  ;;  %v163_v56 = vmul.f32 %v53_v34, %v53_v34 }
  0x1c   :  { %v196_v0 = vsel %vm57_vm0, %v147_v50, 0.0  ;;  %v223_v17 = vsel %vm57_vm0, %v165_v4, 0.0 }
  0x1d   :  { %v78_v2 = vadd.f32 %v77_v60, %v30_v62  ;;  %v185_v19 = vadd.f32 %v184_v12, %v183_v16  ;;  %v94_v62 = vsel %vm57_vm0, %v41_v58, 0.0  ;;  %v397_v5 = vsel %vm57_vm0, %v163_v56, 0.0 }
  0x1f   :  { %v80_v6 = vadd.f32 %v79_v63, %v78_v2  ;;  %v186_v28 = vadd.f32 %v185_v19, %v140_v15  ;;  %v149_v63 = vmul.f32 %v39_v44, %v39_v44  ;;  %v148_v2 = vmul.f32 %v38_v47, %v38_v47 }
  0x20   :  { %v150_v15 = vmul.f32 %v40_v61, %v40_v61  ;;  %v157_v44 = vmul.f32 %v47_v29, %v47_v29 }
  0x21   :  { %v81_v13 = vadd.f32 %v80_v6, %v32_v8  ;;  %v188_v32 = vadd.f32 %v187_v24, %v186_v28  ;;  %v43_v6 = vld [vmem:[%s459_s0 + $0xd8] sm:$0x3]  ;;  %v199_v12 = vsel %vm57_vm0, %v149_v63, 0.0  ;;  %v202_v24 = vsel %vm57_vm0, %v151_v11, 0.0 }
  0x22   :  { %v153_v23 = vmul.f32 %v43_v6, %v43_v6 }
  0x23   :  { %v83_v18 = vadd.f32 %v82_v10, %v81_v13  ;;  %v189_v41 = vadd.f32 %v188_v32, %v142_v27  ;;  %v97_v10 = vsel %vm57_vm0, %v43_v6, 0.0  ;;  %v152_v27 = vmul.f32 %v42_v9, %v42_v9  ;;  %v46_v32 = vld [vmem:[%s459_s0 + $0xf0] sm:$0xff] }
  0x25   :  { %v84_v25 = vadd.f32 %v83_v18, %v34_v20  ;;  %v191_v46 = vadd.f32 %v190_v37, %v189_v41  ;;  %v45_v18 = vld [vmem:[%s459_s0 + $0xe8] sm:$0x3]  ;;  %v154_v37 = vmul.f32 %v44_v21, %v44_v21 }
  0x26   :  { %v155_v34 = vmul.f32 %v45_v18, %v45_v18 }
  0x27   :  { %v86_v31 = vadd.f32 %v85_v22, %v84_v25  ;;  %v192_v55 = vadd.f32 %v191_v46, %v144_v40  ;;  %v100_v22 = vsel %vm57_vm0, %v45_v18, 0.0  ;;  %v56_v18 = vld [vmem:[%s457_s1] sm:$0x1] }
  0x29   :  { %v87_v38 = vadd.f32 %v86_v31, %v36_v33  ;;  %v194_v60 = vadd.f32 %v193_v51, %v192_v55  ;;  %v103_v33 = vsel %vm57_vm0, %v47_v29, 0.0  ;;  %v50_v51 = vld [vmem:[%s459_s0 + $0x110] sm:$0xff]  ;;  %v158_v55 = vmul.f32 %v48_v42, %v48_v42 }
  0x2b   :  { %v89_v45 = vadd.f32 %v88_v35, %v87_v38  ;;  %v195_v3 = vadd.f32 %v194_v60, %v146_v54  ;;  %v205_v35 = vsel %vm57_vm0, %v153_v23, 0.0  ;;  %v52_v60 = vld [vmem:[%s459_s0 + $0x120] sm:$0xff] }
  0x2d   :  { %v90_v52 = vadd.f32 %v89_v45, %v38_v47  ;;  %v197_v8 = vadd.f32 %v196_v0, %v195_v3  ;;  %v208_v45 = vsel %vm57_vm0, %v155_v34, 0.0  ;;  %v156_v47 = vmul.f32 %v46_v32, %v46_v32 }
  0x2e   :  { %v162_v3 = vmul.f32 %v52_v60, %v52_v60 }
  0x2f   :  { %v92_v59 = vadd.f32 %v91_v49, %v90_v52  ;;  %v198_v16 = vadd.f32 %v197_v8, %v148_v2  ;;  %v211_v52 = vsel %vm57_vm0, %v157_v44, 0.0 }
  0x31   :  { %v93_v1 = vadd.f32 %v92_v59, %v40_v61  ;;  %v200_v20 = vadd.f32 %v199_v12, %v198_v16 }
  0x33   :  { %v95_v7 = vadd.f32 %v94_v62, %v93_v1  ;;  %v201_v28 = vadd.f32 %v200_v20, %v150_v15  ;;  %v160_v62 = vmul.f32 %v50_v51, %v50_v51  ;;  %v54_v1 = vld [vmem:[%s459_s0 + $0x130] sm:$0xff] }
  0x34   :  { %v164_v8 = vmul.f32 %v54_v1, %v54_v1 }
  0x35   :  { %v96_v13 = vadd.f32 %v95_v7, %v42_v9  ;;  %v203_v31 = vadd.f32 %v202_v24, %v201_v28 }
  0x37   :  { %v98_v19 = vadd.f32 %v97_v10, %v96_v13  ;;  %v204_v38 = vadd.f32 %v203_v31, %v152_v27 }
  0x39   :  { %v99_v25 = vadd.f32 %v98_v19, %v44_v21  ;;  %v206_v41 = vadd.f32 %v205_v35, %v204_v38 }
  0x3b   :  { %v101_v30 = vadd.f32 %v100_v22, %v99_v25  ;;  %v207_v48 = vadd.f32 %v206_v41, %v154_v37 }
  0x3d   :  { %v102_v36 = vadd.f32 %v101_v30, %v46_v32  ;;  %v209_v50 = vadd.f32 %v208_v45, %v207_v48 }
  0x3f   :  { %v104_v40 = vadd.f32 %v103_v33, %v102_v36  ;;  %v210_v56 = vadd.f32 %v209_v50, %v156_v47 }
  0x41   :  { %v105_v46 = vadd.f32 %v104_v40, %v48_v42  ;;  %v212_v59 = vadd.f32 %v211_v52, %v210_v56 }
  0x43   :  { %v107_v49 = vadd.f32 %v338_v14, %v105_v46  ;;  %v213_v14 = vadd.f32 %v212_v59, %v158_v55 }
  0x45   :  { %v108_v54 = vadd.f32 %v107_v49, %v50_v51  ;;  %v215_v0 = vadd.f32 %v369_v43, %v213_v14 }
  0x47   :  { %v110_v58 = vadd.f32 %v352_v26, %v108_v54  ;;  %v216_v4 = vadd.f32 %v215_v0, %v160_v62 }
  0x49   :  { %v111_v61 = vadd.f32 %v110_v58, %v52_v60  ;;  %v218_v6 = vadd.f32 %v386_v57, %v216_v4 }
  0x4b   :  { %v113_v63 = vadd.f32 %v366_v39, %v111_v61  ;;  %v219_v9 = vadd.f32 %v218_v6, %v162_v3 }
  0x4d   :  { %v114_v2 = vadd.f32 %v113_v63, %v54_v1  ;;  %v221_v11 = vadd.f32 %v397_v5, %v219_v9 }
  0x4f   :  { %v116_v26 = vadd.f32 %v383_v53, %v114_v2  ;;  %v222_v12 = vadd.f32 %v221_v11, %v164_v8 }
  0x51   :  { %v117_v7 = vrot.slane %v116_v26, 4  ;;  %v224_v13 = vadd.f32 %v223_v17, %v222_v12  ;;  %v125_v17 = vld [vmem:[%s458_s2] sm:$0x1] }
  0x53   :  { %v118_v10 = vadd.f32 %v117_v7, %v116_v26  ;;  %v225_v16 = vrot.slane %v224_v13, 4 }
  0x55   :  { %v119_v39 = vrot.slane %v118_v10, 2  ;;  %v226_v53 = vadd.f32 %v225_v16, %v224_v13 }
  0x57   :  { %v120_v43 = vadd.f32 %v119_v39, %v118_v10  ;;  %v227_v57 = vrot.slane %v226_v53, 2 }
  0x59   :  { %v121_v15 = vrot.slane %v120_v43, 1  ;;  %v228_v21 = vadd.f32 %v227_v57, %v226_v53 }
  0x5b   :  { %v122_v19 = vadd.f32 %v121_v15, %v120_v43  ;;  %v229_v5 = vrot.slane %v228_v21, 1 }
  0x5d   :  { %v123_v20 = vadd.f32 %v122_v19, %v56_v18  ;;  %v230_v22 = vadd.f32 %v229_v5, %v228_v21 }
  0x5f   :  { %124 = vst [vmem:[%s457_s1] sm:$0x1] %v123_v20  ;;  %v231_v23 = vadd.f32 %v230_v22, %v125_v17 }
  0x61   :  { %232 = vst [vmem:[%s458_s2] sm:$0x1] %v231_v23 }

// kernel: _lambda_.5
= control target key start
LH: loop header
LB: loop body
LE: loop exit
PB: predicated region body
PF: predicated region fallthrough
CT: control target
= control target key end

     0   :  { %s3096_s0 = inlined_call_operand.vmem [shape: f32[1,128], index: 0, kind: input, shape index: {}]   ;;  %s3097_s1 = inlined_call_operand.vmem [shape: f32[1,128], index: 1, kind: input, shape index: {}]   ;;  %s3098_s2 = inlined_call_operand.vmem [shape: f32[4,18,9,128], index: 2, kind: input, shape index: {}, may-alias: {2,3,4}]   ;;  %s3099_s3 = inlined_call_operand.vmem [shape: f32[4,18,9,128], index: 3, kind: input, shape index: {}, may-alias: {2,3,4}]   ;;  %s3100_s4 = inlined_call_operand.vmem [shape: f32[4,18,9,128], index: 4, kind: input, shape index: {}, may-alias: {2,3,4}]   ;;  %s3101_s5 = inlined_call_operand.vmem [shape: bf16[3,3,128,128], index: 5, kind: input, shape index: {}]   ;;  %s3102_s6 = inlined_call_operand.vmem [shape: f32[2,10,10,128], index: 6, kind: output, shape index: {}]  }
   0x1   :  { %3107 = sst [smem:[#allocation10_spill]] %s3096_s0 }
   0x2   :  { %3108 = sst [smem:[#allocation11_spill]] %s3097_s1 }
   0x3   :  { %3109 = sst [smem:[#allocation12_spill]] %s3101_s5 }
   0x4   :  { %s2432_s21 = smov 0   ;;  %s2434_s22 = smov 0  }
   0x5   :  { %s2436_s23 = smov 0   ;;  %s2438_s24 = smov 0  }
   0x6   :  { %s2440_s25 = smov 0   ;;  %s2442_s26 = smov 0  }
   0x7   :  { %s2444_s27 = smov 0   ;;  %s2446_s28 = smov 0  }
   0x8   :  { %s2448_s29 = smov 0   ;;  %s2450_s30 = smov 0  }
   0x9   :  { %s2452_s7 = smov 0  }
   0xa LB: > { %3110 = sst [smem:[#allocation5_spill]] %s2386_s29  ;;  %s25_s8 = sadd.s32 1, %s2386_s29  ;;  %s2394_s7 = sphi %s2452_s7, %s16_s7   ;;  %s2390_s30 = sphi %s2450_s30, %s3161_s30   ;;  %s2386_s29 = sphi %s2448_s29, %s3152_s29   ;;  %s2382_s28 = sphi %s2446_s28, %s3160_s28   ;;  %s2378_s27 = sphi %s2444_s27, %s3151_s27   ;;  %s2374_s26 = sphi %s2442_s26, %s3159_s26   ;;  %s2370_s25 = sphi %s2440_s25, %s3158_s25   ;;  %s2366_s24 = sphi %s2438_s24, %s3157_s24   ;;  %s2362_s23 = sphi %s2436_s23, %s3156_s23   ;;  %s2358_s22 = sphi %s2434_s22, %s3155_s22   ;;  %s2354_s21 = sphi %s2432_s21, %s3154_s21  }
   0xb   : > { %s28_s9 = sadd.s32 1, %s2390_s30  ;;  %p26_p0 = scmp.ge.s32.totalorder %s25_s8, 10 }
   0xc   : > { %s1593_s10 = sadd.s32 4294967295, %s2386_s29  ;;  %s91_s12 = sadd.s32 1, %s2374_s26 }
   0xd   : > { %s2490_s11 = sshll.u32 %s1593_s10, 1  ;;  %s3163_s8 = smov (%p26_p0, %s25_s8), 0 }
   0xe   : > { %3111 = sst [smem:[#allocation6_spill]] %s3163_s8  ;;  %s3165_s9 = smov (!%p26_p0, %s28_s9), %s2390_s30 }
   0xf   : > { %p76_p1 = scmp.lt.s32.totalorder %s2490_s11, 17  ;;  %p1595_p2 = scmp.gt.s32.totalorder %s2490_s11, 0 }
  0x10   : > { %p30_p3 = scmp.ge.s32.totalorder %s3165_s9, 2  ;;  %s1600_s13 = sadd.s32 4294967295, %s3163_s8 }
  0x11   : > { %s77_s14 = scalar_select %p76_p1, %s2490_s11, 17 }
  0x12   : > { %s3167_s9 = smov (%p30_p3, %s3165_s9), 0  ;;  %s2504_s15 = sshll.u32 %s1600_s13, 1 }
  0x13   : > { %3112 = sst [smem:[#allocation7_spill]] %s3167_s9  ;;  %s3169_s14 = smov (!%p1595_p2, %s77_s14), 0 }
  0x14   : > { %s2508_s16 = ssub.s32 %s2390_s30, %s3167_s9  ;;  %p82_p4 = scmp.lt.s32.totalorder %s2504_s15, 17 }
  0x15   : > { %p1602_p5 = scmp.gt.s32.totalorder %s2504_s15, 0  ;;  %p98_p6 = scmp.ne.s32.totalorder %s2374_s26, %s2370_s25 }
  0x16   : > { %p99_p7 = scmp.eq.s32.totalorder %s2394_s7, 0  ;;  %s116_s19 = sadd.s32 1, %s2490_s11 }
  0x17   : > { %s83_s17 = scalar_select %p82_p4, %s2504_s15, 17 }
  0x18   : > { %p2518_p8 = por %p99_p7, %p98_p6  ;;  %p117_p9 = scmp.lt.s32.totalorder %s116_s19, 17 }
  0x19   : > { %s3171_s17 = smov (!%p1602_p5, %s83_s17), 0  ;;  %p1609_p10 = scmp.gt.s32.totalorder %s116_s19, 0 }
  0x1a   : > { %s87_s20 = ssub.s32 %s3169_s14, %s3171_s17  ;;  %s123_s10 = sadd.s32 1, %s2504_s15 }
  0x1b   : > { %s88_s13 = sor.u32 %s87_s20, %s2508_s16  ;;  %p124_p11 = scmp.lt.s32.totalorder %s123_s10, 17 }
  0x1c   : > { %p89_p12 = scmp.eq.s32.totalorder %s88_s13, 0  ;;  %p1616_p13 = scmp.gt.s32.totalorder %s123_s10, 0 }
  0x1d   : > { %s3173_s19 = smov (!%p117_p9, %s116_s19), 17  ;;  %s3177_s10 = smov (!%p124_p11, %s123_s10), 17 }
  0x1e   : > { %s2529_s9 = scalar_select %p89_p12, %s2374_s26, %s91_s12  }
  0x1f   : > { %s3175_s19 = smov (!%p1609_p10, %s3173_s19), 0  ;;  %s133_s8 = sadd.s32 1, %s2366_s24 }
  0x20   : > { %3114 = sst [smem:[#allocation8_spill]] %s2529_s9  ;;  %p140_p0 = scmp.ne.s32.totalorder %s2366_s24, %s2362_s23 }
  0x21   : > { %s3179_s10 = smov (!%p1616_p13, %s3177_s10), 0  ;;  %s158_s20 = sadd.s32 2, %s2490_s11 }
  0x22   : > { %p2538_p1 = por %p140_p0, %p99_p7  ;;  %s129_s13 = ssub.s32 %s3175_s19, %s3179_s10 }
  0x23   : > { %p159_p2 = scmp.lt.s32.totalorder %s158_s20, 17  ;;  %s130_s12 = sor.u32 %s129_s13, %s2508_s16 }
  0x24   : > { %p1623_p3 = scmp.gt.s32.totalorder %s158_s20, 0  ;;  %p131_p4 = scmp.eq.s32.totalorder %s130_s12, 0 }
  0x25   : > { %s165_s29 = sadd.s32 2, %s2504_s15  ;;  %s3181_s20 = smov (!%p159_p2, %s158_s20), 17 }
  0x26   : > { %s2547_s9 = scalar_select %p131_p4, %s2366_s24, %s133_s8  }
  0x27   : > { %s3183_s20 = smov (!%p1623_p3, %s3181_s20), 0  ;;  %p166_p5 = scmp.lt.s32.totalorder %s165_s29, 17 }
  0x28   : > { %3116 = sst [smem:[#allocation9_spill]] %s2547_s9  ;;  %p1630_p6 = scmp.gt.s32.totalorder %s165_s29, 0 }
  0x29   : > { %p182_p9 = scmp.ne.s32.totalorder %s2358_s22, %s2354_s21  ;;  %s3185_s29 = smov (!%p166_p5, %s165_s29), 17 }
  0x2a   : > { %s3187_s29 = smov (!%p1630_p6, %s3185_s29), 0  ;;  %s175_s12 = sadd.s32 1, %s2358_s22 }
  0x2b   : > { %p2555_p10 = por %p182_p9, %p99_p7  ;;  %s171_s10 = ssub.s32 %s3183_s20, %s3187_s29 }
  0x2c   : > { %s172_s13 = sor.u32 %s171_s10, %s2508_s16  ;;  %p1636_p12 = scmp.ge.s32.totalorder %s2394_s7, 20 }
  0x2d   : > { %p173_p11 = scmp.eq.s32.totalorder %s172_s13, 0 }
  0x2e   : > { %266 = sbr.rel (%p1636_p12) target bundleno = 87 (0x57), region = 28 }
  0x2f   : > { %s2563_s15 = scalar_select %p173_p11, %s2358_s22, %s175_s12  }
  0x33   : > { %269 = sbr.rel (!%p2518_p8) target bundleno = 63 (0x3f), region = 32  ;;  %s271_s8 = sand.u32 (%p2518_p8), 1, %s2374_s26  }
  0x34   : > { %s1646_s9 = sshll.u32 (%p2518_p8), %s3169_s14, 1  ;;  %s1637_s1 = sshll.u32 (%p2518_p8), %s271_s8, 5 }
  0x35   : > { %s2213_s0 = smul.u32 (%p2518_p8), 72, %s2390_s30  ;;  %s273_s12 = scalar_lea.vmem (%p2518_p8), [#allocation2], %s1637_s1 }
  0x37   : > { %s283_s5 = sadd.s32 (%p2518_p8), %s2213_s0, %s1646_s9 }
  0x38   : > { %s1648_s29 = sshll.u32 %s283_s5, 3 }
  0x39   : > { %s285_s13 = scalar_lea.vmem %s3098_s2, %s1648_s29 }
  0x3a   : > { %v320_v0 = vld [vmem:[%s285_s13] sm:$0xff]  ;;  %v322_v1 = vld [vmem:[%s285_s13 + $0x8] sm:$0xff] }
  0x3b   : > { %v324_v2 = vld [vmem:[%s285_s13 + $0x120] sm:$0xff]  ;;  %321 = vst [vmem:[%s273_s12] sm:$0xff] %v320_v0  ;;  %v326_v3 = vld [vmem:[%s285_s13 + $0x128] sm:$0xff] }
  0x3c   : > { %323 = vst [vmem:[%s273_s12 + $0x8] sm:$0xff] %v322_v1 }
  0x3d   : > { %325 = vst [vmem:[%s273_s12 + $0x10] sm:$0xff] %v324_v2 }
  0x3e   : > { %327 = vst [vmem:[%s273_s12 + $0x18] sm:$0xff] %v326_v3 }
  0x3f PF: > { %333 = sbr.rel (!%p2538_p1) target bundleno = 75 (0x4b), region = 70  ;;  %s335_s0 = sand.u32 (%p2538_p1), 1, %s2366_s24  }
  0x40   : > { %s1658_s5 = sshll.u32 (%p2538_p1), %s3175_s19, 1  ;;  %s1649_s9 = sshll.u32 (%p2538_p1), %s335_s0, 5 }
  0x41   : > { %s2214_s14 = smul.u32 (%p2538_p1), 72, %s2390_s30  ;;  %s337_s10 = scalar_lea.vmem (%p2538_p1), [#allocation3], %s1649_s9 }
  0x43   : > { %s348_s18 = sadd.s32 (%p2538_p1), %s2214_s14, %s1658_s5 }
  0x44   : > { %s1660_s8 = sshll.u32 %s348_s18, 3 }
  0x45   : > { %s350_s16 = scalar_lea.vmem %s3099_s3, %s1660_s8 }
  0x46   : > { %v385_v4 = vld [vmem:[%s350_s16] sm:$0xff]  ;;  %v387_v5 = vld [vmem:[%s350_s16 + $0x8] sm:$0xff] }
  0x47   : > { %v389_v6 = vld [vmem:[%s350_s16 + $0x120] sm:$0xff]  ;;  %386 = vst [vmem:[%s337_s10] sm:$0xff] %v385_v4  ;;  %v391_v7 = vld [vmem:[%s350_s16 + $0x128] sm:$0xff] }
  0x48   : > { %388 = vst [vmem:[%s337_s10 + $0x8] sm:$0xff] %v387_v5 }
  0x49   : > { %390 = vst [vmem:[%s337_s10 + $0x10] sm:$0xff] %v389_v6 }
  0x4a   : > { %392 = vst [vmem:[%s337_s10 + $0x18] sm:$0xff] %v391_v7 }
  0x4b PF: > { %398 = sbr.rel (!%p2555_p10) target bundleno = 87 (0x57), region = 108  ;;  %s400_s19 = sand.u32 (%p2555_p10), 1, %s2358_s22  }
  0x4c   : > { %s1670_s17 = sshll.u32 (%p2555_p10), %s3183_s20, 1  ;;  %s1661_s13 = sshll.u32 (%p2555_p10), %s400_s19, 5 }
  0x4d   : > { %s2215_s12 = smul.u32 (%p2555_p10), 72, %s2390_s30  ;;  %s402_s8 = scalar_lea.vmem (%p2555_p10), [#allocation4], %s1661_s13 }
  0x4f   : > { %s413_s0 = sadd.s32 (%p2555_p10), %s2215_s12, %s1670_s17 }
  0x50   : > { %s1672_s5 = sshll.u32 %s413_s0, 3 }
  0x51   : > { %s415_s18 = scalar_lea.vmem %s3100_s4, %s1672_s5 }
  0x52   : > { %v450_v8 = vld [vmem:[%s415_s18] sm:$0xff]  ;;  %v452_v9 = vld [vmem:[%s415_s18 + $0x8] sm:$0xff] }
  0x53   : > { %v454_v10 = vld [vmem:[%s415_s18 + $0x120] sm:$0xff]  ;;  %451 = vst [vmem:[%s402_s8] sm:$0xff] %v450_v8  ;;  %v456_v11 = vld [vmem:[%s415_s18 + $0x128] sm:$0xff] }
  0x54   : > { %453 = vst [vmem:[%s402_s8 + $0x8] sm:$0xff] %v452_v9 }
  0x55   : > { %455 = vst [vmem:[%s402_s8 + $0x10] sm:$0xff] %v454_v10 }
  0x56   : > { %457 = vst [vmem:[%s402_s8 + $0x18] sm:$0xff] %v456_v11 }
  0x57 PF: > { %p1673_p7 = scmp.ge.s32.totalorder %s2394_s7, 1  ;;  %p462_p8 = scmp.lt.s32.totalorder %s2394_s7, 21 }
  0x59   : > { %p463_p13 = pnand %p1673_p7, %p462_p8 }
  0x5a   : > { %s469_s20 = sand.u32 (!%p463_p13), 1, %s2370_s25   ;;  %s476_s11 = sand.u32 (!%p463_p13), 1, %s2362_s23  }
  0x5b   : > { %466 = sbr.rel (%p463_p13) target bundleno = 343 (0x157), region = 146  ;;  %s1674_s29 = sshll.u32 (!%p463_p13), %s469_s20, 5 }
  0x5c   : > { %s1675_s1 = sshll.u32 (!%p463_p13), %s476_s11, 5  ;;  %s483_s16 = sand.u32 (!%p463_p13), 1, %s2354_s21  }
  0x5d   : > { %p547_p0 = scmp.lt.s32.totalorder (!%p463_p13), %s2382_s28, 1  ;;  %s1676_s10 = sshll.u32 (!%p463_p13), %s483_s16, 5 }
  0x5e   : > { %p549_p1 = scmp.lt.s32.totalorder (!%p463_p13), %s2378_s27, 9  ;;  %s1679_s19 = sadd.s32 (!%p463_p13), 4294967295, %s2378_s27 }
  0x5f   : > { %p557_p2 = scmp.ge.s32.totalorder (!%p463_p13), %s2378_s27, 1  ;;  %p558_p3 = scmp.le.s32.totalorder (!%p463_p13), %s2378_s27, 8 }
  0x60   : > { %s3189_s28 = smov (!%p547_p0, %s2382_s28), 1  ;;  %s2611_s9 = scalar_lea.vmem [#allocation2], %s1674_s29 }
  0x61   : > { %s550_s17 = scalar_select %p549_p1, %s2378_s27, 9 }
  0x62   : > { %s2216_s13 = smul.u32 20, %s3189_s28  ;;  %p2602_p4 = pnand %p558_p3, %p557_p2 }
  0x63   : > { %s1677_s12 = sshll.u32 %s550_s17, 1  ;;  %s2613_s18 = scalar_lea.vmem [#allocation3], %s1675_s1 }
  0x64   : > { %s553_s0 = sadd.s32 %s2216_s13, %s1677_s12  ;;  %s2615_s8 = scalar_lea.vmem [#allocation4], %s1676_s10 }
  0x65   : > { %s1678_s5 = sshll.u32 %s553_s0, 3  ;;  %562 = sbr.rel (%p2602_p4) target bundleno = 338 (0x152), region = 162 }
  0x66   : > { %s2609_s21 = scalar_lea.vmem %s3102_s6, %s1678_s5  ;;  %s3119_s20 = sld [smem:[#allocation12_spill]] (!%p2602_p4) }
  0x67   : > { %s2628_s29 = sshll.u32 (!%p2602_p4), %s1679_s19, 1  ;;  %s3129_s27 = sld [smem:[#allocation10_spill]] (!%p2602_p4) }
  0x68   : > { %p566_p5 = scmp.ge.s32.totalorder (!%p2602_p4), %s2628_s29, 1  ;;  %p567_p6 = scmp.le.s32.totalorder (!%p2602_p4), %s2628_s29, 16 }
  0x69   : > { %s869_s23 = sadd.s32 (!%p2602_p4), 1, %s2628_s29  ;;  %s1155_s0 = sadd.s32 (!%p2602_p4), 2, %s2628_s29 }
  0x6a   : > { %v584_v15 = vlaneseq  ;;  %p2659_p9 = pnand %p567_p6, %p566_p5  ;;  %p2670_p10 = scmp.ge.s32.totalorder %s869_s23, 1  ;;  %v570_v40 = vld [vmem:[%s2611_s9] sm:$0xff]  ;;  %v571_v41 = vld [vmem:[%s2611_s9 + $0x8] sm:$0x1]  ;;  %v1765_v48 = vld [vmem:[%s2611_s9 + $0x10] sm:$0xff] }
  0x6b   : > { %p2674_p11 = scmp.le.s32.totalorder %s869_s23, 16  ;;  %p2711_p7 = scmp.ge.s32.totalorder %s1155_s0, 1  ;;  %v874_v55 = vld [vmem:[%s2613_s18] sm:$0xff]  ;;  %v875_v56 = vld [vmem:[%s2613_s18 + $0x8] sm:$0x1] }
  0x6c   : > { %v2156_v12 = vld [vmem:[%s3119_s20 + $0xb8] sm:$0xff]  ;;  %v2155_v17 = vld [vmem:[%s3119_s20 + $0xb0] sm:$0xff]  ;;  %v585_v21 = vshrl.u32 %v584_v15, 7  ;;  %v2154_v22 = vld [vmem:[%s3119_s20 + $0xa8] sm:$0xff]  ;;  %s1681_s12 = scalar_select %p2659_p9, 0, 1 }
  0x6d   : > { %v2164_v13 = vld [vmem:[%s3119_s20 + $0x78] sm:$0xff]  ;;  %702 = vmatpush.bf16.msra.mxu0 %v2156_v12  ;;  %v2163_v18 = vld [vmem:[%s3119_s20 + $0x70] sm:$0xff]  ;;  %v2162_v23 = vld [vmem:[%s3119_s20 + $0x68] sm:$0xff]  ;;  %p872_p12 = pnand %p2674_p11, %p2670_p10  ;;  %p2715_p8 = scmp.le.s32.totalorder %s1155_s0, 16 }
  0x6e   : > { %v2172_v14 = vld [vmem:[%s3119_s20 + $0xf8] sm:$0xff]  ;;  %855 = vmatpush.bf16.msra.mxu2 %v2164_v13  ;;  %v2171_v19 = vld [vmem:[%s3119_s20 + $0xf0] sm:$0xff]  ;;  %v2170_v24 = vld [vmem:[%s3119_s20 + $0xe8] sm:$0xff]  ;;  %v586_v26 = vadd.s32 8, %v585_v21  ;;  %v587_v29 = vmul.u32 2, %v585_v21  ;;  %v596_v39 = vstv %s1681_s12  ;;  %s3130_s17 = sld [smem:[#allocation11_spill]] }
  0x6f   : > { %v2148_v16 = vld [vmem:[%s3119_s20 + $0x38] sm:$0xff]  ;;  %960 = vmatpush.bf16.msra.mxu3 %v2172_v14  ;;  %v2147_v20 = vld [vmem:[%s3119_s20 + $0x30] sm:$0xff]  ;;  %v2146_v25 = vld [vmem:[%s3119_s20 + $0x28] sm:$0xff]  ;;  %vm597_vm5 = vcmp.eq.s32.totalorder %v596_v39, 1  ;;  %s2749_s5 = scalar_select %p872_p12, 0, 1 }
  0x70   : > { %763 = vmatpush.bf16.msra.mxu1 %v2148_v16  ;;  %v2153_v27 = vld [vmem:[%s3119_s20 + $0xa0] sm:$0xff]  ;;  %v588_v32 = vmul.u32 2, %v586_v26  ;;  %v2152_v33 = vld [vmem:[%s3119_s20 + $0x98] sm:$0xff]  ;;  %vm589_vm0 = vcmp.ge.s32.totalorder %v587_v29, 1  ;;  %vm591_vm1 = vcmp.le.s32.totalorder %v587_v29, 16  ;;  %v781_v42 = vadd.s32 1, %v587_v29  ;;  %p1158_p13 = pnand %p2715_p8, %p2711_p7 }
  0x71   : > { %703 = vmatpush.bf16.msra.mxu0 %v2155_v17  ;;  %v2161_v28 = vld [vmem:[%s3119_s20 + $0x60] sm:$0xff]  ;;  %v2160_v34 = vld [vmem:[%s3119_s20 + $0x58] sm:$0xff]  ;;  %v2151_v43 = vld [vmem:[%s3119_s20 + $0x90] sm:$0xff]  ;;  %v883_v0 = vstv %s2749_s5 }
  0x72   : > { %856 = vmatpush.bf16.msra.mxu2 %v2163_v18  ;;  %v2169_v30 = vld [vmem:[%s3119_s20 + $0xe0] sm:$0xff]  ;;  %v2168_v35 = vld [vmem:[%s3119_s20 + $0xd8] sm:$0xff]  ;;  %vm2703_vm2 = vcmp.ge.s32.totalorder %v588_v32, 1  ;;  %vm2707_vm3 = vcmp.le.s32.totalorder %v588_v32, 16  ;;  %v2159_v46 = vld [vmem:[%s3119_s20 + $0x50] sm:$0xff]  ;;  %vm782_vm7 = vcmp.ge.s32.totalorder %v781_v42, 1 }
  0x73   : > { %961 = vmatpush.bf16.msra.mxu3 %v2171_v19  ;;  %v2145_v31 = vld [vmem:[%s3119_s20 + $0x20] sm:$0xff]  ;;  %v2144_v36 = vld [vmem:[%s3119_s20 + $0x18] sm:$0xff]  ;;  %vm2739_vm4 = vmand %vm589_vm0, %vm591_vm1  ;;  %vm783_vm8 = vcmp.le.s32.totalorder %v781_v42, 16  ;;  %s2815_s13 = scalar_select %p1158_p13, 0, 1  ;;  %vm2824_vm12 = vcmp.eq.s32.totalorder %v883_v0, 1 }
  0x74   : > { %764 = vmatpush.bf16.msra.mxu1 %v2147_v20  ;;  %v2727_v44 = vld [vmem:[%s3129_s27] ss:$0 sm:$0xff]  ;;  %v2167_v49 = vld [vmem:[%s3119_s20 + $0xd0] sm:$0xff]  ;;  %vm2763_vm6 = vmand %vm2703_vm2, %vm2707_vm3 }
  0x75   : > { %704 = vmatpush.bf16.msra.mxu0 %v2154_v22  ;;  %v2732_v45 = vld [vmem:[%s3130_s17] ss:$0 sm:$0xff]  ;;  %v2143_v50 = vld [vmem:[%s3119_s20 + $0x10] sm:$0xff]  ;;  %v575_v51 = vmul.f32 %v2727_v44, %v570_v40  ;;  %v576_v52 = vmul.f32 %v2727_v44, %v571_v41  ;;  %v778_v54 = vmul.f32 %v2727_v44, %v1765_v48  ;;  %vm2779_vm9 = vmand %vm2739_vm4, %vm597_vm5  ;;  %v876_v60 = vmul.f32 %v2727_v44, %v874_v55 }
  0x76   : > { %857 = vmatpush.bf16.msra.mxu2 %v2162_v23  ;;  %v2150_v61 = vld [vmem:[%s3119_s20 + $0x88] sm:$0xff]  ;;  %vm599_vm10 = vmand %vm2763_vm6, %vm597_vm5  ;;  %v877_v6 = vmul.f32 %v2727_v44, %v875_v56  ;;  %v2149_v8 = vld [vmem:[%s3119_s20 + $0x80] sm:$0xff]  ;;  %v1169_v22 = vstv %s2815_s13 }
  0x77   : > { %962 = vmatpush.bf16.msra.mxu3 %v2170_v24  ;;  %v580_v57 = vadd.f32 %v2732_v45, %v575_v51  ;;  %v581_v58 = vadd.f32 %v2732_v45, %v576_v52  ;;  %v2158_v62 = vld [vmem:[%s3119_s20 + $0x48] sm:$0xff]  ;;  %v779_v63 = vadd.f32 %v2732_v45, %v778_v54  ;;  %vm2805_vm11 = vmand %vm782_vm7, %vm783_vm8  ;;  %v878_v7 = vadd.f32 %v2732_v45, %v876_v60  ;;  %v2157_v12 = vld [vmem:[%s3119_s20 + $0x40] sm:$0xff] }
  0x78   : > { %765 = vmatpush.bf16.msra.mxu1 %v2146_v25  ;;  %v2166_v1 = vld [vmem:[%s3119_s20 + $0xc8] sm:$0xff]  ;;  %v2180_v13 = vld [vmem:[%s3119_s20 + $0x178] sm:$0xff]  ;;  %vm2837_vm13 = vmand %vm2805_vm11, %vm597_vm5  ;;  %v879_v20 = vadd.f32 %v2732_v45, %v877_v6  ;;  %vm2877_vm1 = vcmp.eq.s32.totalorder %v1169_v22, 1 }
  0x79   : > { %705 = vmatpush.bf16.msra.mxu0 %v2153_v27  ;;  %v2142_v2 = vld [vmem:[%s3119_s20 + $0x8] sm:$0xff]  ;;  %v2801_v3 = vmax.f32 %v580_v57, 0.0  ;;  %v583_v4 = vmax.f32 %v581_v58, 0.0  ;;  %v780_v16 = vmax.f32 %v779_v63, 0.0  ;;  %v2196_v18 = vld [vmem:[%s3119_s20 + $0x1b8] sm:$0xff]  ;;  %v2165_v19 = vld [vmem:[%s3119_s20 + $0xc0] sm:$0xff] }
  0x7a   : > { %858 = vmatpush.bf16.msra.mxu2 %v2161_v28  ;;  %v1160_v21 = vld [vmem:[%s2615_s8] sm:$0xff]  ;;  %v880_v26 = vmax.f32 %v878_v7, 0.0  ;;  %vm2857_vm14 = vmand %vm2739_vm4, %vm2824_vm12  ;;  %v1161_v28 = vld [vmem:[%s2615_s8 + $0x8] sm:$0x1]  ;;  %v881_v38 = vmax.f32 %v879_v20, 0.0 }
  0x7b   : > { %963 = vmatpush.bf16.msra.mxu3 %v2169_v30  ;;  %v604_v9 = vsel %vm2779_vm9, %v2801_v3, 0.0  ;;  %v605_v10 = vsel %vm599_vm10, %v583_v4, 0.0  ;;  %v2141_v23 = vld [vmem:[%s3119_s20] sm:$0xff]  ;;  %v2204_v29 = vld [vmem:[%s3119_s20 + $0x238] sm:$0xff]  ;;  %vm1814_vm15 = vmpackc.low %vm2837_vm13, %vm2837_vm13  ;;  %v1163_v32 = vmul.f32 %v2727_v44, %v1161_v28 }
  0x7c   : > { %766 = vmatpush.bf16.msra.mxu1 %v2145_v31  ;;  %v606_v14 = vpack.c.bf16 %v604_v9, %v604_v9  ;;  %v607_v15 = vpack.c.bf16 %v605_v10, %v605_v10  ;;  %v2188_v30 = vld [vmem:[%s3119_s20 + $0x138] sm:$0xff]  ;;  %v1162_v31 = vmul.f32 %v2727_v44, %v1160_v21  ;;  %vm886_vm0 = vmand %vm2763_vm6, %vm2824_vm12  ;;  %v2195_v37 = vld [vmem:[%s3119_s20 + $0x1b0] sm:$0xff]  ;;  %v891_v56 = vsel %vm2857_vm14, %v880_v26, 0.0 }
  0x7d   : > { %706 = vmatpush.bf16.msra.mxu0 %v2152_v33  ;;  %v1815_v33 = vpack.c.bf16 %v780_v16, %v780_v16  ;;  %vm1866_vm2 = vmpackc.low %vm2857_vm14, %vm2857_vm14  ;;  %v1165_v40 = vadd.f32 %v2732_v45, %v1163_v32  ;;  %v2203_v48 = vld [vmem:[%s3119_s20 + $0x230] sm:$0xff]  ;;  %v2178_v47 = vld [vmem:[%s3119_s20 + $0x168] sm:$0xff]  ;;  %v892_v57 = vsel %vm886_vm0, %v881_v38, 0.0  ;;  %v893_v63 = vpack.c.bf16 %v891_v56, %v891_v56 }
  0x7e   : > { %859 = vmatpush.bf16.msra.mxu2 %v2160_v34  ;;  %v643_v24 = vunpack.c.l.b16 %v606_v14  ;;  %v644_v25 = vunpack.c.l.b16 %v607_v15  ;;  %v1164_v39 = vadd.f32 %v2732_v45, %v1162_v31  ;;  %vm1762_vm3 = vmpackc.low %vm2779_vm9, %vm2779_vm9  ;;  %v2194_v55 = vld [vmem:[%s3119_s20 + $0x1a8] sm:$0xff]  ;;  %v894_v59 = vpack.c.bf16 %v892_v57, %v892_v57  ;;  %v2177_v0 = vld [vmem:[%s3119_s20 + $0x160] sm:$0xff] }
  0x7f   : > { %964 = vmatpush.bf16.msra.mxu3 %v2168_v35  ;;  %v1167_v51 = vmax.f32 %v1165_v40, 0.0  ;;  %vm2909_vm5 = vmand %vm2739_vm4, %vm2877_vm1  ;;  %v2202_v53 = vld [vmem:[%s3119_s20 + $0x228] sm:$0xff]  ;;  %v2201_v4 = vld [vmem:[%s3119_s20 + $0x220] sm:$0xff]  ;;  %v993_v7 = vunpack.c.l.b16 %v893_v63 }
  0x80   : > { %767 = vmatpush.bf16.msra.mxu1 %v2144_v36  ;;  %v645_v34 = vpack.c.b16 %v644_v25, %v643_v24  ;;  %v2179_v36 = vld [vmem:[%s3119_s20 + $0x170] sm:$0xff]  ;;  %vm1172_vm7 = vmand %vm2763_vm6, %vm2877_vm1  ;;  %v2186_v60 = vld [vmem:[%s3119_s20 + $0x128] sm:$0xff] }
  0x81   : > { %707 = vmatpush.bf16.msra.mxu0 %v2151_v43  ;;  %v1867_v43 = vpack.c.bf16 %v880_v26, %v880_v26  ;;  %v2185_v6 = vld [vmem:[%s3119_s20 + $0x120] sm:$0xff]  ;;  %v2176_v9 = vld [vmem:[%s3119_s20 + $0x158] sm:$0xff]  ;;  %v1917_v17 = vld [vmem:[%s2613_s18 + $0x10] sm:$0xff] }
  0x82   : > { %860 = vmatpush.bf16.msra.mxu2 %v2159_v46  ;;  %v647_v41 = vshrl.u32 %v645_v34, 16  ;;  %v649_v42 = vshll.u32 %v645_v34, 16  ;;  %v1763_v46 = vpack.c.bf16 %v2801_v3, %v2801_v3  ;;  %v2192_v10 = vld [vmem:[%s3119_s20 + $0x198] sm:$0xff]  ;;  %v2199_v21 = vld [vmem:[%s3119_s20 + $0x210] sm:$0xff]  ;;  %v2174_v26 = vld [vmem:[%s3119_s20 + $0x148] sm:$0xff] }
  0x83   : > { %965 = vmatpush.bf16.msra.mxu3 %v2167_v49  ;;  %v2187_v49 = vld [vmem:[%s3119_s20 + $0x130] sm:$0xff]  ;;  %v2200_v14 = vld [vmem:[%s3119_s20 + $0x218] sm:$0xff]  ;;  %v2190_v27 = vld [vmem:[%s3119_s20 + $0x188] sm:$0xff] }
  0x84   : > { %768 = vmatpush.bf16.msra.mxu1 %v2143_v50  ;;  %v2903_v50 = vmax.f32 %v1164_v39, 0.0  ;;  %v651_v54 = vrot.slane %v649_v42, 1  ;;  %v2184_v15 = vld [vmem:[%s3119_s20 + $0x118] sm:$0xff]  ;;  %v2183_v22 = vld [vmem:[%s3119_s20 + $0x110] sm:$0xff]  ;;  %v2182_v31 = vld [vmem:[%s3119_s20 + $0x108] sm:$0xff] }
  0x85   : > { %708 = vmatpush.bf16.msra.mxu0 %v2150_v61  ;;  %v2069_v25 = vld [vmem:[%s2615_s8 + $0x10] sm:$0xff]  ;;  %v2212_v38 = vld [vmem:[%s3119_s20 + $0x1f8] sm:$0xff]  ;;  %vm2018_vm4 = vmpackc.low %vm2909_vm5, %vm2909_vm5 }
  0x86   : > { %861 = vmatpush.bf16.msra.mxu2 %v2158_v62  ;;  %v652_v58 = vor.u32 %v651_v54, %v647_v41  ;;  %v1177_v61 = vsel %vm2909_vm5, %v2903_v50, 0.0  ;;  %v1178_v62 = vsel %vm1172_vm7, %v1167_v51, 0.0  ;;  %v1354_v28 = vmul.f32 %v2727_v44, %v2069_v25  ;;  %v2181_v41 = vld [vmem:[%s3119_s20 + $0x100] sm:$0xff]  ;;  %vm1071_vm6 = vmand %vm2805_vm11, %vm2824_vm12  ;;  %v2210_v11 = vld [vmem:[%s3119_s20 + $0x1e8] sm:$0xff] }
  0x87   : > { %966 = vmatpush.bf16.msra.mxu3 %v2166_v1  ;;  %v2193_v1 = vld [vmem:[%s3119_s20 + $0x1a0] sm:$0xff]  ;;  %v1180_v3 = vpack.c.bf16 %v1178_v62, %v1178_v62  ;;  %vm1966_vm8 = vmpackc.low %vm1071_vm6, %vm1071_vm6  ;;  %v2208_v52 = vld [vmem:[%s3119_s20 + $0x1d8] sm:$0xff] }
  0x88   : > { %769 = vmatpush.bf16.msra.mxu1 %v2142_v2  ;;  %v1179_v2 = vpack.c.bf16 %v1177_v61, %v1177_v61  ;;  %v2207_v54 = vld [vmem:[%s3119_s20 + $0x1d0] sm:$0xff]  ;;  %v2205_v56 = vld [vmem:[%s3119_s20 + $0x1c0] sm:$0xff]  ;;  %vm1357_vm9 = vmand %vm2805_vm11, %vm2877_vm1  ;;  %vm1444_vm11 = vcmask 1040384  }
  0x89   : > { %709 = vmatpush.bf16.msra.mxu0 %v2149_v8  ;;  %v994_v8 = vunpack.c.l.b16 %v894_v59  ;;  %vm2118_vm10 = vmpackc.low %vm1357_vm9, %vm1357_vm9 }
  0x8a   : > { %862 = vmatpush.bf16.msra.mxu2 %v2157_v12  ;;  %v1279_v12 = vunpack.c.l.b16 %v1179_v2 }
  0x8b   : > { %967 = vmatpush.bf16.msra.mxu3 %v2165_v19  ;;  %v995_v16 = vpack.c.b16 %v994_v8, %v993_v7  ;;  %v2191_v19 = vld [vmem:[%s3119_s20 + $0x190] sm:$0xff] }
  0x8c   : > { %770 = vmatpush.bf16.msra.mxu1 %v2141_v23  ;;  %710 = vmatmul.bf16.vlgmr.msra.gmra.mxu0 %v652_v58  ;;  %v1068_v23 = vmul.f32 %v2727_v44, %v1917_v17  ;;  %v2173_v44 = vld [vmem:[%s3119_s20 + $0x140] sm:$0xff] }
  0x8d   : > { %1052 = vmatpush.bf16.msrb.mxu0 %v2180_v13  ;;  %1816 = vmatmul.msk.bf16.vlgmr.msra.gmra.mxu2 %vm1814_vm15, %v1815_v33  ;;  %v1280_v13 = vunpack.c.l.b16 %v1180_v3  ;;  %v999_v24 = vshll.u32 %v995_v16, 16  ;;  %v1355_v33 = vadd.f32 %v2732_v45, %v1354_v28  ;;  %v997_v34 = vshrl.u32 %v995_v16, 16 }
  0x8e   : > { %1246 = vmatpush.bf16.msrb.mxu2 %v2196_v18  ;;  %1868 = vmatmul.msk.bf16.vlgmr.msra.gmra.mxu3 %vm1866_vm2, %v1867_v43  ;;  %v2175_v18 = vld [vmem:[%s3119_s20 + $0x150] sm:$0xff]  ;;  %v1069_v32 = vadd.f32 %v2732_v45, %v1068_v23  ;;  %v2197_v45 = vld [vmem:[%s3119_s20 + $0x200] sm:$0xff]  ;;  %v2019_v43 = vpack.c.bf16 %v2903_v50, %v2903_v50 }
  0x8f   : > { %1338 = vmatpush.bf16.msrb.mxu3 %v2204_v29  ;;  %1764 = vmatmul.msk.bf16.vlgmr.msra.gmra.mxu1 %vm1762_vm3, %v1763_v46  ;;  %v1281_v20 = vpack.c.b16 %v1280_v13, %v1279_v12  ;;  %v2209_v50 = vld [vmem:[%s3119_s20 + $0x1e0] sm:$0xff] }
  0x90   : > { %1141 = vmatpush.bf16.msrb.mxu1 %v2188_v30  ;;  %v2198_v30 = vld [vmem:[%s3119_s20 + $0x208] sm:$0xff]  ;;  %v1070_v42 = vmax.f32 %v1069_v32, 0.0 }
  0x91   : > { %1053 = vmatpush.bf16.msrb.mxu0 %v2179_v36  ;;  %v1285_v29 = vshll.u32 %v1281_v20, 16  ;;  %v1001_v36 = vrot.slane %v999_v24, 1  ;;  %v1283_v39 = vshrl.u32 %v1281_v20, 16 }
  0x92   : > { %1247 = vmatpush.bf16.msrb.mxu2 %v2195_v37  ;;  %v2189_v37 = vld [vmem:[%s3119_s20 + $0x180] sm:$0xff]  ;;  %v1967_v51 = vpack.c.bf16 %v1070_v42, %v1070_v42 }
  0x93   : > { %1339 = vmatpush.bf16.msrb.mxu3 %v2203_v48  ;;  %v1287_v40 = vrot.slane %v1285_v29, 1  ;;  %v1002_v46 = vor.u32 %v1001_v36, %v997_v34  ;;  %v2211_v48 = vld [vmem:[%s3119_s20 + $0x1f0] sm:$0xff] }
  0x94   : > { %1142 = vmatpush.bf16.msrb.mxu1 %v2187_v49 }
  0x95   : > { %1054 = vmatpush.bf16.msrb.mxu0 %v2178_v47  ;;  %v1288_v49 = vor.u32 %v1287_v40, %v1283_v39  ;;  %v2206_v47 = vld [vmem:[%s3119_s20 + $0x1c8] sm:$0xff] }
  0x96   : > { %1248 = vmatpush.bf16.msrb.mxu2 %v2194_v55  ;;  %v1356_v55 = vmax.f32 %v1355_v33, 0.0 }
  0x97   : > { %1340 = vmatpush.bf16.msrb.mxu3 %v2202_v53 }
  0x98   : > { %1143 = vmatpush.bf16.msrb.mxu1 %v2186_v60  ;;  %v2119_v57 = vpack.c.bf16 %v1356_v55, %v1356_v55 }
  0x99   : > { %1055 = vmatpush.bf16.msrb.mxu0 %v2177_v0 }
  0x9a   : > { %1249 = vmatpush.bf16.msrb.mxu2 %v2193_v1 }
  0x9b   : > { %1341 = vmatpush.bf16.msrb.mxu3 %v2201_v4 }
  0x9c   : > { %1144 = vmatpush.bf16.msrb.mxu1 %v2185_v6 }
  0x9d   : > { %1056 = vmatpush.bf16.msrb.mxu0 %v2176_v9 }
  0x9e   : > { %1250 = vmatpush.bf16.msrb.mxu2 %v2192_v10 }
  0x9f   : > { %1342 = vmatpush.bf16.msrb.mxu3 %v2200_v14 }
  0xa0   : > { %1145 = vmatpush.bf16.msrb.mxu1 %v2184_v15 }
  0xa1   : > { %1057 = vmatpush.bf16.msrb.mxu0 %v2175_v18 }
  0xa2   : > { %1251 = vmatpush.bf16.msrb.mxu2 %v2191_v19 }
  0xa3   : > { %1343 = vmatpush.bf16.msrb.mxu3 %v2199_v21 }
  0xa4   : > { %1146 = vmatpush.bf16.msrb.mxu1 %v2183_v22 }
  0xa5   : > { %1058 = vmatpush.bf16.msrb.mxu0 %v2174_v26 }
  0xa6   : > { %1252 = vmatpush.bf16.msrb.mxu2 %v2190_v27 }
  0xa7   : > { %1344 = vmatpush.bf16.msrb.mxu3 %v2198_v30 }
  0xa8   : > { %1147 = vmatpush.bf16.msrb.mxu1 %v2182_v31 }
  0xa9   : > { %1059 = vmatpush.bf16.msrb.mxu0 %v2173_v44 }
  0xaa   : > { %1253 = vmatpush.bf16.msrb.mxu2 %v2189_v37 }
  0xab   : > { %1345 = vmatpush.bf16.msrb.mxu3 %v2197_v45 }
  0xac   : > { %1148 = vmatpush.bf16.msrb.mxu1 %v2181_v41  ;;  %1060 = vmatmul.bf16.vlgmr.msrb.gmra.mxu0 %v1002_v46 }
  0xad   : > { %1427 = vmatpush.bf16.msra.mxu0 %v2212_v38  ;;  %2020 = vmatmul.msk.bf16.vlgmr.msrb.gmra.mxu2 %vm2018_vm4, %v2019_v43 }
  0xae   : > { %1346 = vmatmul.bf16.vlgmr.msrb.gmra.mxu3 %v1288_v49 }
  0xaf   : > { %1968 = vmatmul.msk.bf16.vlgmr.msrb.gmra.mxu1 %vm1966_vm8, %v1967_v51 }
  0xb1   : > { %1428 = vmatpush.bf16.msra.mxu0 %v2211_v48 }
  0xb5   : > { %1429 = vmatpush.bf16.msra.mxu0 %v2210_v11 }
  0xb9   : > { %1430 = vmatpush.bf16.msra.mxu0 %v2209_v50 }
  0xbd   : > { %1431 = vmatpush.bf16.msra.mxu0 %v2208_v52 }
  0xc1   : > { %1432 = vmatpush.bf16.msra.mxu0 %v2207_v54 }
  0xc5   : > { %1433 = vmatpush.bf16.msra.mxu0 %v2206_v47 }
  0xc9   : > { %1434 = vmatpush.bf16.msra.mxu0 %v2205_v56 }
  0xcc   : > { %2120 = vmatmul.msk.bf16.vlgmr.msra.gmra.mxu0 %vm2118_vm10, %v2119_v57 }
 0x109   : > { %v711_v53 = vpop.f32.mrf.mxu0 }
 0x10c   : > { %v772_v58 = vpop.f32.mrf.mxu1 }
 0x10d   : > { %v773_v3 = vadd.f32 %v772_v58, %v711_v53 }
 0x110   : > { %v864_v60 = vpop.f32.mrf.mxu2 }
 0x111   : > { %v969_v61 = vpop.f32.mrf.mxu3  ;;  %v713_v63 = vpop.f32.mrf.mxu0  ;;  %v868_v35 = vadd.f32 %v864_v60, %v773_v3 }
 0x113   : > { %v973_v8 = vadd.f32 %v969_v61, %v868_v35 }
 0x114   : > { %v774_v62 = vpop.f32.mrf.mxu1 }
 0x118   : > { %v866_v59 = vpop.f32.mrf.mxu2 }
 0x119   : > { %v971_v0 = vpop.f32.mrf.mxu3 }
 0x129   : > { %v1061_v1 = vpop.f32.mrf.mxu0 }
 0x12a   : > { %v1065_v10 = vadd.f32 %v1061_v1, %v973_v8 }
 0x12c   : > { %v1150_v2 = vpop.f32.mrf.mxu1 }
 0x12d   : > { %v1154_v13 = vadd.f32 %v1150_v2, %v1065_v10 }
 0x130   : > { %v1255_v4 = vpop.f32.mrf.mxu2 }
 0x131   : > { %v1347_v6 = vpop.f32.mrf.mxu3  ;;  %v1063_v5 = vpop.f32.mrf.mxu0  ;;  %v1259_v14 = vadd.f32 %v1255_v4, %v1154_v13 }
 0x133   : > { %v1351_v15 = vadd.f32 %v1347_v6, %v1259_v14 }
 0x134   : > { %v1152_v7 = vpop.f32.mrf.mxu1 }
 0x138   : > { %v1257_v9 = vpop.f32.mrf.mxu2 }
 0x139   : > { %v1349_v12 = vpop.f32.mrf.mxu3 }
 0x149   : > { %v1436_v16 = vpop.f32.mrf.mxu0 }
 0x14a   : > { %v1440_v17 = vadd.f32 %v1436_v16, %v1351_v15 }
 0x14c   : > { %v1442_v18 = vrot.slane %v1440_v17, 7 }
 0x14e   : > { %v1445_v19 = vsel %vm1444_vm11, 0.0, %v1442_v18  ;;  %v1446_v20 = vsel %vm1444_vm11, %v1442_v18, 0.0 }
 0x14f   : > { %1447 = vst [vmem:[%s2609_s21] sm:$0xff] %v1445_v19 }
 0x150   : > { %1448 = vst [vmem:[%s2609_s21 + $0x8] sm:$0x3] %v1446_v20 }
 0x151   : > { %v1438_v21 = vpop.f32.mrf.mxu0 }
 0x152 PF: > { %1451 = sbr.rel (!%p2602_p4) target bundleno = 343 (0x157), region = 166  ;;  %v2396_v22 = vmov (%p2602_p4), 0.0  }
 0x153   : > { %1452 = vst [vmem:[%s2609_s21] sm:$0xff] (%p2602_p4), %v2396_v22 }
 0x154   : > { %1453 = vst [vmem:[%s2609_s21 + $0x8] sm:$0x3] (%p2602_p4), %v2396_v22 }
 0x157 PF: > { %s16_s7 = sadd.s32 1, %s2394_s7   ;;  %s3149_s19 = sld [smem:[#allocation9_spill]] }
 0x158   : > { %p13_p0 = scmp.ge.s32.totalorder %s16_s7, 22   ;;  %s3150_s9 = sld [smem:[#allocation8_spill]] }
 0x159   : > { %s3151_s27 = sld [smem:[#allocation5_spill]]  ;;  %s3154_s21 = smov %s2358_s22 }
 0x15a   : > { %s3152_s29 = sld [smem:[#allocation6_spill]]  ;;  %s3155_s22 = smov %s2563_s15 }
 0x15b   : > { %s3153_s14 = sld [smem:[#allocation7_spill]]  ;;  %s3156_s23 = smov %s2366_s24 }
 0x15c   : > { %s3158_s25 = smov %s2374_s26  ;;  %s3160_s28 = smov %s2390_s30 }
 0x15d   : > { %s3157_s24 = smov %s3149_s19  ;;  %15 = sbr.rel (!%p13_p0) target bundleno = 10 (0xa), region = 228 }
 0x15e   : > { %s3159_s26 = smov %s3150_s9 }
 0x161   : > { %s3161_s30 = smov %s3153_s14 }

// kernel: _lambda_.7
= control target key start
LH: loop header
LB: loop body
LE: loop exit
PB: predicated region body
PF: predicated region fallthrough
CT: control target
= control target key end

     0   :  { %s2966_s0 = inlined_call_operand.vmem [shape: f32[1,128], index: 0, kind: input, shape index: {}]   ;;  %s2967_s1 = inlined_call_operand.vmem [shape: f32[1,128], index: 1, kind: input, shape index: {}]   ;;  %s2968_s2 = inlined_call_operand.vmem [shape: f32[2,10,10,128], index: 2, kind: input, shape index: {}, may-alias: {2,3,4}]   ;;  %s2969_s3 = inlined_call_operand.vmem [shape: f32[2,10,10,128], index: 3, kind: input, shape index: {}, may-alias: {2,3,4}]   ;;  %s2970_s4 = inlined_call_operand.vmem [shape: f32[2,10,10,128], index: 4, kind: input, shape index: {}, may-alias: {2,3,4}]   ;;  %s2971_s5 = inlined_call_operand.vmem [shape: bf16[3,3,128,128], index: 5, kind: input, shape index: {}]   ;;  %s2972_s6 = inlined_call_operand.vmem [shape: f32[4,18,9,128], index: 6, kind: input, shape index: {}]   ;;  %s2973_s7 = inlined_call_operand.vmem [shape: bf16[128,128], index: 7, kind: input, shape index: {}]   ;;  %s2974_s8 = inlined_call_operand.vmem [shape: f32[2,8,8,128], index: 8, kind: output, shape index: {}]  }
   0x1   :  { %2976 = sst [smem:[#allocation4_spill]] %s2972_s6 }
   0x2   :  { %s2462_s27 = smov 0   ;;  %s2464_s28 = smov 0  }
   0x3   :  { %s2466_s29 = smov 0   ;;  %s2468_s30 = smov 0  }
   0x4   :  { %s2470_s9 = smov 0   ;;  %s2472_s10 = smov 0  }
   0x5   :  { %s2474_s11 = smov 0  }
   0x6 LB: > { %s27_s12 = sadd.s32 1, %s2407_s9  ;;  %s30_s13 = sadd.s32 1, %s2411_s10  ;;  %s2415_s11 = sphi %s2474_s11, %s18_s11   ;;  %s2411_s10 = sphi %s2472_s10, %s2996_s10   ;;  %s2407_s9 = sphi %s2470_s9, %s2995_s9   ;;  %s2403_s30 = sphi %s2468_s30, %s2994_s30   ;;  %s2399_s29 = sphi %s2466_s29, %s2993_s29   ;;  %s2395_s28 = sphi %s2464_s28, %s2992_s28   ;;  %s2391_s27 = sphi %s2462_s27, %s2991_s27  }
   0x7   : > { %p28_p0 = scmp.ge.s32.totalorder %s27_s12, 8  ;;  %s1703_s14 = sshll.u32 %s2407_s9, 1 }
   0x8   : > { %s210_s15 = sadd.s32 1, %s1703_s14  ;;  %p225_p1 = scmp.ne.s32.totalorder %s2395_s28, %s2391_s27 }
   0x9   : > { %s2998_s12 = smov (%p28_p0, %s27_s12), 0  ;;  %s3000_s13 = smov (!%p28_p0, %s30_s13), %s2411_s10 }
   0xa   : > { %s1704_s16 = sshll.u32 %s2998_s12, 1  ;;  %p32_p2 = scmp.ge.s32.totalorder %s3000_s13, 2 }
   0xb   : > { %s212_s17 = sadd.s32 1, %s1704_s16  ;;  %p226_p3 = scmp.eq.s32.totalorder %s2415_s11, 0 }
   0xc   : > { %s214_s18 = ssub.s32 %s210_s15, %s212_s17  ;;  %s3002_s13 = smov (%p32_p2, %s3000_s13), 0 }
   0xd   : > { %2977 = sst [smem:[#allocation3_spill]] %s3002_s13  ;;  %p227_p4 = por %p226_p3, %p225_p1 }
   0xe   : > { %s213_s19 = ssub.s32 %s2411_s10, %s3002_s13  ;;  %s218_s21 = sadd.s32 1, %s2395_s28 }
   0xf   : > { %s215_s20 = sor.u32 %s214_s18, %s213_s19  ;;  %p1706_p6 = scmp.ge.s32.totalorder %s2415_s11, 16 }
  0x10   : > { %p216_p5 = scmp.eq.s32.totalorder %s215_s20, 0 }
  0x11   : > { %312 = sbr.rel (%p1706_p6) target bundleno = 36 (0x24), region = 32 }
  0x12   : > { %s2513_s22 = scalar_select %p216_p5, %s2395_s28, %s218_s21  }
  0x16   : > { %379 = sbr.rel (!%p227_p4) target bundleno = 36 (0x24), region = 48  ;;  %s381_s23 = sand.u32 (%p227_p4), 1, %s2395_s28  }
  0x17   : > { %s2215_s24 = sshll.u32 (%p227_p4), %s2407_s9, 2  ;;  %s1707_s25 = sshll.u32 (%p227_p4), %s381_s23, 5 }
  0x18   : > { %s1563_s26 = smul.u32 (%p227_p4), 72, %s2411_s10  ;;  %s2978_s6 = sld [smem:[#allocation4_spill]] (%p227_p4) }
  0x19   : > { %s383_s19 = scalar_lea.vmem (%p227_p4), [#allocation2], %s1707_s25 }
  0x1a   : > { %s1564_s14 = sadd.s32 (%p227_p4), %s2215_s24, %s1563_s26 }
  0x1b   : > { %s1710_s15 = sshll.u32 %s1564_s14, 3 }
  0x1e   : > { %s1566_s18 = scalar_lea.vmem %s2978_s6, %s1710_s15 }
  0x1f   : > { %v1711_v0 = vld [vmem:[%s1566_s18 + $0x10] sm:$0xff]  ;;  %v1712_v1 = vld [vmem:[%s1566_s18 + $0x18] sm:$0xff] }
  0x20   : > { %v1713_v2 = vld [vmem:[%s1566_s18 + $0x130] sm:$0xff]  ;;  %427 = vst [vmem:[%s383_s19] sm:$0xff] %v1711_v0  ;;  %v1714_v3 = vld [vmem:[%s1566_s18 + $0x138] sm:$0xff] }
  0x21   : > { %429 = vst [vmem:[%s383_s19 + $0x8] sm:$0xff] %v1712_v1 }
  0x22   : > { %431 = vst [vmem:[%s383_s19 + $0x10] sm:$0xff] %v1713_v2 }
  0x23   : > { %433 = vst [vmem:[%s383_s19 + $0x18] sm:$0xff] %v1714_v3 }
  0x24 PF: > { %p1715_p7 = scmp.ge.s32.totalorder %s2415_s11, 1  ;;  %p438_p8 = scmp.lt.s32.totalorder %s2415_s11, 17 }
  0x26   : > { %p439_p9 = pnand %p1715_p7, %p438_p8 }
  0x27   : > { %p522_p10 = scmp.lt.s32.totalorder (!%p439_p9), %s2399_s29, 9  ;;  %p1717_p11 = scmp.gt.s32.totalorder (!%p439_p9), %s2399_s29, 0 }
  0x28   : > { %442 = sbr.rel (%p439_p9) target bundleno = 276 (0x114), region = 86  ;;  %p526_p12 = scmp.lt.s32.totalorder (!%p439_p9), %s2403_s30, 1 }
  0x29   : > { %p590_p13 = scmp.ge.s32.totalorder (!%p439_p9), %s2399_s29, 1  ;;  %p591_p0 = scmp.le.s32.totalorder (!%p439_p9), %s2399_s29, 8 }
  0x2a   : > { %s2569_s18 = sadd.s32 (!%p439_p9), 1, %s2399_s29  ;;  %s2608_s13 = sadd.s32 (!%p439_p9), 2, %s2399_s29 }
  0x2b   : > { %p2579_p2 = pnand (!%p439_p9), %p591_p0, %p590_p13  ;;  %p540_p3 = scmp.lt.s32.totalorder (!%p439_p9), %s2569_s18, 9 }
  0x2c   : > { %p1724_p4 = scmp.gt.s32.totalorder (!%p439_p9), %s2569_s18, 0  ;;  %p880_p5 = scmp.ge.s32.totalorder (!%p439_p9), %s2569_s18, 1 }
  0x2d   : > { %v2237_v4 = vld [vmem:[%s2971_s5 + $0x78] sm:$0xff]  ;;  %v2236_v8 = vld [vmem:[%s2971_s5 + $0x70] sm:$0xff]  ;;  %s523_s20 = scalar_select %p522_p10, %s2399_s29, 9  ;;  %v2235_v12 = vld [vmem:[%s2971_s5 + $0x68] sm:$0xff]  ;;  %v608_v16 = vlaneseq }
  0x2e   : > { %v2229_v5 = vld [vmem:[%s2971_s5 + $0x38] sm:$0xff]  ;;  %724 = vmatpush.bf16.msra.mxu0 %v2237_v4  ;;  %v2228_v9 = vld [vmem:[%s2971_s5 + $0x30] sm:$0xff]  ;;  %s3004_s30 = smov (!%p526_p12, %s2403_s30), 1  ;;  %v2227_v13 = vld [vmem:[%s2971_s5 + $0x28] sm:$0xff]  ;;  %p881_p6 = scmp.le.s32.totalorder %s2569_s18, 8 }
  0x2f   : > { %v2245_v6 = vld [vmem:[%s2971_s5 + $0xb8] sm:$0xff]  ;;  %785 = vmatpush.bf16.msra.mxu1 %v2229_v5  ;;  %v2244_v10 = vld [vmem:[%s2971_s5 + $0xb0] sm:$0xff]  ;;  %s3006_s20 = smov (!%p1717_p11, %s523_s20), 0  ;;  %s2559_s26 = smul.u32 20, %s3004_s30  ;;  %v2243_v14 = vld [vmem:[%s2971_s5 + $0xa8] sm:$0xff]  ;;  %v2600_v21 = vshrl.u32 %v608_v16, 7 }
  0x30   : > { %v2253_v7 = vld [vmem:[%s2971_s5 + $0xf8] sm:$0xff]  ;;  %865 = vmatpush.bf16.msra.mxu2 %v2245_v6  ;;  %v2252_v11 = vld [vmem:[%s2971_s5 + $0xf0] sm:$0xff]  ;;  %p528_p1 = scmp.lt.s32.totalorder %s3006_s20, 9  ;;  %v2251_v15 = vld [vmem:[%s2971_s5 + $0xe8] sm:$0xff]  ;;  %p2632_p7 = pnand %p881_p6, %p880_p5 }
  0x31   : > { %970 = vmatpush.bf16.msra.mxu3 %v2253_v7  ;;  %s1740_s14 = scalar_select %p2579_p2, 0, 1  ;;  %v2234_v17 = vld [vmem:[%s2971_s5 + $0x60] sm:$0xff]  ;;  %v2233_v22 = vld [vmem:[%s2971_s5 + $0x58] sm:$0xff]  ;;  %v2626_v26 = vadd.s32 8, %v2600_v21  ;;  %v2232_v32 = vld [vmem:[%s2971_s5 + $0x50] sm:$0xff] }
  0x32   : > { %725 = vmatpush.bf16.msra.mxu0 %v2236_v8  ;;  %s3008_s20 = smov (!%p528_p1, %s3006_s20), 9  ;;  %v2226_v18 = vld [vmem:[%s2971_s5 + $0x20] sm:$0xff]  ;;  %v2225_v23 = vld [vmem:[%s2971_s5 + $0x18] sm:$0xff]  ;;  %p559_p8 = scmp.lt.s32.totalorder %s2608_s13, 9  ;;  %v2224_v33 = vld [vmem:[%s2971_s5 + $0x10] sm:$0xff]  ;;  %vm611_vm0 = vcmp.ge.s32.totalorder %v2600_v21, 1 }
  0x33   : > { %786 = vmatpush.bf16.msra.mxu1 %v2228_v9  ;;  %s1722_s21 = sshll.u32 %s3008_s20, 1  ;;  %v2242_v19 = vld [vmem:[%s2971_s5 + $0xa0] sm:$0xff]  ;;  %v2241_v24 = vld [vmem:[%s2971_s5 + $0x98] sm:$0xff]  ;;  %v618_v27 = vstv %s1740_s14  ;;  %p1731_p10 = scmp.gt.s32.totalorder %s2608_s13, 0  ;;  %v2240_v34 = vld [vmem:[%s2971_s5 + $0x90] sm:$0xff]  ;;  %vm614_vm2 = vcmp.le.s32.totalorder %v2626_v26, 8 }
  0x34   : > { %866 = vmatpush.bf16.msra.mxu2 %v2244_v10  ;;  %v2250_v20 = vld [vmem:[%s2971_s5 + $0xe0] sm:$0xff]  ;;  %s532_s15 = sadd.s32 %s2559_s26, %s1722_s21  ;;  %v2249_v25 = vld [vmem:[%s2971_s5 + $0xd8] sm:$0xff]  ;;  %vm619_vm1 = vcmp.eq.s32.totalorder %v618_v27, 1  ;;  %v2248_v35 = vld [vmem:[%s2971_s5 + $0xd0] sm:$0xff]  ;;  %p1158_p11 = scmp.ge.s32.totalorder %s2608_s13, 1 }
  0x35   : > { %971 = vmatpush.bf16.msra.mxu3 %v2252_v11  ;;  %s1723_s20 = sshll.u32 %s532_s15, 3  ;;  %v2642_v30 = vld [vmem:[%s2966_s0] ss:$0 sm:$0xff]  ;;  %vm2673_vm3 = vmand %vm611_vm0, %vm619_vm1  ;;  %v2231_v41 = vld [vmem:[%s2971_s5 + $0x48] sm:$0xff]  ;;  %p1159_p12 = scmp.le.s32.totalorder %s2608_s13, 8 }
  0x36   : > { %726 = vmatpush.bf16.msra.mxu0 %v2235_v12  ;;  %s534_s19 = scalar_lea.vmem %s2968_s2, %s1723_s20  ;;  %v2647_v31 = vld [vmem:[%s2967_s1] ss:$0 sm:$0xff]  ;;  %v2223_v42 = vld [vmem:[%s2971_s5 + $0x8] sm:$0xff]  ;;  %vm621_vm4 = vmand %vm614_vm2, %vm619_vm1  ;;  %p582_p1 = scmp.lt.s32.totalorder %s2399_s29, 7 }
  0x37   : > { %787 = vmatpush.bf16.msra.mxu1 %v2227_v13  ;;  %s541_s25 = scalar_select %p540_p3, %s2569_s18, 9  ;;  %v594_v28 = vld [vmem:[%s534_s19] sm:$0xff]  ;;  %v595_v29 = vld [vmem:[%s534_s19 + $0x8] sm:$0x3]  ;;  %v2261_v57 = vld [vmem:[%s2971_s5 + $0x138] sm:$0xff] }
  0x38   : > { %867 = vmatpush.bf16.msra.mxu2 %v2243_v14  ;;  %v599_v36 = vmul.f32 %v2642_v30, %v594_v28  ;;  %v600_v37 = vmul.f32 %v2642_v30, %v595_v29  ;;  %s1872_s24 = scalar_select %p2632_p7, 0, 1  ;;  %v2239_v43 = vld [vmem:[%s2971_s5 + $0x88] sm:$0xff]  ;;  %v2230_v47 = vld [vmem:[%s2971_s5 + $0x40] sm:$0xff]  ;;  %v2269_v60 = vld [vmem:[%s2971_s5 + $0x178] sm:$0xff] }
  0x39   : > { %972 = vmatpush.bf16.msra.mxu3 %v2251_v15  ;;  %s3010_s25 = smov (!%p1724_p4, %s541_s25), 0  ;;  %v2247_v44 = vld [vmem:[%s2971_s5 + $0xc8] sm:$0xff]  ;;  %p2710_p13 = pnand %p1159_p12, %p1158_p11  ;;  %v2222_v51 = vld [vmem:[%s2971_s5] sm:$0xff]  ;;  %v2277_v61 = vld [vmem:[%s2971_s5 + $0x1b8] sm:$0xff] }
  0x3a   : > { %727 = vmatpush.bf16.msra.mxu0 %v2234_v17  ;;  %p546_p9 = scmp.lt.s32.totalorder %s3010_s25, 9  ;;  %v604_v38 = vadd.f32 %v2647_v31, %v599_v36  ;;  %v605_v39 = vadd.f32 %v2647_v31, %v600_v37  ;;  %v893_v50 = vstv %s1872_s24  ;;  %v2238_v56 = vld [vmem:[%s2971_s5 + $0x80] sm:$0xff]  ;;  %v2285_v4 = vld [vmem:[%s2971_s5 + $0x1f8] sm:$0xff]  ;;  %vm1821_vm6 = vmpackc.low %vm2673_vm3, %vm2673_vm3  ;;  %s3018_s29 = smov (!%p582_p1, %s2399_s29), 7 }
  0x3b   : > { %788 = vmatpush.bf16.msra.mxu1 %v2226_v18  ;;  %s2680_s15 = scalar_select %p559_p8, %s2608_s13, 9  ;;  %vm894_vm5 = vcmp.eq.s32.totalorder %v893_v50, 1  ;;  %v2246_v0 = vld [vmem:[%s2971_s5 + $0xc0] sm:$0xff]  ;;  %v2260_v6 = vld [vmem:[%s2971_s5 + $0x130] sm:$0xff] }
  0x3c   : > { %868 = vmatpush.bf16.msra.mxu2 %v2242_v19  ;;  %s3012_s25 = smov (!%p546_p9, %s3010_s25), 9  ;;  %v606_v45 = vmax.f32 %v604_v38, 0.0  ;;  %v607_v46 = vmax.f32 %v605_v39, 0.0  ;;  %vm2753_vm7 = vmand %vm611_vm0, %vm894_vm5  ;;  %v2268_v10 = vld [vmem:[%s2971_s5 + $0x170] sm:$0xff]  ;;  %v2258_v37 = vld [vmem:[%s2971_s5 + $0x120] sm:$0xff] }
  0x3d   : > { %973 = vmatpush.bf16.msra.mxu3 %v2250_v20  ;;  %s1729_s16 = sshll.u32 %s3012_s25, 1  ;;  %s3014_s15 = smov (!%p1731_p10, %s2680_s15), 0  ;;  %v2276_v11 = vld [vmem:[%s2971_s5 + $0x1b0] sm:$0xff]  ;;  %vm2766_vm8 = vmand %vm614_vm2, %vm894_vm5  ;;  %v2259_v20 = vld [vmem:[%s2971_s5 + $0x128] sm:$0xff] }
  0x3e   : > { %728 = vmatpush.bf16.msra.mxu0 %v2233_v22  ;;  %s550_s6 = sadd.s32 %s2559_s26, %s1729_s16  ;;  %v626_v48 = vsel %vm2673_vm3, %v606_v45, 0.0  ;;  %v627_v49 = vsel %vm621_vm4, %v607_v46, 0.0  ;;  %p565_p0 = scmp.lt.s32.totalorder %s3014_s15, 9  ;;  %v1822_v3 = vpack.c.bf16 %v606_v45, %v606_v45  ;;  %v2284_v18 = vld [vmem:[%s2971_s5 + $0x1f0] sm:$0xff]  ;;  %vm1921_vm9 = vmpackc.low %vm2753_vm7, %vm2753_vm7  ;;  %v2267_v22 = vld [vmem:[%s2971_s5 + $0x168] sm:$0xff] }
  0x3f   : > { %789 = vmatpush.bf16.msra.mxu1 %v2225_v23  ;;  %s1730_s14 = sshll.u32 %s550_s6, 3  ;;  %v628_v52 = vpack.c.bf16 %v626_v48, %v626_v48  ;;  %v629_v53 = vpack.c.bf16 %v627_v49, %v627_v49  ;;  %v2266_v40 = vld [vmem:[%s2971_s5 + $0x160] sm:$0xff]  ;;  %v2257_v45 = vld [vmem:[%s2971_s5 + $0x118] sm:$0xff]  ;;  %v2292_v15 = vld [vmem:[%s2971_s5 + $0x230] sm:$0xff] }
  0x40   : > { %869 = vmatpush.bf16.msra.mxu2 %v2241_v24  ;;  %s552_s17 = scalar_lea.vmem %s2969_s3, %s1730_s14  ;;  %s3016_s15 = smov (!%p565_p0, %s3014_s15), 9  ;;  %v2273_v48 = vld [vmem:[%s2971_s5 + $0x198] sm:$0xff]  ;;  %v2278_v9 = vld [vmem:[%s2971_s5 + $0x1c0] sm:$0xff] }
  0x41   : > { %974 = vmatpush.bf16.msra.mxu3 %v2249_v25  ;;  %v884_v54 = vld [vmem:[%s552_s17] sm:$0xff]  ;;  %v885_v55 = vld [vmem:[%s552_s17 + $0x8] sm:$0x3]  ;;  %v665_v62 = vunpack.c.l.b16 %v628_v52  ;;  %v666_v63 = vunpack.c.l.b16 %v629_v53  ;;  %s2020_s21 = scalar_select %p2710_p13, 0, 1  ;;  %v2281_v52 = vld [vmem:[%s2971_s5 + $0x1d8] sm:$0xff] }
  0x42   : > { %729 = vmatpush.bf16.msra.mxu0 %v2232_v32  ;;  %v886_v58 = vmul.f32 %v2642_v30, %v884_v54  ;;  %v887_v59 = vmul.f32 %v2642_v30, %v885_v55  ;;  %s1736_s19 = sshll.u32 %s3016_s15, 1  ;;  %v2275_v25 = vld [vmem:[%s2971_s5 + $0x1a8] sm:$0xff]  ;;  %v2256_v55 = vld [vmem:[%s2971_s5 + $0x110] sm:$0xff]  ;;  %s445_s14 = sand.u32 1, %s2391_s27  }
  0x43   : > { %790 = vmatpush.bf16.msra.mxu1 %v2224_v33  ;;  %v667_v5 = vpack.c.b16 %v666_v63, %v665_v62  ;;  %s569_s17 = sadd.s32 %s2559_s26, %s1736_s19  ;;  %v1171_v17 = vstv %s2020_s21  ;;  %v2263_v62 = vld [vmem:[%s2971_s5 + $0x148] sm:$0xff] }
  0x44   : > { %870 = vmatpush.bf16.msra.mxu2 %v2240_v34  ;;  %v888_v1 = vadd.f32 %v2647_v31, %v886_v58  ;;  %v889_v2 = vadd.f32 %v2647_v31, %v887_v59  ;;  %s1737_s15 = sshll.u32 %s569_s17, 3  ;;  %vm1172_vm10 = vcmp.eq.s32.totalorder %v1171_v17, 1  ;;  %v2283_v34 = vld [vmem:[%s2971_s5 + $0x1e8] sm:$0xff]  ;;  %v2280_v58 = vld [vmem:[%s2971_s5 + $0x1d0] sm:$0xff] }
  0x45   : > { %975 = vmatpush.bf16.msra.mxu3 %v2248_v35  ;;  %v815_v12 = vrot.slane %v667_v5, 1  ;;  %v669_v13 = vshrl.u32 %v667_v5, 16  ;;  %v671_v14 = vshll.u32 %v667_v5, 16  ;;  %s571_s20 = scalar_lea.vmem %s2970_s4, %s1737_s15  ;;  %vm2811_vm11 = vmand %vm611_vm0, %vm1172_vm10  ;;  %v2271_v63 = vld [vmem:[%s2971_s5 + $0x188] sm:$0xff]  ;;  %v2262_v5 = vld [vmem:[%s2971_s5 + $0x140] sm:$0xff] }
  0x46   : > { %730 = vmatpush.bf16.msra.mxu0 %v2231_v41  ;;  %v890_v7 = vmax.f32 %v888_v1, 0.0  ;;  %v891_v8 = vmax.f32 %v889_v2, 0.0  ;;  %v1162_v28 = vld [vmem:[%s571_s20] sm:$0xff]  ;;  %v1163_v29 = vld [vmem:[%s571_s20 + $0x8] sm:$0x3]  ;;  %vm1174_vm12 = vmand %vm614_vm2, %vm1172_vm10  ;;  %s1716_s20 = sshll.u32 %s445_s14, 5 }
  0x47   : > { %791 = vmatpush.bf16.msra.mxu1 %v2223_v42  ;;  %v673_v19 = vrot.slane %v671_v14, 1  ;;  %v1164_v32 = vmul.f32 %v2642_v30, %v1162_v28  ;;  %v1165_v33 = vmul.f32 %v2642_v30, %v1163_v29  ;;  %v2274_v41 = vld [vmem:[%s2971_s5 + $0x1a0] sm:$0xff]  ;;  %vm2069_vm13 = vmpackc.low %vm2811_vm11, %vm2811_vm11  ;;  %v2287_v28 = vld [vmem:[%s2971_s5 + $0x208] sm:$0xff]  ;;  %s447_s6 = scalar_lea.vmem [#allocation2], %s1716_s20  ;;  %s1738_s14 = sshll.u32 %s3004_s30, 3 }
  0x48   : > { %871 = vmatpush.bf16.msra.mxu2 %v2239_v43  ;;  %v1922_v16 = vpack.c.bf16 %v890_v7, %v890_v7  ;;  %v901_v23 = vsel %vm2753_vm7, %v890_v7, 0.0  ;;  %v902_v24 = vsel %vm2766_vm8, %v891_v8, 0.0  ;;  %v2282_v42 = vld [vmem:[%s2971_s5 + $0x1e0] sm:$0xff]  ;;  %v2293_v7 = vld [vmem:[%s2971_s5 + $0x238] sm:$0xff]  ;;  %v2295_v29 = vld [vmem:[%s2973_s7 + $0x8] sm:$0xff]  ;;  %s585_s25 = sadd.s32 %s1738_s14, %s3018_s29 }
  0x49   : > { %976 = vmatpush.bf16.msra.mxu3 %v2247_v44  ;;  %v674_v27 = vor.u32 %v673_v19, %v669_v13  ;;  %v903_v35 = vpack.c.bf16 %v901_v23, %v901_v23  ;;  %v904_v36 = vpack.c.bf16 %v902_v24, %v902_v24  ;;  %v1166_v38 = vadd.f32 %v2647_v31, %v1164_v32  ;;  %v2301_v8 = vld [vmem:[%s2973_s7 + $0x38] sm:$0xff]  ;;  %v2299_v19 = vld [vmem:[%s2973_s7 + $0x28] sm:$0xff]  ;;  %v2286_v32 = vld [vmem:[%s2971_s5 + $0x200] sm:$0xff]  ;;  %s1739_s26 = sshll.u32 %s585_s25, 3 }
  0x4a   : > { %731 = vmatpush.bf16.msra.mxu0 %v2230_v47  ;;  %v1167_v39 = vadd.f32 %v2647_v31, %v1165_v33  ;;  %v2265_v47 = vld [vmem:[%s2971_s5 + $0x158] sm:$0xff]  ;;  %v2294_v33 = vld [vmem:[%s2973_s7] sm:$0xff]  ;;  %s587_s20 = scalar_lea.vmem %s2974_s8, %s1739_s26 }
  0x4b   : > { %792 = vmatpush.bf16.msra.mxu1 %v2222_v51  ;;  %v2824_v31 = vmax.f32 %v1166_v38, 0.0  ;;  %v1003_v43 = vunpack.c.l.b16 %v903_v35  ;;  %v1004_v44 = vunpack.c.l.b16 %v904_v36  ;;  %v2289_v23 = vld [vmem:[%s2971_s5 + $0x218] sm:$0xff] }
  0x4c   : > { %872 = vmatpush.bf16.msra.mxu2 %v2238_v56  ;;  %v1169_v21 = vmax.f32 %v1167_v39, 0.0  ;;  %v2264_v56 = vld [vmem:[%s2971_s5 + $0x150] sm:$0xff]  ;;  %v2297_v24 = vld [vmem:[%s2973_s7 + $0x18] sm:$0xff] }
  0x4d   : > { %977 = vmatpush.bf16.msra.mxu3 %v2246_v0  ;;  %732 = vmatmul.bf16.vlgmr.msra.gmra.mxu0 %v674_v27  ;;  %v1179_v26 = vsel %vm2811_vm11, %v2824_v31, 0.0  ;;  %v1005_v51 = vpack.c.b16 %v1004_v44, %v1003_v43  ;;  %v2279_v0 = vld [vmem:[%s2971_s5 + $0x1c8] sm:$0xff]  ;;  %v2070_v13 = vpack.c.bf16 %v2824_v31, %v2824_v31  ;;  %v2296_v27 = vld [vmem:[%s2973_s7 + $0x10] sm:$0xff] }
  0x4e   : > { %1062 = vmatpush.bf16.msrb.mxu0 %v2261_v57  ;;  %1823 = vmatmul.msk.bf16.vlgmr.msra.gmra.mxu1 %vm1821_vm6, %v1822_v3  ;;  %v1180_v46 = vsel %vm1174_vm12, %v1169_v21, 0.0  ;;  %v1181_v49 = vpack.c.bf16 %v1179_v26, %v1179_v26  ;;  %v2272_v57 = vld [vmem:[%s2971_s5 + $0x190] sm:$0xff] }
  0x4f   : > { %1143 = vmatpush.bf16.msrb.mxu1 %v2269_v60  ;;  %873 = vmatmul.bf16.vlgmr.msra.gmra.mxu2 %v815_v12  ;;  %v1182_v50 = vpack.c.bf16 %v1180_v46, %v1180_v46  ;;  %v1009_v60 = vshll.u32 %v1005_v51, 16  ;;  %v1007_v1 = vshrl.u32 %v1005_v51, 16  ;;  %v1093_v14 = vrot.slane %v1005_v51, 1 }
  0x50   : > { %1248 = vmatpush.bf16.msrb.mxu2 %v2277_v61  ;;  %1923 = vmatmul.msk.bf16.vlgmr.msra.gmra.mxu3 %vm1921_vm9, %v1922_v16  ;;  %v1281_v53 = vunpack.c.l.b16 %v1181_v49  ;;  %v2255_v61 = vld [vmem:[%s2971_s5 + $0x108] sm:$0xff]  ;;  %v2300_v16 = vld [vmem:[%s2973_s7 + $0x30] sm:$0xff] }
  0x51   : > { %1340 = vmatpush.bf16.msrb.mxu3 %v2285_v4  ;;  %v1282_v54 = vunpack.c.l.b16 %v1182_v50  ;;  %v1011_v2 = vrot.slane %v1009_v60, 1  ;;  %v2254_v4 = vld [vmem:[%s2971_s5 + $0x100] sm:$0xff] }
  0x52   : > { %1063 = vmatpush.bf16.msrb.mxu0 %v2260_v6  ;;  %v2270_v6 = vld [vmem:[%s2971_s5 + $0x180] sm:$0xff] }
  0x53   : > { %1144 = vmatpush.bf16.msrb.mxu1 %v2268_v10  ;;  %v2856_v59 = vpack.c.b16 %v1282_v54, %v1281_v53  ;;  %v1012_v10 = vor.u32 %v1011_v2, %v1007_v1 }
  0x54   : > { %1249 = vmatpush.bf16.msrb.mxu2 %v2276_v11 }
  0x55   : > { %1341 = vmatpush.bf16.msrb.mxu3 %v2284_v18  ;;  %v1287_v3 = vshll.u32 %v2856_v59, 16  ;;  %v1285_v11 = vshrl.u32 %v2856_v59, 16  ;;  %v2291_v18 = vld [vmem:[%s2971_s5 + $0x228] sm:$0xff]  ;;  %v1371_v35 = vrot.slane %v2856_v59, 1 }
  0x56   : > { %1064 = vmatpush.bf16.msrb.mxu0 %v2259_v20  ;;  %v2290_v20 = vld [vmem:[%s2971_s5 + $0x220] sm:$0xff] }
  0x57   : > { %1145 = vmatpush.bf16.msrb.mxu1 %v2267_v22  ;;  %v1289_v12 = vrot.slane %v1287_v3, 1  ;;  %v2298_v22 = vld [vmem:[%s2973_s7 + $0x20] sm:$0xff] }
  0x58   : > { %1250 = vmatpush.bf16.msrb.mxu2 %v2275_v25  ;;  %v2288_v25 = vld [vmem:[%s2971_s5 + $0x210] sm:$0xff] }
  0x59   : > { %1342 = vmatpush.bf16.msrb.mxu3 %v2283_v34  ;;  %v1290_v17 = vor.u32 %v1289_v12, %v1285_v11  ;;  %v2168_v34 = vld [vmem:[%s447_s6 + $0x10] sm:$0xff] }
  0x5a   : > { %1065 = vmatpush.bf16.msrb.mxu0 %v2258_v37  ;;  %v1437_v36 = vpack.c.bf16 %v2168_v34, %v2168_v34 }
  0x5b   : > { %1146 = vmatpush.bf16.msrb.mxu1 %v2266_v40 }
  0x5c   : > { %1251 = vmatpush.bf16.msrb.mxu2 %v2274_v41 }
  0x5d   : > { %1343 = vmatpush.bf16.msrb.mxu3 %v2282_v42 }
  0x5e   : > { %1066 = vmatpush.bf16.msrb.mxu0 %v2257_v45 }
  0x5f   : > { %1147 = vmatpush.bf16.msrb.mxu1 %v2265_v47 }
  0x60   : > { %1252 = vmatpush.bf16.msrb.mxu2 %v2273_v48 }
  0x61   : > { %1344 = vmatpush.bf16.msrb.mxu3 %v2281_v52 }
  0x62   : > { %1067 = vmatpush.bf16.msrb.mxu0 %v2256_v55 }
  0x63   : > { %1148 = vmatpush.bf16.msrb.mxu1 %v2264_v56 }
  0x64   : > { %1253 = vmatpush.bf16.msrb.mxu2 %v2272_v57 }
  0x65   : > { %1345 = vmatpush.bf16.msrb.mxu3 %v2280_v58 }
  0x66   : > { %1068 = vmatpush.bf16.msrb.mxu0 %v2255_v61 }
  0x67   : > { %1149 = vmatpush.bf16.msrb.mxu1 %v2263_v62 }
  0x68   : > { %1254 = vmatpush.bf16.msrb.mxu2 %v2271_v63 }
  0x69   : > { %1346 = vmatpush.bf16.msrb.mxu3 %v2279_v0 }
  0x6a   : > { %1069 = vmatpush.bf16.msrb.mxu0 %v2254_v4 }
  0x6b   : > { %1150 = vmatpush.bf16.msrb.mxu1 %v2262_v5 }
  0x6c   : > { %1255 = vmatpush.bf16.msrb.mxu2 %v2270_v6 }
  0x6d   : > { %1347 = vmatpush.bf16.msrb.mxu3 %v2278_v9  ;;  %1070 = vmatmul.bf16.vlgmr.msrb.gmra.mxu0 %v1012_v10 }
  0x6e   : > { %1421 = vmatpush.bf16.msra.mxu0 %v2293_v7  ;;  %1151 = vmatmul.bf16.vlgmr.msrb.gmra.mxu1 %v1093_v14 }
  0x6f   : > { %1502 = vmatpush.bf16.msra.mxu1 %v2301_v8  ;;  %2071 = vmatmul.msk.bf16.vlgmr.msrb.gmra.mxu2 %vm2069_vm13, %v2070_v13 }
  0x70   : > { %1348 = vmatmul.bf16.vlgmr.msrb.gmra.mxu3 %v1290_v17 }
  0x72   : > { %1422 = vmatpush.bf16.msra.mxu0 %v2292_v15 }
  0x73   : > { %1503 = vmatpush.bf16.msra.mxu1 %v2300_v16 }
  0x76   : > { %1423 = vmatpush.bf16.msra.mxu0 %v2291_v18 }
  0x77   : > { %1504 = vmatpush.bf16.msra.mxu1 %v2299_v19 }
  0x7a   : > { %1424 = vmatpush.bf16.msra.mxu0 %v2290_v20 }
  0x7b   : > { %1505 = vmatpush.bf16.msra.mxu1 %v2298_v22 }
  0x7e   : > { %1425 = vmatpush.bf16.msra.mxu0 %v2289_v23 }
  0x7f   : > { %1506 = vmatpush.bf16.msra.mxu1 %v2297_v24 }
  0x82   : > { %1426 = vmatpush.bf16.msra.mxu0 %v2288_v25 }
  0x83   : > { %1507 = vmatpush.bf16.msra.mxu1 %v2296_v27 }
  0x86   : > { %1427 = vmatpush.bf16.msra.mxu0 %v2287_v28 }
  0x87   : > { %1508 = vmatpush.bf16.msra.mxu1 %v2295_v29 }
  0x8a   : > { %1428 = vmatpush.bf16.msra.mxu0 %v2286_v32 }
  0x8b   : > { %1509 = vmatpush.bf16.msra.mxu1 %v2294_v33 }
  0x8d   : > { %1429 = vmatmul.bf16.vlgmr.msra.gmra.mxu0 %v1371_v35 }
  0x8e   : > { %1510 = vmatmul.bf16.vlgmr.msra.gmra.mxu1 %v1437_v36 }
  0xca   : > { %v733_v38 = vpop.f32.mrf.mxu0 }
  0xcb   : > { %v794_v37 = vpop.f32.mrf.mxu1 }
  0xcc   : > { %v795_v44 = vadd.f32 %v794_v37, %v733_v38 }
  0xd2   : > { %v874_v39 = vpop.f32.mrf.mxu2  ;;  %v735_v41 = vpop.f32.mrf.mxu0 }
  0xd3   : > { %v796_v30 = vpop.f32.mrf.mxu1  ;;  %v979_v40 = vpop.f32.mrf.mxu3  ;;  %v878_v46 = vadd.f32 %v874_v39, %v795_v44 }
  0xd5   : > { %v983_v49 = vadd.f32 %v979_v40, %v878_v46 }
  0xda   : > { %v876_v31 = vpop.f32.mrf.mxu2 }
  0xdb   : > { %v981_v21 = vpop.f32.mrf.mxu3 }
  0xea   : > { %v1071_v42 = vpop.f32.mrf.mxu0 }
  0xeb   : > { %v1152_v43 = vpop.f32.mrf.mxu1  ;;  %v1075_v51 = vadd.f32 %v1071_v42, %v983_v49 }
  0xed   : > { %v1156_v53 = vadd.f32 %v1152_v43, %v1075_v51 }
  0xf2   : > { %v1257_v45 = vpop.f32.mrf.mxu2  ;;  %v1073_v26 = vpop.f32.mrf.mxu0 }
  0xf3   : > { %v1154_v47 = vpop.f32.mrf.mxu1  ;;  %v1349_v48 = vpop.f32.mrf.mxu3  ;;  %v1261_v54 = vadd.f32 %v1257_v45, %v1156_v53 }
  0xf5   : > { %v1353_v55 = vadd.f32 %v1349_v48, %v1261_v54 }
  0xfa   : > { %v1259_v50 = vpop.f32.mrf.mxu2 }
  0xfb   : > { %v1351_v52 = vpop.f32.mrf.mxu3 }
 0x10a   : > { %v1430_v56 = vpop.f32.mrf.mxu0 }
 0x10b   : > { %v1511_v57 = vpop.f32.mrf.mxu1  ;;  %v1434_v58 = vadd.f32 %v1430_v56, %v1353_v55 }
 0x10d   : > { %v1515_v59 = vadd.f32 %v1511_v57, %v1434_v58 }
 0x10f   : > { %1516 = vst [vmem:[%s587_s20] sm:$0xff] %v1515_v59 }
 0x112   : > { %v1432_v60 = vpop.f32.mrf.mxu0 }
 0x113   : > { %v1513_v61 = vpop.f32.mrf.mxu1 }
 0x114 PF: > { %s18_s11 = sadd.s32 1, %s2415_s11   ;;  %s2990_s18 = sld [smem:[#allocation3_spill]] }
 0x115   : > { %p15_p2 = scmp.ge.s32.totalorder %s18_s11, 18   ;;  %s2991_s27 = smov %s2395_s28 }
 0x116   : > { %s2992_s28 = smov %s2513_s22  ;;  %s2993_s29 = smov %s2407_s9 }
 0x117   : > { %s2994_s30 = smov %s2411_s10  ;;  %s2995_s9 = smov %s2998_s12 }
 0x118   :  { %17 = sbr.rel (!%p15_p2) target bundleno = 6 (0x6), region = 143 }
 0x11a   : > { %s2996_s10 = smov %s2990_s18 }

</bundles_post_ra>
